<compile_context>
chip_gen: v7x
topology: tpu7x:2x2x1
jax: 0.10.0
libtpu: 0.0.40
codegen_flags: <defaults>
</compile_context>

<pallas_src>
import functools

import jax
import jax.numpy as jnp
from jax.experimental import pallas as pl
from jax.experimental.pallas import tpu as pltpu


# ----------------------------- configuration --------------------------------
EMBED_DIM = 32
WINDOW_SIZE = (4, 4)
NUM_HEADS = 4
HEAD_DIM = EMBED_DIM // NUM_HEADS
N_TOKENS = WINDOW_SIZE[0] * WINDOW_SIZE[1]          # tokens per window
SCALE = HEAD_DIM ** (-0.5)


# ------------------------------- Pallas kernel -------------------------------
def _window_attn_kernel(x_ref, wqkv_ref, bqkv_ref, wproj_ref, bproj_ref,
                        bias_ref, o_ref, *, num_heads, tokens_per_window):
    # x_ref    : (TB*N, C)  bf16   TB windows, tokens flattened onto rows
    # wqkv_ref : (C, 3C)    bf16   (softmax scale pre-folded into Q columns)
    # bqkv_ref : (1, 3C)    f32
    # wproj_ref: (C, C)     bf16
    # bproj_ref: (1, C)     f32
    # bias_ref : (H, N, N)  f32    relative position bias
    # o_ref    : (TB*N, C)  f32
    H = num_heads
    N = tokens_per_window
    TBN, C = x_ref.shape
    TB = TBN // N
    Dh = C // H

    # ---- fused QKV projection for all TB windows at once (MXU, bf16 -> f32) ----
    qkv = jnp.dot(x_ref[...], wqkv_ref[...],
                  preferred_element_type=jnp.float32) + bqkv_ref[...]   # (TBN, 3C) f32

    # ---- split heads: static lane slices, heads merged into the leading
    #      batch axis -> (H*TB, N, Dh), head-major batch order ----
    def split_heads(base):
        parts = [qkv[:, base + h * Dh: base + (h + 1) * Dh].reshape(TB, N, Dh)
                 for h in range(H)]
        return jnp.concatenate(parts, axis=0).astype(jnp.bfloat16)

    q = split_heads(0)          # already scaled (SCALE folded into W_qkv / b_qkv)
    k = split_heads(C)
    v = split_heads(2 * C)

    # ---- attention scores for all (head, window) pairs in one batched dot ----
    s = jnp.einsum('bnd,bmd->bnm', q, k,
                   preferred_element_type=jnp.float32)                  # (H*TB, N, N)
    # relative position bias: one broadcast add over the TB windows per head
    s = (s.reshape(H, TB, N, N) + bias_ref[...][:, None]).reshape(H * TB, N, N)

    # ---- numerically stable softmax (f32), EUP approximate reciprocal ----
    s = s - jnp.max(s, axis=-1, keepdims=True)
    p = jnp.exp(s)
    p = p * pl.reciprocal(jnp.sum(p, axis=-1, keepdims=True), approx=True)

    # ---- attention @ V, batched over all (head, window) pairs ----
    o = jnp.einsum('bnm,bmd->bnd', p.astype(jnp.bfloat16), v,
                   preferred_element_type=jnp.float32)                  # (H*TB, N, Dh)

    # ---- merge heads back onto the channel (lane) axis -> (TBN, C) ----
    y = jnp.concatenate(
        [o[h * TB:(h + 1) * TB].reshape(TBN, Dh) for h in range(H)], axis=-1)

    # ---- output projection for all TB windows at once (MXU, bf16 -> f32) ----
    y = jnp.dot(y.astype(jnp.bfloat16), wproj_ref[...],
                preferred_element_type=jnp.float32) + bproj_ref[...]
    o_ref[...] = y.astype(o_ref.dtype)


def window_attention_pallas(x, w_qkv, b_qkv, w_proj, b_proj, rel_bias,
                            *, block_windows=8):
    """x: (nW, N, C) float32. Weights stored pre-transposed as (in, out)."""
    nW, N, C = x.shape
    H = rel_bias.shape[0]
    tb = min(block_windows, nW)
    assert nW % tb == 0, "number of windows must be divisible by block_windows"
    grid = (nW // tb,)

    # Fold the softmax scale into the Q columns of the QKV projection
    # (constant preprocessing of weights; removes a per-element multiply
    # from the kernel).  Cast MXU operands to bf16; biases stay f32.
    scale = (C // H) ** (-0.5)
    col_scale = jnp.concatenate([jnp.full((C,), scale, w_qkv.dtype),
                                 jnp.ones((2 * C,), w_qkv.dtype)])
    w_qkv_s = (w_qkv * col_scale[None, :]).astype(jnp.bfloat16)
    b_qkv_s = (b_qkv * col_scale[None, :]).astype(jnp.float32)
    w_proj_b = w_proj.astype(jnp.bfloat16)

    # Flatten windows onto the row (sublane) axis: free reshape, gives each
    # grid step a (tb*N, C) = (128, 32) slab.
    x_flat = x.reshape(nW * N, C).astype(jnp.bfloat16)

    kernel = functools.partial(_window_attn_kernel,
                               num_heads=H, tokens_per_window=N)
    out_flat = pl.pallas_call(
        kernel,
        out_shape=jax.ShapeDtypeStruct((nW * N, C), x.dtype),
        grid=grid,
        in_specs=[
            pl.BlockSpec((tb * N, C), lambda b: (b, 0)),       # x (tb windows)
            pl.BlockSpec((C, 3 * C), lambda b: (0, 0)),        # W_qkv (constant)
            pl.BlockSpec((1, 3 * C), lambda b: (0, 0)),        # b_qkv
            pl.BlockSpec((C, C), lambda b: (0, 0)),            # W_proj
            pl.BlockSpec((1, C), lambda b: (0, 0)),            # b_proj
            pl.BlockSpec((H, N, N), lambda b: (0, 0, 0)),      # rel pos bias
        ],
        out_specs=pl.BlockSpec((tb * N, C), lambda b: (b, 0)),
        compiler_params=pltpu.CompilerParams(
            dimension_semantics=("parallel",)),                # megacore on v7x
    )(x_flat, w_qkv_s, b_qkv_s, w_proj_b, b_proj, rel_bias)
    return out_flat.reshape(nW, N, C)


# --------------------------- parameter construction --------------------------
def make_relative_position_index(window_size):
    Wh, Ww = window_size
    coords_h = jnp.arange(Wh)
    coords_w = jnp.arange(Ww)
    coords = jnp.stack(jnp.meshgrid(coords_h, coords_w, indexing="ij"))  # (2,Wh,Ww)
    coords_flat = coords.reshape(2, -1)                                  # (2, N)
    rel = coords_flat[:, :, None] - coords_flat[:, None, :]              # (2, N, N)
    rel = jnp.transpose(rel, (1, 2, 0))                                  # (N, N, 2)
    rel = rel.at[:, :, 0].add(Wh - 1)
    rel = rel.at[:, :, 1].add(Ww - 1)
    rel = rel.at[:, :, 0].multiply(2 * Ww - 1)
    return rel.sum(-1)                                                   # (N, N)


def init_params(key):
    k1, k2, k3, k4, k5 = jax.random.split(key, 5)
    C = EMBED_DIM
    # Linear weights stored as (in, out) so x @ W matches torch's x @ W.T.
    # Magnitudes are larger than the torch init so the bf16-kernel vs f32-
    # reference comparison is numerically meaningful.
    w_qkv = jax.random.normal(k1, (C, 3 * C), jnp.float32) * 0.1
    b_qkv = jax.random.normal(k2, (1, 3 * C), jnp.float32) * 0.1
    w_proj = jax.random.normal(k3, (C, C), jnp.float32) * 0.1
    b_proj = jax.random.normal(k4, (1, C), jnp.float32) * 0.1
    table_size = (2 * WINDOW_SIZE[0] - 1) * (2 * WINDOW_SIZE[1] - 1)
    table = jax.random.truncated_normal(
        k5, -2.0, 2.0, (table_size, NUM_HEADS), jnp.float32) * 0.5
    return w_qkv, b_qkv, w_proj, b_proj, table


def build_rel_bias(table):
    idx = make_relative_position_index(WINDOW_SIZE)                      # (N, N)
    bias = table[idx.reshape(-1)].reshape(N_TOKENS, N_TOKENS, NUM_HEADS)
    return jnp.transpose(bias, (2, 0, 1)).astype(jnp.float32)            # (H, N, N)


# ------------------------------- pure JAX reference ---------------------------
def window_attention_ref(x, w_qkv, b_qkv, w_proj, b_proj, rel_bias):
    nW, N, C = x.shape
    qkv = x @ w_qkv + b_qkv[0]                                           # (nW, N, 3C)
    qkv = qkv.reshape(nW, N, 3, NUM_HEADS, HEAD_DIM).transpose(2, 0, 3, 1, 4)
    q, k, v = qkv[0], qkv[1], qkv[2]                                     # (nW, H, N, Dh)
    attn = jnp.einsum("whnd,whmd->whnm", q * SCALE, k) + rel_bias[None]
    attn = jax.nn.softmax(attn, axis=-1)
    out = jnp.einsum("whnm,whmd->whnd", attn, v)                          # (nW, H, N, Dh)
    out = out.transpose(0, 2, 1, 3).reshape(nW, N, C)
    return out @ w_proj + b_proj[0]


# ------------------------------------ main ------------------------------------
if __name__ == "__main__":
    key = jax.random.PRNGKey(0)
    kx, kp = jax.random.split(key)

    n_windows = 16                  # e.g. B=4 images x 4 windows of 4x4, C=32
    x = jax.random.normal(kx, (n_windows, N_TOKENS, EMBED_DIM), jnp.float32)

    w_qkv, b_qkv, w_proj, b_proj, table = init_params(kp)
    rel_bias = build_rel_bias(table)

    y = window_attention_pallas(x, w_qkv, b_qkv, w_proj, b_proj, rel_bias,
                                block_windows=8)   # grid=(2,): feeds both v7x TCs
    y = jax.block_until_ready(y)

    y_ref = window_attention_ref(x, w_qkv, b_qkv, w_proj, b_proj, rel_bias)
    assert y.shape == (n_windows, N_TOKENS, EMBED_DIM)
    max_err = float(jnp.max(jnp.abs(y - y_ref)))
    # bf16 MXU operands + approx reciprocal -> looser tolerance than pure f32.
    assert jnp.allclose(y, y_ref, atol=5e-2, rtol=5e-2), \
        f"mismatch vs reference (max abs err {max_err})"
    print("KERNEL_OK")
</pallas_src>

<mosaic_0001>
module attributes {stable_mosaic.version = 11 : i64} {
  func.func @_window_attn_kernel(%arg0: i32, %arg1: memref<128x32xbf16, #tpu.memory_space<vmem>>, %arg2: memref<32x96xbf16, #tpu.memory_space<vmem>>, %arg3: memref<1x96xf32, #tpu.memory_space<vmem>>, %arg4: memref<32x32xbf16, #tpu.memory_space<vmem>>, %arg5: memref<1x32xf32, #tpu.memory_space<vmem>>, %arg6: memref<4x16x16xf32, #tpu.memory_space<vmem>>, %arg7: memref<128x32xf32, #tpu.memory_space<vmem>>) attributes {dimension_semantics = [#tpu.dimension_semantics<parallel>], iteration_bounds = array<i64: 2>, scalar_prefetch = 0 : i64, scratch_operands = 0 : i64, tpu.core_type = #tpu.core_type<tc>, window_params = [{transform_indices = @transform_0, window_bounds = array<i64: 128, 32>}, {pipeline_mode = #tpu.pipeline_mode<synchronous>, transform_indices = @transform_1, window_bounds = array<i64: 32, 96>}, {pipeline_mode = #tpu.pipeline_mode<synchronous>, transform_indices = @transform_2, window_bounds = array<i64: 1, 96>}, {pipeline_mode = #tpu.pipeline_mode<synchronous>, transform_indices = @transform_3, window_bounds = array<i64: 32, 32>}, {pipeline_mode = #tpu.pipeline_mode<synchronous>, transform_indices = @transform_4, window_bounds = array<i64: 1, 32>}, {pipeline_mode = #tpu.pipeline_mode<synchronous>, transform_indices = @transform_5, window_bounds = array<i64: 4, 16, 16>}, {transform_indices = @transform_6, window_bounds = array<i64: 128, 32>}]} {
    %c0 = arith.constant 0 : index
    %c0_0 = arith.constant 0 : index
    %0 = vector.load %arg1[%c0, %c0_0] : memref<128x32xbf16, #tpu.memory_space<vmem>>, vector<128x32xbf16>
    %c0_1 = arith.constant 0 : index
    %c0_2 = arith.constant 0 : index
    %1 = vector.load %arg2[%c0_1, %c0_2] : memref<32x96xbf16, #tpu.memory_space<vmem>>, vector<32x96xbf16>
    %cst = arith.constant dense<0.000000e+00> : vector<128x96xf32>
    %2 = tpu.matmul %0, %1, %cst {dimension_numbers = #tpu.dot_dimension_numbers<[1], [0], [0], [1], [0, 0, 1, 1], [], []>} : vector<128x32xbf16>, vector<32x96xbf16>, vector<128x96xf32> -> vector<128x96xf32>
    %c0_3 = arith.constant 0 : index
    %c0_4 = arith.constant 0 : index
    %3 = vector.load %arg3[%c0_3, %c0_4] : memref<1x96xf32, #tpu.memory_space<vmem>>, vector<1x96xf32>
    %4 = vector.broadcast %3 : vector<1x96xf32> to vector<128x96xf32>
    %5 = arith.addf %2, %4 : vector<128x96xf32>
    %6 = vector.extract_strided_slice %5 {offsets = [0, 0], sizes = [128, 8], strides = [1, 1]} : vector<128x96xf32> to vector<128x8xf32>
    %7 = vector.shape_cast %6 : vector<128x8xf32> to vector<8x16x8xf32>
    %8 = vector.extract_strided_slice %5 {offsets = [0, 8], sizes = [128, 8], strides = [1, 1]} : vector<128x96xf32> to vector<128x8xf32>
    %9 = vector.shape_cast %8 : vector<128x8xf32> to vector<8x16x8xf32>
    %10 = vector.extract_strided_slice %5 {offsets = [0, 16], sizes = [128, 8], strides = [1, 1]} : vector<128x96xf32> to vector<128x8xf32>
    %11 = vector.shape_cast %10 : vector<128x8xf32> to vector<8x16x8xf32>
    %12 = vector.extract_strided_slice %5 {offsets = [0, 24], sizes = [128, 8], strides = [1, 1]} : vector<128x96xf32> to vector<128x8xf32>
    %13 = vector.shape_cast %12 : vector<128x8xf32> to vector<8x16x8xf32>
    %14 = tpu.concatenate %7, %9, %11, %13 in 0 : vector<8x16x8xf32>, vector<8x16x8xf32>, vector<8x16x8xf32>, vector<8x16x8xf32> -> vector<32x16x8xf32>
    %15 = arith.truncf %14 : vector<32x16x8xf32> to vector<32x16x8xbf16>
    %16 = vector.extract_strided_slice %5 {offsets = [0, 32], sizes = [128, 8], strides = [1, 1]} : vector<128x96xf32> to vector<128x8xf32>
    %17 = vector.shape_cast %16 : vector<128x8xf32> to vector<8x16x8xf32>
    %18 = vector.extract_strided_slice %5 {offsets = [0, 40], sizes = [128, 8], strides = [1, 1]} : vector<128x96xf32> to vector<128x8xf32>
    %19 = vector.shape_cast %18 : vector<128x8xf32> to vector<8x16x8xf32>
    %20 = vector.extract_strided_slice %5 {offsets = [0, 48], sizes = [128, 8], strides = [1, 1]} : vector<128x96xf32> to vector<128x8xf32>
    %21 = vector.shape_cast %20 : vector<128x8xf32> to vector<8x16x8xf32>
    %22 = vector.extract_strided_slice %5 {offsets = [0, 56], sizes = [128, 8], strides = [1, 1]} : vector<128x96xf32> to vector<128x8xf32>
    %23 = vector.shape_cast %22 : vector<128x8xf32> to vector<8x16x8xf32>
    %24 = tpu.concatenate %17, %19, %21, %23 in 0 : vector<8x16x8xf32>, vector<8x16x8xf32>, vector<8x16x8xf32>, vector<8x16x8xf32> -> vector<32x16x8xf32>
    %25 = arith.truncf %24 : vector<32x16x8xf32> to vector<32x16x8xbf16>
    %26 = vector.extract_strided_slice %5 {offsets = [0, 64], sizes = [128, 8], strides = [1, 1]} : vector<128x96xf32> to vector<128x8xf32>
    %27 = vector.shape_cast %26 : vector<128x8xf32> to vector<8x16x8xf32>
    %28 = vector.extract_strided_slice %5 {offsets = [0, 72], sizes = [128, 8], strides = [1, 1]} : vector<128x96xf32> to vector<128x8xf32>
    %29 = vector.shape_cast %28 : vector<128x8xf32> to vector<8x16x8xf32>
    %30 = vector.extract_strided_slice %5 {offsets = [0, 80], sizes = [128, 8], strides = [1, 1]} : vector<128x96xf32> to vector<128x8xf32>
    %31 = vector.shape_cast %30 : vector<128x8xf32> to vector<8x16x8xf32>
    %32 = vector.extract_strided_slice %5 {offsets = [0, 88], sizes = [128, 8], strides = [1, 1]} : vector<128x96xf32> to vector<128x8xf32>
    %33 = vector.shape_cast %32 : vector<128x8xf32> to vector<8x16x8xf32>
    %34 = tpu.concatenate %27, %29, %31, %33 in 0 : vector<8x16x8xf32>, vector<8x16x8xf32>, vector<8x16x8xf32>, vector<8x16x8xf32> -> vector<32x16x8xf32>
    %35 = arith.truncf %34 : vector<32x16x8xf32> to vector<32x16x8xbf16>
    "tpu.trace_start"() <{level = 10 : i32, message = "bnd,bmd->bnm"}> : () -> ()
    %cst_5 = arith.constant dense<0.000000e+00> : vector<32x16x16xf32>
    %36 = tpu.matmul %15, %25, %cst_5 {dimension_numbers = #tpu.dot_dimension_numbers<[2], [2], [1], [1], [0, 0, 0, 1, 1, 1], [0], [0]>} : vector<32x16x8xbf16>, vector<32x16x8xbf16>, vector<32x16x16xf32> -> vector<32x16x16xf32>
    "tpu.trace_stop"() : () -> ()
    %37 = vector.shape_cast %36 : vector<32x16x16xf32> to vector<4x8x16x16xf32>
    %c0_6 = arith.constant 0 : index
    %c0_7 = arith.constant 0 : index
    %c0_8 = arith.constant 0 : index
    %38 = vector.load %arg6[%c0_6, %c0_7, %c0_8] : memref<4x16x16xf32, #tpu.memory_space<vmem>>, vector<4x16x16xf32>
    %39 = vector.shape_cast %38 : vector<4x16x16xf32> to vector<4x1x16x16xf32>
    %40 = vector.broadcast %39 : vector<4x1x16x16xf32> to vector<4x8x16x16xf32>
    %41 = arith.addf %37, %40 : vector<4x8x16x16xf32>
    %42 = vector.shape_cast %41 : vector<4x8x16x16xf32> to vector<32x16x16xf32>
    %cst_9 = arith.constant dense<0xFF800000> : vector<32x16xf32>
    %43 = vector.multi_reduction <maximumf>, %42, %cst_9 [2] : vector<32x16x16xf32> to vector<32x16xf32>
    %44 = vector.shape_cast %43 : vector<32x16xf32> to vector<32x16x1xf32>
    %45 = vector.broadcast %44 : vector<32x16x1xf32> to vector<32x16x16xf32>
    %46 = arith.subf %42, %45 : vector<32x16x16xf32>
    %47 = math.exp %46 : vector<32x16x16xf32>
    %cst_10 = arith.constant dense<0.000000e+00> : vector<32x16xf32>
    %48 = vector.multi_reduction <add>, %47, %cst_10 [2] : vector<32x16x16xf32> to vector<32x16xf32>
    %49 = vector.shape_cast %48 : vector<32x16xf32> to vector<32x16x1xf32>
    %50 = tpu.reciprocal %49 {approx = true} : vector<32x16x1xf32> -> vector<32x16x1xf32>
    %51 = vector.broadcast %50 : vector<32x16x1xf32> to vector<32x16x16xf32>
    %52 = arith.mulf %47, %51 : vector<32x16x16xf32>
    %53 = arith.truncf %52 : vector<32x16x16xf32> to vector<32x16x16xbf16>
    "tpu.trace_start"() <{level = 10 : i32, message = "bnm,bmd->bnd"}> : () -> ()
    %cst_11 = arith.constant dense<0.000000e+00> : vector<32x16x8xf32>
    %54 = tpu.matmul %53, %35, %cst_11 {dimension_numbers = #tpu.dot_dimension_numbers<[2], [1], [1], [2], [0, 0, 0, 1, 1, 2], [0], [0]>} : vector<32x16x16xbf16>, vector<32x16x8xbf16>, vector<32x16x8xf32> -> vector<32x16x8xf32>
    "tpu.trace_stop"() : () -> ()
    %55 = vector.extract_strided_slice %54 {offsets = [0, 0, 0], sizes = [8, 16, 8], strides = [1, 1, 1]} : vector<32x16x8xf32> to vector<8x16x8xf32>
    %56 = vector.shape_cast %55 : vector<8x16x8xf32> to vector<128x8xf32>
    %57 = vector.extract_strided_slice %54 {offsets = [8, 0, 0], sizes = [8, 16, 8], strides = [1, 1, 1]} : vector<32x16x8xf32> to vector<8x16x8xf32>
    %58 = vector.shape_cast %57 : vector<8x16x8xf32> to vector<128x8xf32>
    %59 = vector.extract_strided_slice %54 {offsets = [16, 0, 0], sizes = [8, 16, 8], strides = [1, 1, 1]} : vector<32x16x8xf32> to vector<8x16x8xf32>
    %60 = vector.shape_cast %59 : vector<8x16x8xf32> to vector<128x8xf32>
    %61 = vector.extract_strided_slice %54 {offsets = [24, 0, 0], sizes = [8, 16, 8], strides = [1, 1, 1]} : vector<32x16x8xf32> to vector<8x16x8xf32>
    %62 = vector.shape_cast %61 : vector<8x16x8xf32> to vector<128x8xf32>
    %63 = tpu.concatenate %56, %58, %60, %62 in 1 : vector<128x8xf32>, vector<128x8xf32>, vector<128x8xf32>, vector<128x8xf32> -> vector<128x32xf32>
    %64 = arith.truncf %63 : vector<128x32xf32> to vector<128x32xbf16>
    %c0_12 = arith.constant 0 : index
    %c0_13 = arith.constant 0 : index
    %65 = vector.load %arg4[%c0_12, %c0_13] : memref<32x32xbf16, #tpu.memory_space<vmem>>, vector<32x32xbf16>
    %cst_14 = arith.constant dense<0.000000e+00> : vector<128x32xf32>
    %66 = tpu.matmul %64, %65, %cst_14 {dimension_numbers = #tpu.dot_dimension_numbers<[1], [0], [0], [1], [0, 0, 1, 1], [], []>} : vector<128x32xbf16>, vector<32x32xbf16>, vector<128x32xf32> -> vector<128x32xf32>
    %c0_15 = arith.constant 0 : index
    %c0_16 = arith.constant 0 : index
    %67 = vector.load %arg5[%c0_15, %c0_16] : memref<1x32xf32, #tpu.memory_space<vmem>>, vector<1x32xf32>
    %68 = vector.broadcast %67 : vector<1x32xf32> to vector<128x32xf32>
    %69 = arith.addf %66, %68 : vector<128x32xf32>
    %c0_17 = arith.constant 0 : index
    %c0_18 = arith.constant 0 : index
    %70 = vector.load %arg7[%c0_17, %c0_18] : memref<128x32xf32, #tpu.memory_space<vmem>>, vector<128x32xf32>
    tpu.vector_store %arg7[%c0_17, %c0_18], %69 {strides = array<i32>} : memref<128x32xf32, #tpu.memory_space<vmem>>, vector<128x32xf32>,
    return
  }
  func.func @transform_0(%arg0: i32) -> (i32, i32) {
    %c0_i32 = arith.constant 0 : i32
    %c0_i32_0 = arith.constant 0 : i32
    return %arg0, %c0_i32 : i32, i32
  }
  func.func @transform_1(%arg0: i32) -> (i32, i32) {
    %c0_i32 = arith.constant 0 : i32
    %c0_i32_0 = arith.constant 0 : i32
    %c0_i32_1 = arith.constant 0 : i32
    return %c0_i32, %c0_i32_0 : i32, i32
  }
  func.func @transform_2(%arg0: i32) -> (i32, i32) {
    %c0_i32 = arith.constant 0 : i32
    %c0_i32_0 = arith.constant 0 : i32
    %c0_i32_1 = arith.constant 0 : i32
    return %c0_i32, %c0_i32_0 : i32, i32
  }
  func.func @transform_3(%arg0: i32) -> (i32, i32) {
    %c0_i32 = arith.constant 0 : i32
    %c0_i32_0 = arith.constant 0 : i32
    %c0_i32_1 = arith.constant 0 : i32
    return %c0_i32, %c0_i32_0 : i32, i32
  }
  func.func @transform_4(%arg0: i32) -> (i32, i32) {
    %c0_i32 = arith.constant 0 : i32
    %c0_i32_0 = arith.constant 0 : i32
    %c0_i32_1 = arith.constant 0 : i32
    return %c0_i32, %c0_i32_0 : i32, i32
  }
  func.func @transform_5(%arg0: i32) -> (i32, i32, i32) {
    %c0_i32 = arith.constant 0 : i32
    %c0_i32_0 = arith.constant 0 : i32
    %c0_i32_1 = arith.constant 0 : i32
    %c0_i32_2 = arith.constant 0 : i32
    return %c0_i32, %c0_i32_0, %c0_i32_1 : i32, i32, i32
  }
  func.func @transform_6(%arg0: i32) -> (i32, i32) {
    %c0_i32 = arith.constant 0 : i32
    %c0_i32_0 = arith.constant 0 : i32
    return %arg0, %c0_i32 : i32, i32
  }
}

</mosaic_0001>

<bundles_post_ra>
// kernel: tpu_custom_call.1
= control target key start
LH: loop header
LB: loop body
LE: loop exit
PB: predicated region body
PF: predicated region fallthrough
CT: control target
= control target key end

     0   :  { %s6288_s21 = smov 0   ;;  %s8078_s0 = inlined_call_operand.vmem [shape: bf16[256,32], index: 0, kind: input, shape index: {}]   ;;  %s8079_s1 = inlined_call_operand.vmem [shape: bf16[32,96], index: 1, kind: input, shape index: {}]   ;;  %s8080_s2 = inlined_call_operand.vmem [shape: f32[1,96], index: 2, kind: input, shape index: {}]   ;;  %s8081_s3 = inlined_call_operand.vmem [shape: bf16[32,32], index: 3, kind: input, shape index: {}]   ;;  %s8082_s4 = inlined_call_operand.vmem [shape: f32[1,32], index: 4, kind: input, shape index: {}]   ;;  %s8083_s5 = inlined_call_operand.vmem [shape: f32[4,16,16], index: 5, kind: input, shape index: {}]   ;;  %s8084_s6 = inlined_call_operand.vmem [shape: f32[256,32], index: 6, kind: output, shape index: {}]  }
   0x1 LB: > { %s5028_s22 = sadd.s32 4294967295, %s6241_s21   ;;  %p5032_p0 = scmp.ge.s32.totalorder %s6241_s21, 1  ;;  %s6241_s21 = sphi %s6288_s21, %s16_s21  }
   0x2   : > { %p213_p1 = scmp.lt.s32.totalorder %s6241_s21, 3 }
   0x4   : > { %p214_p2 = pnand %p5032_p0, %p213_p1 }
   0x6   : > { %217 = sbr.rel (%p214_p2) target bundleno = 1829 (0x725), region = 44 }
   0xd   : > { %v5967_v0 = vld [vmem:[%s8079_s1] sm:$0xff]   ;;  %s5033_s25 = sshll.u32 %s5028_s22, 4  ;;  %v5968_v1 = vld [vmem:[%s8079_s1 + $0x8] sm:$0xff]   ;;  %vm335_vm0 = vcmask 261120   ;;  %v8085_v17 = vmov 0.0   ;;  %s6244_s10 = smov 120  }
   0xe   : > { %p244_p3 = scmp.lt.s32.totalorder %s5033_s25, 31  ;;  %5281 = vmatprep.subr.bf16.mxu0 %v5967_v0  ;;  %5705 = vmatprep.subr.bf16.mxu1 %v5967_v0  ;;  %v5037_v11 = vld [vmem:[%s8080_s2] ss:$0 sm:$0xff]  ;;  %vm6245_vm1 = vmmov 0   ;;  %s6246_s11 = smov 96   ;;  %vm652_vm2 = vcmask 64512  }
   0xf   : > { %5282 = vmatpush3.bf16.msra.mxu0 %v5967_v0  ;;  %5707 = vmatpush3.bf16.msra.mxu1 %v5967_v0  ;;  %s6247_s12 = smov 112   ;;  %s6248_s13 = smov 104   ;;  %vm2322_vm3 = vcmask 130048   ;;  %vm4787_vm4 = vcmask 195584  }
  0x10   : > { %s8237_s25 = smov (!%p244_p3, %s5033_s25), 31  ;;  %5283 = vmatprep.subr.bf16.mxu0 %v5968_v1  ;;  %5706 = vmatprep.subr.bf16.mxu1 %v5968_v1  ;;  %s6249_s14 = smov 64  }
  0x11   : > { %s5034_s28 = sshll.u32 %s8237_s25, 2  ;;  %s6250_s9 = smov 8  }
  0x12   : > { %s247_s7 = scalar_lea.vmem %s8078_s0, %s5034_s28  ;;  %s6252_s15 = smov 24  }
  0x13   : > { %5284 = vmatpush3.bf16.msra.mxu0 %v5968_v1  ;;  %v5969_v2 = vld [vmem:[%s247_s7] sm:$0xff]   ;;  %5708 = vmatpush3.bf16.msra.mxu1 %v5968_v1  ;;  %v5970_v3 = vld [vmem:[%s247_s7 + $0x8] sm:$0xff]   ;;  %v5971_v4 = vld [vmem:[%s247_s7 + $0x10] sm:$0xff]   ;;  %s5036_s16 = sshll.u32 %s8237_s25, 3 }
  0x14   : > { %5285 = vmatprep.mubr.msk.bf16.mxu0 %vm335_vm0, %v5969_v2  ;;  %v5972_v5 = vld [vmem:[%s247_s7 + $0x20] sm:$0xff]   ;;  %v5974_v6 = vld [vmem:[%s247_s7 + $0x28] sm:$0xff]   ;;  %v5975_v7 = vld [vmem:[%s247_s7 + $0x30] sm:$0xff]   ;;  %5301 = vmatprep.subr.bf16.mxu1 %v8085_v17  ;;  %s8041_s22 = scalar_lea.vmem %s8084_s6, %s5036_s16 }
  0x15   : > { %5293 = vmatprep.mubr.msk.bf16.mxu1 %vm335_vm0, %v5972_v5  ;;  %v5973_v8 = vld [vmem:[%s247_s7 + $0x18] sm:$0xff]   ;;  %5325 = vmatprep.subr.bf16.mxu0 %v8085_v17 }
  0x16   : > { %5286 = vmatmul.mubr.msk.bf16.vlgmr.msra.gmra.mrb[0].mxu0 %vm335_vm0, %v5970_v3  ;;  %5294 = vmatmul.mubr.msk.bf16.vlgmr.msra.gmra.mrb[0].mxu1 %vm335_vm0, %v5974_v6  ;;  %v5976_v9 = vld [vmem:[%s247_s7 + $0x38] sm:$0xff]  }
  0x17   : > { %5289 = vmatprep.mubr.msk.bf16.mxu0 %vm335_vm0, %v5971_v4  ;;  %5297 = vmatprep.mubr.msk.bf16.mxu1 %vm335_vm0, %v5975_v7 }
  0x1e   : > { %5290 = vmatmul.mubr.msk.bf16.gmra.mrb[4].mxu0 %vm335_vm0, %v5973_v8  ;;  %5298 = vmatmul.mubr.msk.bf16.gmra.mrb[4].mxu1 %vm335_vm0, %v5976_v9 }
  0x1f   : > { %5303 = vmatprep.mubr.msk.bf16.mxu1 %vm6245_vm1, %v8085_v17  ;;  %5327 = vmatprep.mubr.msk.bf16.mxu0 %vm6245_vm1, %v8085_v17 }
  0xe9   : > { %v5287_v10 = vpop.f32.mrb[0].mxu0  ;;  %v5295_v20 = vpop.f32.mrb[0].mxu1 }
  0xea   : > { %v394_v12 = vpop.f32.mrb[1].mxu0  ;;  %v403_v14 = vadd.f32 %v5287_v10, %v5037_v11  ;;  %v435_v21 = vadd.f32 %v5295_v20, %v5037_v11  ;;  %v426_v23 = vpop.f32.mrb[1].mxu1 }
  0xeb   : > { %v5288_v13 = vpop.f32.mrb[2].mxu0  ;;  %v395_v18 = vadd.f32 %v5037_v11, %v394_v12  ;;  %v427_v26 = vadd.f32 %v5037_v11, %v426_v23  ;;  %v5296_v27 = vpop.f32.mrb[2].mxu1 }
  0xec   : > { %v406_v15 = vadd.f32 %v5288_v13, %v5037_v11  ;;  %v397_v16 = vpop.f32.mrb[3].mxu0  ;;  %v438_v29 = vadd.f32 %v5296_v27, %v5037_v11  ;;  %v429_v30 = vpop.f32.mrb[3].mxu1 }
  0xed   : > { %v398_v19 = vadd.f32 %v5037_v11, %v397_v16  ;;  %v430_v32 = vadd.f32 %v5037_v11, %v429_v30 }
  0xee   : > { %v6321_v22 = vpack.i.bf16 %v406_v15, %v403_v14  ;;  %v6323_v24 = vpack.c.bf16 %v406_v15, %v403_v14  ;;  %v6333_v34 = vpack.i.bf16 %v438_v29, %v435_v21  ;;  %v6335_v35 = vpack.c.bf16 %v438_v29, %v435_v21 }
  0xef   : > { %v6325_v25 = vpack.i.bf16 %v398_v19, %v395_v18  ;;  %v6327_v28 = vpack.c.bf16 %v398_v19, %v395_v18  ;;  %v6339_v37 = vpack.i.bf16 %v430_v32, %v427_v26  ;;  %v6341_v38 = vpack.c.bf16 %v430_v32, %v427_v26 }
  0xf1   : > { %v5291_v31 = vpop.f32.mrb[4].mxu0  ;;  %5728 = vrot.lane.b32.xlu0 %v6325_v25, %s6244_s10  ;;  %v5299_v44 = vpop.f32.mrb[4].mxu1 }
  0xf2   : > { %v410_v33 = vpop.f32.mrb[5].mxu0  ;;  %v419_v39 = vadd.f32 %v5291_v31, %v5037_v11  ;;  %v451_v45 = vadd.f32 %v5299_v44, %v5037_v11  ;;  %v442_v46 = vpop.f32.mrb[5].mxu1 }
  0xf3   : > { %v5292_v36 = vpop.f32.mrb[6].mxu0  ;;  %v411_v42 = vadd.f32 %v5037_v11, %v410_v33  ;;  %v443_v50 = vadd.f32 %v5037_v11, %v442_v46  ;;  %v5300_v51 = vpop.f32.mrb[6].mxu1 }
  0xf4   : > { %v422_v40 = vadd.f32 %v5292_v36, %v5037_v11  ;;  %v413_v41 = vpop.f32.mrb[7].mxu0  ;;  %v454_v53 = vadd.f32 %v5300_v51, %v5037_v11  ;;  %v445_v54 = vpop.f32.mrb[7].mxu1 }
  0xf5   : > { %v414_v43 = vadd.f32 %v5037_v11, %v413_v41  ;;  %5733 = vrot.lane.b32.xlu0 %v6321_v22, %s6244_s10  ;;  %v446_v55 = vadd.f32 %v5037_v11, %v445_v54 }
  0xf6   : > { %v6345_v47 = vpack.i.bf16 %v422_v40, %v419_v39  ;;  %v6347_v48 = vpack.c.bf16 %v422_v40, %v419_v39  ;;  %v6357_v56 = vpack.i.bf16 %v454_v53, %v451_v45  ;;  %v6359_v57 = vpack.c.bf16 %v454_v53, %v451_v45 }
  0xf7   : > { %v6349_v49 = vpack.i.bf16 %v414_v43, %v411_v42  ;;  %v6351_v52 = vpack.c.bf16 %v414_v43, %v411_v42  ;;  %v6361_v58 = vpack.i.bf16 %v446_v55, %v443_v50  ;;  %v6363_v59 = vpack.c.bf16 %v446_v55, %v443_v50 }
  0xf9   : > { %5738 = vrot.lane.b32.xlu1 %v6349_v49, %s6244_s10  ;;  %650 = vrot.lane.b32.xlu0 %v6327_v28, %s6246_s11 }
  0xfd   : > { %5743 = vrot.lane.b32.xlu1 %v6345_v47, %s6244_s10  ;;  %5753 = vrot.lane.b32.xlu0 %v6333_v34, %s6244_s10 }
 0x101   : > { %5748 = vrot.lane.b32.xlu1 %v6339_v37, %s6244_s10  ;;  %5758 = vrot.lane.b32.xlu0 %v6361_v58, %s6244_s10 }
 0x105   : > { %701 = vrot.lane.b32.xlu1 %v6323_v24, %s6246_s11  ;;  %751 = vrot.lane.b32.xlu0 %v6351_v52, %s6246_s11 }
 0x109   : > { %5763 = vrot.lane.b32.xlu1 %v6357_v56, %s6244_s10  ;;  %5773 = vrot.lane.b32.xlu0 %v6321_v22, %s6247_s12  ;;  %s6251_s10 = smov 16  }
 0x10d   : > { %5768 = vrot.lane.b32.xlu1 %v6325_v25, %s6247_s12  ;;  %5778 = vrot.lane.b32.xlu0 %v6349_v49, %s6247_s12 }
 0x111   : > { %801 = vrot.lane.b32.xlu1 %v6347_v48, %s6246_s11  ;;  %851 = vrot.lane.b32.xlu0 %v6341_v38, %s6246_s11 }
 0x115   : > { %5783 = vrot.lane.b32.xlu1 %v6345_v47, %s6247_s12  ;;  %5788 = vrot.lane.b32.xlu0 %v6339_v37, %s6247_s12 }
 0x119   : > { %901 = vrot.lane.b32.xlu1 %v6335_v35, %s6246_s11  ;;  %951 = vrot.lane.b32.xlu0 %v6363_v59, %s6246_s11 }
 0x11d   : > { %5793 = vrot.lane.b32.xlu1 %v6333_v34, %s6247_s12  ;;  %5798 = vrot.lane.b32.xlu0 %v6361_v58, %s6247_s12 }
 0x121   : > { %1001 = vrot.lane.b32.xlu1 %v6359_v57, %s6246_s11 }
 0x125   : > { %5803 = vrot.lane.b32.xlu1 %v6357_v56, %s6247_s12 }
 0x163   : > { %v5729_v60 = vpop.permute.xlu0 %5728 }
 0x164   : > { %v5731_v61 = vunpack.i.h.bf16 %v5729_v60  ;;  %v5730_v62 = vunpack.i.l.bf16 %v5729_v60 }
 0x166   : > { %v6397_v63 = vpack.c.bf16 %v5731_v61, %v5730_v62 }
 0x167   : > { %v5734_v0 = vpop.permute.xlu0 %5733 }
 0x168   : > { %v5736_v1 = vunpack.i.h.bf16 %v5734_v0  ;;  %v5735_v2 = vunpack.i.l.bf16 %v5734_v0  ;;  %1051 = vrot.lane.b32.xlu0 %v6397_v63, %s6246_s11 }
 0x16a   : > { %v6401_v3 = vpack.c.bf16 %v5736_v1, %v5735_v2 }
 0x16b   : > { %v5739_v4 = vpop.permute.xlu1 %5738  ;;  %v651_v5 = vpop.permute.xlu0 %650 }
 0x16c   : > { %v5741_v6 = vunpack.i.h.bf16 %v5739_v4  ;;  %v5740_v7 = vunpack.i.l.bf16 %v5739_v4  ;;  %v657_v8 = vsel %vm652_vm2, %v651_v5, 0  ;;  %1101 = vrot.lane.b32.xlu1 %v6401_v3, %s6246_s11  ;;  %5808 = vrot.lane.b32.xlu0 %v6325_v25, %s6248_s13 }
 0x16d   : > { %5302 = vmatpush3.bf16.xpose.msra.mxu1 %v657_v8 }
 0x16e   : > { %v6408_v9 = vpack.c.bf16 %v5741_v6, %v5740_v7  ;;  %5307 = vmatprep.subr.bf16.mxu1 %v8085_v17 }
 0x16f   : > { %v5744_v10 = vpop.permute.xlu1 %5743  ;;  %v5754_v11 = vpop.permute.xlu0 %5753 }
 0x170   : > { %v5746_v12 = vunpack.i.h.bf16 %v5744_v10  ;;  %v5745_v13 = vunpack.i.l.bf16 %v5744_v10  ;;  %5813 = vrot.lane.b32.xlu1 %v6321_v22, %s6248_s13  ;;  %1151 = vrot.lane.b32.xlu0 %v6408_v9, %s6246_s11  ;;  %v5756_v20 = vunpack.i.h.bf16 %v5754_v11  ;;  %v5755_v21 = vunpack.i.l.bf16 %v5754_v11 }
 0x172   : > { %v6415_v14 = vpack.c.bf16 %v5746_v12, %v5745_v13  ;;  %v6432_v30 = vpack.c.bf16 %v5756_v20, %v5755_v21 }
 0x173   : > { %v5749_v15 = vpop.permute.xlu1 %5748  ;;  %v5759_v16 = vpop.permute.xlu0 %5758 }
 0x174   : > { %v5751_v18 = vunpack.i.h.bf16 %v5749_v15  ;;  %v5750_v19 = vunpack.i.l.bf16 %v5749_v15  ;;  %1201 = vrot.lane.b32.xlu1 %v6415_v14, %s6246_s11  ;;  %5818 = vrot.lane.b32.xlu0 %v6349_v49, %s6248_s13  ;;  %v5761_v26 = vunpack.i.h.bf16 %v5759_v16  ;;  %v5760_v27 = vunpack.i.l.bf16 %v5759_v16 }
 0x175   : > { %5304 = vmatmul.mubr.msk.bf16.vlgmr.msra.gmra.mrb[8].mxu1 %vm652_vm2, %v6327_v28 }
 0x176   : > { %v6423_v22 = vpack.c.bf16 %v5751_v18, %v5750_v19  ;;  %5309 = vmatprep.mubr.msk.bf16.mxu1 %vm6245_vm1, %v8085_v17  ;;  %v6439_v33 = vpack.c.bf16 %v5761_v26, %v5760_v27 }
 0x177   : > { %v702_v23 = vpop.permute.xlu1 %701  ;;  %v752_v25 = vpop.permute.xlu0 %751 }
 0x178   : > { %v707_v29 = vsel %vm652_vm2, %v702_v23, 0  ;;  %5823 = vrot.lane.b32.xlu1 %v6345_v47, %s6248_s13  ;;  %1251 = vrot.lane.b32.xlu0 %v6423_v22, %s6246_s11  ;;  %v757_v42 = vsel %vm652_vm2, %v752_v25, 0 }
 0x179   : > { %5308 = vmatpush3.bf16.xpose.msra.mxu1 %v707_v29 }
 0x17a   : > { %5313 = vmatprep.subr.bf16.mxu1 %v8085_v17 }
 0x17b   : > { %v5764_v31 = vpop.permute.xlu1 %5763  ;;  %v5774_v32 = vpop.permute.xlu0 %5773 }
 0x17c   : > { %5828 = vrot.lane.b32.xlu0 %v6339_v37, %s6248_s13  ;;  %1301 = vrot.lane.b32.xlu1 %v6432_v30, %s6246_s11  ;;  %v5766_v36 = vunpack.i.h.bf16 %v5764_v31  ;;  %v5765_v39 = vunpack.i.l.bf16 %v5764_v31  ;;  %v5776_v49 = vunpack.i.h.bf16 %v5774_v32  ;;  %v5775_v50 = vunpack.i.l.bf16 %v5774_v32 }
 0x17e   : > { %v6448_v37 = vpack.c.bf16 %v5766_v36, %v5765_v39  ;;  %v6473_v5 = vpack.c.bf16 %v5776_v49, %v5775_v50 }
 0x17f   : > { %v5769_v40 = vpop.permute.xlu1 %5768  ;;  %v5779_v41 = vpop.permute.xlu0 %5778 }
 0x180   : > { %5310 = vmatmul.mubr.msk.bf16.vlgmr.msra.gmra.mrb[12].mxu1 %vm652_vm2, %v6323_v24  ;;  %1351 = vrot.lane.b32.xlu0 %v6439_v33, %s6246_s11  ;;  %v5771_v43 = vunpack.i.h.bf16 %v5769_v40  ;;  %v5770_v44 = vunpack.i.l.bf16 %v5769_v40  ;;  %v5780_v61 = vunpack.i.l.bf16 %v5779_v41 }
 0x181   : > { %5833 = vrot.lane.b32.xlu1 %v6333_v34, %s6248_s13  ;;  %5314 = vmatpush3.bf16.xpose.msra.mxu1 %v757_v42 }
 0x182   : > { %5315 = vmatprep.mubr.msk.bf16.mxu1 %vm6245_vm1, %v8085_v17  ;;  %5319 = vmatprep.subr.bf16.mxu1 %v8085_v17  ;;  %v6458_v34 = vpack.c.bf16 %v5771_v43, %v5770_v44 }
 0x183   : > { %v802_v45 = vpop.permute.xlu1 %801  ;;  %v852_v46 = vpop.permute.xlu0 %851 }
 0x184   : > { %v857_v47 = vsel %vm652_vm2, %v852_v46, 0  ;;  %5838 = vrot.lane.b32.xlu0 %v6361_v58, %s6248_s13  ;;  %v807_v54 = vsel %vm652_vm2, %v802_v45, 0  ;;  %v5781_v58 = vunpack.i.h.bf16 %v5779_v41 }
 0x185   : > { %1401 = vrot.lane.b32.xlu1 %v6448_v37, %s6246_s11  ;;  %5326 = vmatpush3.bf16.xpose.msra.mxu0 %v857_v47 }
 0x186   : > { %5337 = vmatprep.subr.bf16.mxu0 %v8085_v17 }
 0x187   : > { %v5784_v51 = vpop.permute.xlu1 %5783  ;;  %v5789_v53 = vpop.permute.xlu0 %5788 }
 0x188   : > { %v5791_v55 = vunpack.i.h.bf16 %v5789_v53  ;;  %v5790_v60 = vunpack.i.l.bf16 %v5789_v53  ;;  %5316 = vmatmul.mubr.msk.bf16.vlgmr.msra.gmra.mrb[16].mxu1 %vm652_vm2, %v6351_v52  ;;  %1451 = vrot.lane.b32.xlu0 %v6458_v34, %s6246_s11  ;;  %v5786_v0 = vunpack.i.h.bf16 %v5784_v51  ;;  %v5785_v1 = vunpack.i.l.bf16 %v5784_v51 }
 0x189   : > { %5843 = vrot.lane.b32.xlu1 %v6357_v56, %s6248_s13  ;;  %5320 = vmatpush3.bf16.xpose.msra.mxu1 %v807_v54  ;;  %v6482_v56 = vpack.c.bf16 %v5781_v58, %v5780_v61 }
 0x18a   : > { %v6468_v62 = vpack.c.bf16 %v5791_v55, %v5790_v60  ;;  %5321 = vmatprep.mubr.msk.bf16.mxu1 %vm6245_vm1, %v8085_v17  ;;  %5331 = vmatprep.subr.bf16.mxu1 %v8085_v17  ;;  %v6487_v8 = vpack.c.bf16 %v5786_v0, %v5785_v1 }
 0x18b   : > { %v902_v2 = vpop.permute.xlu1 %901  ;;  %v952_v4 = vpop.permute.xlu0 %951 }
 0x18c   : > { %v957_v6 = vsel %vm652_vm2, %v952_v4, 0  ;;  %5328 = vmatmul.mubr.msk.bf16.vlgmr.msra.gmra.mrb[8].mxu0 %vm652_vm2, %v6341_v38  ;;  %1651 = vrot.lane.b32.xlu0 %v6468_v62, %s6246_s11  ;;  %v907_v10 = vsel %vm652_vm2, %v902_v2, 0 }
 0x18d   : > { %1501 = vrot.lane.b32.xlu1 %v6473_v5, %s6246_s11  ;;  %5338 = vmatpush3.bf16.xpose.msra.mxu0 %v957_v6 }
 0x18e   : > { %5339 = vmatprep.mubr.msk.bf16.mxu0 %vm6245_vm1, %v8085_v17  ;;  %5349 = vmatprep.subr.bf16.mxu0 %v8085_v17 }
 0x18f   : > { %v5794_v7 = vpop.permute.xlu1 %5793  ;;  %v6521_v23 = vpop.permute.xlu0 %5798 }
 0x190   : > { %v5796_v11 = vunpack.i.h.bf16 %v5794_v7  ;;  %v5795_v12 = vunpack.i.l.bf16 %v5794_v7  ;;  %5322 = vmatmul.mubr.msk.bf16.vlgmr.msra.gmra.mrb[20].mxu1 %vm652_vm2, %v6347_v48  ;;  %1551 = vrot.lane.b32.xlu0 %v6482_v56, %s6246_s11 }
 0x191   : > { %1601 = vrot.lane.b32.xlu1 %v6487_v8, %s6246_s11  ;;  %5332 = vmatpush3.bf16.xpose.msra.mxu1 %v907_v10 }
 0x192   : > { %v6496_v13 = vpack.c.bf16 %v5796_v11, %v5795_v12  ;;  %5333 = vmatprep.mubr.msk.bf16.mxu1 %vm6245_vm1, %v8085_v17  ;;  %5343 = vmatprep.subr.bf16.mxu1 %v8085_v17 }
 0x193   : > { %v1002_v15 = vpop.permute.xlu1 %1001 }
 0x194   : > { %5340 = vmatmul.mubr.msk.bf16.vlgmr.msra.gmra.mrb[12].mxu0 %vm652_vm2, %v6363_v59  ;;  %v1007_v16 = vsel %vm652_vm2, %v1002_v15, 0  ;;  %v5801_v15 = vunpack.i.h.bf16 %v6521_v23 }
 0x195   : > { %1701 = vrot.lane.b32.xlu1 %v6496_v13, %s6246_s11  ;;  %5351 = vmatprep.mubr.msk.bf16.mxu0 %vm6245_vm1, %v8085_v17 }
 0x197   : > { %v5804_v18 = vpop.permute.xlu1 %5803 }
 0x198   : > { %5334 = vmatmul.mubr.msk.bf16.vlgmr.msra.gmra.mrb[24].mxu1 %vm652_vm2, %v6335_v35  ;;  %v5806_v19 = vunpack.i.h.bf16 %v5804_v18  ;;  %v5805_v20 = vunpack.i.l.bf16 %v5804_v18 }
 0x199   : > { %5344 = vmatpush3.bf16.xpose.msra.mxu1 %v1007_v16  ;;  %5345 = vmatprep.mubr.msk.bf16.mxu1 %vm6245_vm1, %v8085_v17  ;;  %v5800_v16 = vunpack.i.l.bf16 %v6521_v23 }
 0x19a   : > { %v6512_v21 = vpack.c.bf16 %v5806_v19, %v5805_v20  ;;  %5355 = vmatprep.subr.bf16.mxu1 %v8085_v17 }
 0x19b   : > { %v6590_v23 = vpack.c.bf16 %v5801_v15, %v5800_v16 }
 0x19c   : > { %8123 = vst [vmem:[#allocation2_spill] sm:$0xff] %v6512_v21  ;;  %1801 = vrot.lane.b32.xlu1 %v6512_v21, %s6246_s11 }
 0x19d   : > { %8129 = vst [vmem:[#allocation8_spill] sm:$0xff] %v6590_v23 }
 0x1a0   : > { %5346 = vmatmul.mubr.msk.bf16.vlgmr.msra.gmra.mrb[28].mxu1 %vm652_vm2, %v6359_v57 }
 0x1a1   : > { %5357 = vmatprep.mubr.msk.bf16.mxu1 %vm6245_vm1, %v8085_v17 }
 0x1da   : > { %v1052_v25 = vpop.permute.xlu0 %1051 }
 0x1db   : > { %v1057_v26 = vsel %vm652_vm2, %v1052_v25, 0 }
 0x1dc   : > { %5350 = vmatpush3.bf16.xpose.msra.mxu0 %v1057_v26 }
 0x1dd   : > { %5361 = vmatprep.subr.bf16.mxu0 %v8085_v17 }
 0x1de   : > { %v1102_v27 = vpop.permute.xlu1 %1101  ;;  %v5809_v29 = vpop.permute.xlu0 %5808 }
 0x1df   : > { %v1107_v31 = vsel %vm652_vm2, %v1102_v27, 0  ;;  %v5811_v32 = vunpack.i.h.bf16 %v5809_v29  ;;  %v5810_v36 = vunpack.i.l.bf16 %v5809_v29 }
 0x1e0   : > { %5356 = vmatpush3.bf16.xpose.msra.mxu1 %v1107_v31 }
 0x1e1   : > { %v6526_v39 = vpack.c.bf16 %v5811_v32, %v5810_v36  ;;  %5367 = vmatprep.subr.bf16.mxu1 %v8085_v17 }
 0x1e2   : > { %v5814_v40 = vpop.permute.xlu1 %5813  ;;  %v1152_v41 = vpop.permute.xlu0 %1151 }
 0x1e3   : > { %8124 = vst [vmem:[#allocation3_spill] sm:$0xff] %v6526_v39  ;;  %v5816_v42 = vunpack.i.h.bf16 %v5814_v40  ;;  %v5815_v43 = vunpack.i.l.bf16 %v5814_v40  ;;  %v1157_v44 = vsel %vm652_vm2, %v1152_v41, 0  ;;  %5352 = vmatmul.mubr.msk.bf16.vlgmr.msra.gmra.mrb[16].mxu0 %vm652_vm2, %v6397_v63  ;;  %1851 = vrot.lane.b32.xlu0 %v6526_v39, %s6246_s11 }
 0x1e4   : > { %5362 = vmatpush3.bf16.xpose.msra.mxu0 %v1157_v44  ;;  %5363 = vmatprep.mubr.msk.bf16.mxu0 %vm6245_vm1, %v8085_v17 }
 0x1e5   : > { %v6536_v45 = vpack.c.bf16 %v5816_v42, %v5815_v43  ;;  %5373 = vmatprep.subr.bf16.mxu0 %v8085_v17 }
 0x1e6   : > { %v1202_v46 = vpop.permute.xlu1 %1201  ;;  %v6539_v47 = vpop.permute.xlu0 %5818 }
 0x1e7   : > { %8125 = vst [vmem:[#allocation4_spill] sm:$0xff] %v6536_v45  ;;  %v1207_v49 = vsel %vm652_vm2, %v1202_v46, 0  ;;  %5358 = vmatmul.mubr.msk.bf16.vlgmr.msra.gmra.mrb[32].mxu1 %vm652_vm2, %v6401_v3  ;;  %1901 = vrot.lane.b32.xlu1 %v6536_v45, %s6246_s11  ;;  %v5820_v44 = vunpack.i.l.bf16 %v6539_v47 }
 0x1e8   : > { %5368 = vmatpush3.bf16.xpose.msra.mxu1 %v1207_v49  ;;  %5369 = vmatprep.mubr.msk.bf16.mxu1 %vm6245_vm1, %v8085_v17 }
 0x1e9   : > { %5379 = vmatprep.subr.bf16.mxu1 %v8085_v17 }
 0x1ea   : > { %v5824_v50 = vpop.permute.xlu1 %5823  ;;  %v1252_v51 = vpop.permute.xlu0 %1251 }
 0x1eb   : > { %v5826_v53 = vunpack.i.h.bf16 %v5824_v50  ;;  %v5825_v54 = vunpack.i.l.bf16 %v5824_v50  ;;  %v1257_v55 = vsel %vm652_vm2, %v1252_v51, 0  ;;  %5364 = vmatmul.mubr.msk.bf16.vlgmr.msra.gmra.mrb[20].mxu0 %vm652_vm2, %v6408_v9 }
 0x1ec   : > { %5374 = vmatpush3.bf16.xpose.msra.mxu0 %v1257_v55  ;;  %5375 = vmatprep.mubr.msk.bf16.mxu0 %vm6245_vm1, %v8085_v17 }
 0x1ed   : > { %v6554_v60 = vpack.c.bf16 %v5826_v53, %v5825_v54  ;;  %5385 = vmatprep.subr.bf16.mxu0 %v8085_v17 }
 0x1ee   : > { %v5829_v58 = vpop.permute.xlu0 %5828  ;;  %v1302_v61 = vpop.permute.xlu1 %1301 }
 0x1ef   : > { %8126 = vst [vmem:[#allocation5_spill] sm:$0xff] %v6554_v60  ;;  %v5831_v0 = vunpack.i.h.bf16 %v5829_v58  ;;  %v5830_v1 = vunpack.i.l.bf16 %v5829_v58  ;;  %v1307_v2 = vsel %vm652_vm2, %v1302_v61, 0  ;;  %5370 = vmatmul.mubr.msk.bf16.vlgmr.msra.gmra.mrb[36].mxu1 %vm652_vm2, %v6415_v14  ;;  %2001 = vrot.lane.b32.xlu1 %v6554_v60, %s6246_s11  ;;  %v6718_v58 = vld [vmem:[%s8083_s5 + $0x8] sm:$0xff] }
 0x1f0   : > { %5380 = vmatpush3.bf16.xpose.msra.mxu1 %v1307_v2  ;;  %5381 = vmatprep.mubr.msk.bf16.mxu1 %vm6245_vm1, %v8085_v17 }
 0x1f1   : > { %v6564_v4 = vpack.c.bf16 %v5831_v0, %v5830_v1  ;;  %5391 = vmatprep.subr.bf16.mxu1 %v8085_v17 }
 0x1f2   : > { %v1352_v6 = vpop.permute.xlu0 %1351 }
 0x1f3   : > { %8127 = vst [vmem:[#allocation6_spill] sm:$0xff] %v6564_v4  ;;  %v1357_v7 = vsel %vm652_vm2, %v1352_v6, 0  ;;  %v5834_v10 = vpop.permute.xlu1 %5833  ;;  %5376 = vmatmul.mubr.msk.bf16.vlgmr.msra.gmra.mrb[24].mxu0 %vm652_vm2, %v6423_v22  ;;  %2051 = vrot.lane.b32.xlu0 %v6564_v4, %s6246_s11 }
 0x1f4   : > { %v5836_v11 = vunpack.i.h.bf16 %v5834_v10  ;;  %v5835_v12 = vunpack.i.l.bf16 %v5834_v10  ;;  %5386 = vmatpush3.bf16.xpose.msra.mxu0 %v1357_v7  ;;  %5387 = vmatprep.mubr.msk.bf16.mxu0 %vm6245_vm1, %v8085_v17 }
 0x1f5   : > { %5397 = vmatprep.subr.bf16.mxu0 %v8085_v17 }
 0x1f6   : > { %v6577_v18 = vpop.permute.xlu0 %5838  ;;  %v6579_v19 = vpack.c.bf16 %v5836_v11, %v5835_v12 }
 0x1f7   : > { %v1402_v20 = vpop.permute.xlu1 %1401  ;;  %3106 = vrot.lane.b32.xlu0 %v6323_v24, %s6249_s14  ;;  %5382 = vmatmul.mubr.msk.bf16.vlgmr.msra.gmra.mrb[40].mxu1 %vm652_vm2, %v6432_v30 }
 0x1f8   : > { %8128 = vst [vmem:[#allocation7_spill] sm:$0xff] %v6579_v19  ;;  %v1407_v25 = vsel %vm652_vm2, %v1402_v20, 0  ;;  %2101 = vrot.lane.b32.xlu1 %v6579_v19, %s6246_s11  ;;  %5393 = vmatprep.mubr.msk.bf16.mxu1 %vm6245_vm1, %v8085_v17 }
 0x1f9   : > { %5392 = vmatpush3.bf16.xpose.msra.mxu1 %v1407_v25 }
 0x1fa   : > { %v1452_v26 = vpop.permute.xlu0 %1451  ;;  %5403 = vmatprep.subr.bf16.mxu1 %v8085_v17 }
 0x1fb   : > { %v1457_v27 = vsel %vm652_vm2, %v1452_v26, 0  ;;  %v5844_v24 = vpop.permute.xlu1 %5843  ;;  %1751 = vrot.lane.b32.xlu0 %v6590_v23, %s6246_s11  ;;  %5388 = vmatmul.mubr.msk.bf16.vlgmr.msra.gmra.mrb[28].mxu0 %vm652_vm2, %v6439_v33 }
 0x1fc   : > { %v5846_v29 = vunpack.i.h.bf16 %v5844_v24  ;;  %v5845_v31 = vunpack.i.l.bf16 %v5844_v24  ;;  %5398 = vmatpush3.bf16.xpose.msra.mxu0 %v1457_v27  ;;  %5399 = vmatprep.mubr.msk.bf16.mxu0 %vm6245_vm1, %v8085_v17 }
 0x1fd   : > { %5409 = vmatprep.subr.bf16.mxu0 %v8085_v17 }
 0x1fe   : > { %v1652_v32 = vpop.permute.xlu0 %1651  ;;  %v6601_v36 = vpack.c.bf16 %v5846_v29, %v5845_v31 }
 0x1ff   : > { %v1502_v40 = vpop.permute.xlu1 %1501  ;;  %3200 = vrot.lane.b32.xlu0 %v6347_v48, %s6249_s14  ;;  %v5821_v48 = vunpack.i.h.bf16 %v6539_v47  ;;  %v1657_v47 = vsel %vm652_vm2, %v1652_v32, 0 }
 0x200   : > { %8130 = vst [vmem:[#allocation9_spill] sm:$0xff] %v6601_v36  ;;  %v1507_v41 = vsel %vm652_vm2, %v1502_v40, 0  ;;  %5394 = vmatmul.mubr.msk.bf16.vlgmr.msra.gmra.mrb[44].mxu1 %vm652_vm2, %v6448_v37  ;;  %2201 = vrot.lane.b32.xlu1 %v6601_v36, %s6246_s11 }
 0x201   : > { %5404 = vmatpush3.bf16.xpose.msra.mxu1 %v1507_v41  ;;  %5405 = vmatprep.mubr.msk.bf16.mxu1 %vm6245_vm1, %v8085_v17 }
 0x202   : > { %v1552_v42 = vpop.permute.xlu0 %1551  ;;  %5415 = vmatprep.subr.bf16.mxu1 %v8085_v17 }
 0x203   : > { %v1557_v43 = vsel %vm652_vm2, %v1552_v42, 0  ;;  %3294 = vrot.lane.b32.xlu0 %v6335_v35, %s6249_s14  ;;  %5400 = vmatmul.mubr.msk.bf16.vlgmr.msra.gmra.mrb[32].mxu0 %vm652_vm2, %v6458_v34  ;;  %v1602_v46 = vpop.permute.xlu1 %1601 }
 0x204   : > { %3059 = vrot.lane.b32.xlu1 %v6327_v28, %s6249_s14  ;;  %5410 = vmatpush3.bf16.xpose.msra.mxu0 %v1557_v43  ;;  %v1607_v35 = vsel %vm652_vm2, %v1602_v46, 0  ;;  %v6632_v28 = vpack.c.bf16 %v5821_v48, %v5820_v44 }
 0x205   : > { %5411 = vmatprep.mubr.msk.bf16.mxu0 %vm6245_vm1, %v8085_v17  ;;  %5421 = vmatprep.subr.bf16.mxu0 %v8085_v17 }
 0x206   : > { %8131 = vst [vmem:[#allocation10_spill] sm:$0xff] %v6632_v28 }
 0x207   : > { %3388 = vrot.lane.b32.xlu0 %v6359_v57, %s6249_s14 }
 0x208   : > { %5406 = vmatmul.mubr.msk.bf16.vlgmr.msra.gmra.mrb[48].mxu1 %vm652_vm2, %v6473_v5  ;;  %3153 = vrot.lane.b32.xlu1 %v6351_v52, %s6249_s14  ;;  %v1702_v52 = vpop.permute.xlu1 %1701 }
 0x209   : > { %5416 = vmatpush3.bf16.xpose.msra.mxu1 %v1607_v35  ;;  %5417 = vmatprep.mubr.msk.bf16.mxu1 %vm6245_vm1, %v8085_v17  ;;  %v1707_v57 = vsel %vm652_vm2, %v1702_v52, 0 }
 0x20a   : > { %5427 = vmatprep.subr.bf16.mxu1 %v8085_v17 }
 0x20b   : > { %1951 = vrot.lane.b32.xlu0 %v6632_v28, %s6246_s11  ;;  %5412 = vmatmul.mubr.msk.bf16.vlgmr.msra.gmra.mrb[36].mxu0 %vm652_vm2, %v6482_v56 }
 0x20c   : > { %3247 = vrot.lane.b32.xlu1 %v6341_v38, %s6249_s14  ;;  %5422 = vmatpush3.bf16.xpose.msra.mxu0 %v1657_v47 }
 0x20d   : > { %5423 = vmatprep.mubr.msk.bf16.mxu0 %vm6245_vm1, %v8085_v17  ;;  %5433 = vmatprep.subr.bf16.mxu0 %v8085_v17 }
 0x20e   : > { %v1802_v38 = vpop.permute.xlu1 %1801 }
 0x20f   : > { %3482 = vrot.lane.b32.xlu0 %v6401_v3, %s6249_s14  ;;  %v5840_v3 = vunpack.i.l.bf16 %v6577_v18  ;;  %v1807_v49 = vsel %vm652_vm2, %v1802_v38, 0 }
 0x210   : > { %5418 = vmatmul.mubr.msk.bf16.vlgmr.msra.gmra.mrb[52].mxu1 %vm652_vm2, %v6487_v8  ;;  %3341 = vrot.lane.b32.xlu1 %v6363_v59, %s6249_s14  ;;  %v5841_v59 = vunpack.i.h.bf16 %v6577_v18 }
 0x211   : > { %5428 = vmatpush3.bf16.xpose.msra.mxu1 %v1707_v57  ;;  %5429 = vmatprep.mubr.msk.bf16.mxu1 %vm6245_vm1, %v8085_v17 }
 0x212   : > { %5439 = vmatprep.subr.bf16.mxu1 %v8085_v17 }
 0x213   : > { %3576 = vrot.lane.b32.xlu0 %v6415_v14, %s6249_s14  ;;  %5424 = vmatmul.mubr.msk.bf16.vlgmr.msra.gmra.mrb[40].mxu0 %vm652_vm2, %v6468_v62  ;;  %v6706_v14 = vld [vmem:[%s8083_s5] sm:$0xff] }
 0x214   : > { %3435 = vrot.lane.b32.xlu1 %v6397_v63, %s6249_s14  ;;  %5435 = vmatprep.mubr.msk.bf16.mxu0 %vm6245_vm1, %v8085_v17  ;;  %v6674_v63 = vpack.c.bf16 %v5841_v59, %v5840_v3 }
 0x216   : > { %8132 = vst [vmem:[#allocation11_spill] sm:$0xff] %v6674_v63 }
 0x217   : > { %3670 = vrot.lane.b32.xlu0 %v6432_v30, %s6249_s14 }
 0x218   : > { %5430 = vmatmul.mubr.msk.bf16.vlgmr.msra.gmra.mrb[56].mxu1 %vm652_vm2, %v6496_v13  ;;  %3623 = vrot.lane.b32.xlu1 %v6423_v22, %s6249_s14 }
 0x219   : > { %5440 = vmatpush3.bf16.xpose.msra.mxu1 %v1807_v49  ;;  %5441 = vmatprep.mubr.msk.bf16.mxu1 %vm6245_vm1, %v8085_v17 }
 0x21a   : > { %5451 = vmatprep.subr.bf16.mxu1 %v8085_v17 }
 0x21b   : > { %2151 = vrot.lane.b32.xlu0 %v6674_v63, %s6246_s11 }
 0x21c   : > { %3811 = vrot.lane.b32.xlu1 %v6458_v34, %s6249_s14 }
 0x21f   : > { %3764 = vrot.lane.b32.xlu0 %v6448_v37, %s6249_s14 }
 0x220   : > { %5442 = vmatmul.mubr.msk.bf16.vlgmr.msra.gmra.mrb[60].mxu1 %vm652_vm2, %v6512_v21  ;;  %3999 = vrot.lane.b32.xlu1 %v6468_v62, %s6249_s14 }
 0x221   : > { %5453 = vmatprep.mubr.msk.bf16.mxu1 %vm6245_vm1, %v8085_v17 }
 0x223   : > { %3858 = vrot.lane.b32.xlu0 %v6473_v5, %s6249_s14 }
 0x224   : > { %3529 = vrot.lane.b32.xlu1 %v6408_v9, %s6249_s14 }
 0x227   : > { %3952 = vrot.lane.b32.xlu0 %v6487_v8, %s6249_s14 }
 0x228   : > { %3717 = vrot.lane.b32.xlu1 %v6439_v33, %s6249_s14 }
 0x22b   : > { %4046 = vrot.lane.b32.xlu0 %v6496_v13, %s6249_s14 }
 0x22c   : > { %3905 = vrot.lane.b32.xlu1 %v6482_v56, %s6249_s14 }
 0x248   : > { %v693_v22 = vpop.f32.mrb[8].mxu1 }
 0x249   : > { %v6709_v9 = vadd.f32 %v6706_v14, %v693_v22  ;;  %v5305_v30 = vpop.f32.mrb[9].mxu1 }
 0x24a   : > { %v696_v37 = vpop.f32.mrb[10].mxu1 }
 0x24b   : > { %v5306_v34 = vpop.f32.mrb[11].mxu1  ;;  %v2323_v33 = vsel %vm2322_vm3, %v6709_v9, -inf  ;;  %v6726_v10 = vadd.f32 %v6718_v58, %v696_v37 }
 0x24c   : > { %2324 = vmax.xlane.f32.xlu0 %v2323_v33 }
 0x24d   : > { %v2326_v31 = vsel %vm2322_vm3, %v6726_v10, -inf }
 0x253   : > { %v743_v62 = vpop.f32.mrb[12].mxu1 }
 0x254   : > { %v5311_v5 = vpop.f32.mrb[13].mxu1  ;;  %v6737_v20 = vadd.f32 %v6706_v14, %v743_v62 }
 0x255   : > { %v746_v56 = vpop.f32.mrb[14].mxu1  ;;  %v6720_v0 = vpop.permute.xlu0 %1851 }
 0x256   : > { %v5312_v8 = vpop.f32.mrb[15].mxu1  ;;  %v6749_v40 = vadd.f32 %v6718_v58, %v746_v56  ;;  %v2329_v43 = vsel %vm2322_vm3, %v6737_v20, -inf }
 0x258   : > { %v2332_v49 = vsel %vm2322_vm3, %v6749_v40, -inf }
 0x259   : > { %v1902_v13 = vpop.permute.xlu1 %1901 }
 0x25a   : > { %v1907_v50 = vsel %vm652_vm2, %v1902_v13, 0 }
 0x25b   : > { %v793_v51 = vpop.f32.mrb[16].mxu1  ;;  %5452 = vmatpush3.bf16.xpose.msra.mxu1 %v1907_v50 }
 0x25c   : > { %v5317_v53 = vpop.f32.mrb[17].mxu1  ;;  %5463 = vmatprep.subr.bf16.mxu1 %v8085_v17  ;;  %v6759_v46 = vadd.f32 %v6706_v14, %v793_v51 }
 0x25d   : > { %v796_v54 = vpop.f32.mrb[18].mxu1 }
 0x25e   : > { %v5318_v55 = vpop.f32.mrb[19].mxu1  ;;  %v2335_v62 = vsel %vm2322_vm3, %v6759_v46, -inf  ;;  %v6781_v5 = vadd.f32 %v6718_v58, %v796_v54 }
 0x25f   : > { %v893_v61 = vpop.f32.mrb[8].mxu0 }
 0x260   : > { %v6723_v1 = vadd.f32 %v6706_v14, %v893_v61  ;;  %v5329_v2 = vpop.f32.mrb[9].mxu0 }
 0x261   : > { %v896_v6 = vpop.f32.mrb[10].mxu0  ;;  %v2002_v7 = vpop.permute.xlu1 %2001  ;;  %v2338_v2 = vsel %vm2322_vm3, %v6781_v5, -inf }
 0x262   : > { %v6729_v11 = vadd.f32 %v6718_v58, %v896_v6  ;;  %v2007_v12 = vsel %vm652_vm2, %v2002_v7, 0  ;;  %v5330_v15 = vpop.f32.mrb[11].mxu0  ;;  %5454 = vmatmul.mubr.msk.bf16.vlgmr.msra.gmra.mrb[64].mxu1 %vm652_vm2, %v6536_v45  ;;  %v2347_v16 = vsel %vm2322_vm3, %v6723_v1, -inf }
 0x263   : > { %v843_v18 = vpop.f32.mrb[20].mxu1  ;;  %5464 = vmatpush3.bf16.xpose.msra.mxu1 %v2007_v12  ;;  %2348 = vmax.xlane.f32.xlu1 %v2347_v16  ;;  %v1857_v12 = vsel %vm652_vm2, %v6720_v0, 0 }
 0x264   : > { %v5323_v25 = vpop.f32.mrb[21].mxu1  ;;  %v2350_v26 = vsel %vm2322_vm3, %v6729_v11, -inf  ;;  %5465 = vmatprep.mubr.msk.bf16.mxu1 %vm6245_vm1, %v8085_v17  ;;  %5475 = vmatprep.subr.bf16.mxu1 %v8085_v17  ;;  %v6775_v37 = vadd.f32 %v6706_v14, %v843_v18 }
 0x265   : > { %v846_v27 = vpop.f32.mrb[22].mxu1  ;;  %v6744_v24 = vpop.permute.xlu0 %2051  ;;  %2351 = vmax.xlane.f32.xlu0 %v2350_v26 }
 0x266   : > { %v5324_v29 = vpop.f32.mrb[23].mxu1  ;;  %v2341_v51 = vsel %vm2322_vm3, %v6775_v37, -inf  ;;  %v6797_v55 = vadd.f32 %v6718_v58, %v846_v27 }
 0x267   : > { %v993_v32 = vpop.f32.mrb[12].mxu0  ;;  %2327 = vmax.xlane.f32.xlu1 %v2326_v31 }
 0x268   : > { %v6752_v41 = vadd.f32 %v6706_v14, %v993_v32  ;;  %v5341_v42 = vpop.f32.mrb[13].mxu0  ;;  %v2344_v26 = vsel %vm2322_vm3, %v6797_v55, -inf }
 0x269   : > { %v996_v48 = vpop.f32.mrb[14].mxu0  ;;  %v6756_v44 = vpop.permute.xlu0 %3106  ;;  %2330 = vmax.xlane.f32.xlu0 %v2329_v43 }
 0x26a   : > { %v2102_v35 = vpop.permute.xlu1 %2101  ;;  %v5342_v47 = vpop.f32.mrb[15].mxu0  ;;  %5466 = vmatmul.mubr.msk.bf16.vlgmr.msra.gmra.mrb[68].mxu1 %vm652_vm2, %v6554_v60  ;;  %v2359_v52 = vsel %vm2322_vm3, %v6752_v41, -inf  ;;  %v6769_v59 = vadd.f32 %v6718_v58, %v996_v48  ;;  %v2057_v48 = vsel %vm652_vm2, %v6744_v24, 0 }
 0x26b   : > { %v2107_v57 = vsel %vm652_vm2, %v2102_v35, 0  ;;  %v943_v38 = vpop.f32.mrb[24].mxu1  ;;  %2360 = vmax.xlane.f32.xlu1 %v2359_v52  ;;  %5477 = vmatprep.mubr.msk.bf16.mxu1 %vm6245_vm1, %v8085_v17 }
 0x26c   : > { %5476 = vmatpush3.bf16.xpose.msra.mxu1 %v2107_v57  ;;  %v5335_v3 = vpop.f32.mrb[25].mxu1  ;;  %v2362_v56 = vsel %vm2322_vm3, %v6769_v59, -inf  ;;  %v6789_v13 = vadd.f32 %v6706_v14, %v943_v38 }
 0x26d   : > { %v946_v22 = vpop.f32.mrb[26].mxu1  ;;  %v1752_v30 = vpop.permute.xlu0 %1751  ;;  %2333 = vmax.xlane.f32.xlu0 %v2332_v49  ;;  %5487 = vmatprep.subr.bf16.mxu1 %v8085_v17 }
 0x26e   : > { %v1757_v34 = vsel %vm652_vm2, %v1752_v30, 0  ;;  %v5336_v33 = vpop.f32.mrb[27].mxu1  ;;  %v2353_v18 = vsel %vm2322_vm3, %v6789_v13, -inf  ;;  %v6816_v25 = vadd.f32 %v6718_v58, %v946_v22  ;;  %v6877_v30 = vld [vmem:[%s8083_s5 + $0x10] sm:$0xff] }
 0x26f   : > { %5434 = vmatpush3.bf16.xpose.msra.mxu0 %v1757_v34  ;;  %2336 = vmax.xlane.f32.xlu1 %v2335_v62 }
 0x270   : > { %5445 = vmatprep.subr.bf16.mxu0 %v8085_v17  ;;  %v2356_v29 = vsel %vm2322_vm3, %v6816_v25, -inf }
 0x271   : > { %v6786_v8 = vpop.permute.xlu0 %3200  ;;  %2363 = vmax.xlane.f32.xlu0 %v2362_v56  ;;  %v6885_v56 = vld [vmem:[%s8083_s5 + $0x18] sm:$0xff] }
 0x272   : > { %8133 = vst [vmem:[#allocation12_spill] sm:$0xff] %v6786_v8  ;;  %v2202_v50 = vpop.permute.xlu1 %2201 }
 0x273   : > { %v2207_v53 = vsel %vm652_vm2, %v2202_v50, 0  ;;  %5478 = vmatmul.mubr.msk.bf16.vlgmr.msra.gmra.mrb[72].mxu1 %vm652_vm2, %v6579_v19  ;;  %v1043_v54 = vpop.f32.mrb[28].mxu1  ;;  %2342 = vmax.xlane.f32.xlu1 %v2341_v51 }
 0x274   : > { %5488 = vmatpush3.bf16.xpose.msra.mxu1 %v2207_v53  ;;  %v5347_v61 = vpop.f32.mrb[29].mxu1  ;;  %5489 = vmatprep.mubr.msk.bf16.mxu1 %vm6245_vm1, %v8085_v17  ;;  %v6809_v15 = vadd.f32 %v6706_v14, %v1043_v54 }
 0x275   : > { %v1046_v6 = vpop.f32.mrb[30].mxu1  ;;  %v6803_v7 = vpop.permute.xlu0 %3294  ;;  %2339 = vmax.xlane.f32.xlu0 %v2338_v2  ;;  %5499 = vmatprep.subr.bf16.mxu1 %v8085_v17 }
 0x276   : > { %8134 = vst [vmem:[#allocation13_spill] sm:$0xff] %v6803_v7  ;;  %v5348_v16 = vpop.f32.mrb[31].mxu1  ;;  %5436 = vmatmul.mubr.msk.bf16.vlgmr.msra.gmra.mrb[44].mxu0 %vm652_vm2, %v6590_v23  ;;  %v2365_v0 = vsel %vm2322_vm3, %v6809_v15, -inf  ;;  %v6830_v27 = vadd.f32 %v6718_v58, %v1046_v6  ;;  %v3060_v24 = vpop.permute.xlu1 %3059 }
 0x277   : > { %5446 = vmatpush3.bf16.xpose.msra.mxu0 %v1857_v12  ;;  %2354 = vmax.xlane.f32.xlu1 %v2353_v18 }
 0x278   : > { %5447 = vmatprep.mubr.msk.bf16.mxu0 %vm6245_vm1, %v8085_v17  ;;  %5457 = vmatprep.subr.bf16.mxu0 %v8085_v17  ;;  %v2368_v58 = vsel %vm2322_vm3, %v6830_v27, -inf }
 0x279   : > { %v6823_v14 = vpop.permute.xlu0 %3388  ;;  %2345 = vmax.xlane.f32.xlu0 %v2344_v26 }
 0x27a   : > { %8135 = vst [vmem:[#allocation14_spill] sm:$0xff] %v6823_v14  ;;  %v6870_v52 = vpop.permute.xlu1 %3153 }
 0x27b   : > { %5490 = vmatmul.mubr.msk.bf16.vlgmr.msra.gmra.mrb[76].mxu1 %vm652_vm2, %v6601_v36  ;;  %2366 = vmax.xlane.f32.xlu1 %v2365_v0  ;;  %8139 = vst [vmem:[#allocation18_spill] sm:$0xff] %v6870_v52 }
 0x27c   : > { %5500 = vmatpush3.bf16.msra.mxu1 %v6756_v44  ;;  %5501 = vmatprep.mubr.msk.bf16.mxu1 %vm6245_vm1, %v8085_v17 }
 0x27d   : > { %v1952_v31 = vpop.permute.xlu0 %1951  ;;  %2357 = vmax.xlane.f32.xlu0 %v2356_v29  ;;  %5511 = vmatprep.subr.bf16.mxu1 %v8085_v17 }
 0x27e   : > { %v1957_v32 = vsel %vm652_vm2, %v1952_v31, 0  ;;  %5448 = vmatmul.mubr.msk.bf16.vlgmr.msra.gmra.mrb[48].mxu0 %vm652_vm2, %v6526_v39  ;;  %v6872_v22 = vpop.permute.xlu1 %3247 }
 0x27f   : > { %5458 = vmatpush3.bf16.xpose.msra.mxu0 %v1957_v32  ;;  %5459 = vmatprep.mubr.msk.bf16.mxu0 %vm6245_vm1, %v8085_v17  ;;  %8140 = vst [vmem:[#allocation19_spill] sm:$0xff] %v6872_v22 }
 0x280   : > { %5469 = vmatprep.subr.bf16.mxu0 %v8085_v17 }
 0x281   : > { %v6846_v42 = vpop.permute.xlu0 %3482  ;;  %2369 = vmax.xlane.f32.xlu0 %v2368_v58 }
 0x282   : > { %8136 = vst [vmem:[#allocation15_spill] sm:$0xff] %v6846_v42  ;;  %v6900_v18 = vpop.permute.xlu1 %3341 }
 0x283   : > { %8141 = vst [vmem:[#allocation20_spill] sm:$0xff] %v6900_v18 }
 0x285   : > { %v6848_v43 = vpop.permute.xlu0 %3576 }
 0x286   : > { %8137 = vst [vmem:[#allocation16_spill] sm:$0xff] %v6848_v43  ;;  %5460 = vmatmul.mubr.msk.bf16.vlgmr.msra.gmra.mrb[52].mxu0 %vm652_vm2, %v6632_v28 }
 0x287   : > { %5470 = vmatpush3.bf16.xpose.msra.mxu0 %v2057_v48  ;;  %5471 = vmatprep.mubr.msk.bf16.mxu0 %vm6245_vm1, %v8085_v17 }
 0x288   : > { %5481 = vmatprep.subr.bf16.mxu0 %v8085_v17 }
 0x289   : > { %v6857_v44 = vpop.permute.xlu0 %3670 }
 0x28a   : > { %8138 = vst [vmem:[#allocation17_spill] sm:$0xff] %v6857_v44 }
 0x28d   : > { %v2152_v35 = vpop.permute.xlu0 %2151 }
 0x28e   : > { %v2157_v47 = vsel %vm652_vm2, %v2152_v35, 0  ;;  %5472 = vmatmul.mubr.msk.bf16.vlgmr.msra.gmra.mrb[56].mxu0 %vm652_vm2, %v6564_v4 }
 0x28f   : > { %5482 = vmatpush3.bf16.xpose.msra.mxu0 %v2157_v47  ;;  %5483 = vmatprep.mubr.msk.bf16.mxu0 %vm6245_vm1, %v8085_v17 }
 0x290   : > { %5493 = vmatprep.subr.bf16.mxu0 %v8085_v17 }
 0x291   : > { %v6904_v32 = vpop.permute.xlu0 %3764 }
 0x292   : > { %8142 = vst [vmem:[#allocation21_spill] sm:$0xff] %v6904_v32 }
 0x296   : > { %5484 = vmatmul.mubr.msk.bf16.vlgmr.msra.gmra.mrb[60].mxu0 %vm652_vm2, %v6674_v63 }
 0x297   : > { %5494 = vmatpush3.bf16.msra.mxu0 %v3060_v24  ;;  %5495 = vmatprep.mubr.msk.bf16.mxu0 %vm6245_vm1, %v8085_v17 }
 0x298   : > { %5505 = vmatprep.subr.bf16.mxu0 %v8085_v17 }
 0x2b6   : > { %v1093_v57 = vpop.f32.mrb[16].mxu0 }
 0x2b7   : > { %v5353_v38 = vpop.f32.mrb[17].mxu0  ;;  %v6888_v51 = vadd.f32 %v6877_v30, %v1093_v57 }
 0x2b8   : > { %v1096_v3 = vpop.f32.mrb[18].mxu0 }
 0x2b9   : > { %v5354_v49 = vpop.f32.mrb[19].mxu0  ;;  %v6896_v6 = vadd.f32 %v6885_v56, %v1096_v3  ;;  %v2371_v29 = vsel %vm2322_vm3, %v6888_v51, -inf }
 0x2ba   : > { %v1143_v34 = vpop.f32.mrb[32].mxu1  ;;  %v6919_v49 = vpop.permute.xlu1 %3435 }
 0x2bb   : > { %v6880_v33 = vadd.f32 %v6877_v30, %v1143_v34  ;;  %v5359_v62 = vpop.f32.mrb[33].mxu1  ;;  %v2374_v35 = vsel %vm2322_vm3, %v6896_v6, -inf  ;;  %8143 = vst [vmem:[#allocation22_spill] sm:$0xff] %v6919_v49 }
 0x2bc   : > { %v1146_v50 = vpop.f32.mrb[34].mxu1 }
 0x2bd   : > { %v6891_v53 = vadd.f32 %v6885_v56, %v1146_v50  ;;  %v5360_v54 = vpop.f32.mrb[35].mxu1  ;;  %v2377_v61 = vsel %vm2322_vm3, %v6880_v33, -inf }
 0x2be   : > { %v1193_v2 = vpop.f32.mrb[20].mxu0  ;;  %2378 = vmax.xlane.f32.xlu1 %v2377_v61 }
 0x2bf   : > { %v5365_v12 = vpop.f32.mrb[21].mxu0  ;;  %v2380_v16 = vsel %vm2322_vm3, %v6891_v53, -inf  ;;  %v6912_v24 = vadd.f32 %v6877_v30, %v1193_v2  ;;  %v6926_v2 = vpop.permute.xlu0 %3858 }
 0x2c0   : > { %v1196_v26 = vpop.f32.mrb[22].mxu0  ;;  %2381 = vmax.xlane.f32.xlu0 %v2380_v16  ;;  %8144 = vst [vmem:[#allocation23_spill] sm:$0xff] %v6926_v2 }
 0x2c1   : > { %v5366_v0 = vpop.f32.mrb[23].mxu0  ;;  %v6922_v62 = vadd.f32 %v6885_v56, %v1196_v26  ;;  %v2383_v16 = vsel %vm2322_vm3, %v6912_v24, -inf }
 0x2c2   : > { %v1243_v31 = vpop.f32.mrb[36].mxu1  ;;  %2372 = vmax.xlane.f32.xlu1 %v2371_v29 }
 0x2c3   : > { %v6907_v58 = vadd.f32 %v6877_v30, %v1243_v31  ;;  %v5371_v48 = vpop.f32.mrb[37].mxu1  ;;  %v2386_v26 = vsel %vm2322_vm3, %v6922_v62, -inf }
 0x2c4   : > { %v1246_v47 = vpop.f32.mrb[38].mxu1  ;;  %2375 = vmax.xlane.f32.xlu0 %v2374_v35  ;;  %v6935_v48 = vpop.permute.xlu1 %3623 }
 0x2c5   : > { %v6915_v57 = vadd.f32 %v6885_v56, %v1246_v47  ;;  %v5372_v38 = vpop.f32.mrb[39].mxu1  ;;  %v2389_v3 = vsel %vm2322_vm3, %v6907_v58, -inf  ;;  %8145 = vst [vmem:[#allocation24_spill] sm:$0xff] %v6935_v48 }
 0x2c6   : > { %v1293_v34 = vpop.f32.mrb[24].mxu0  ;;  %2390 = vmax.xlane.f32.xlu1 %v2389_v3 }
 0x2c7   : > { %v5377_v50 = vpop.f32.mrb[25].mxu0  ;;  %v2392_v54 = vsel %vm2322_vm3, %v6915_v57, -inf  ;;  %v6938_v47 = vadd.f32 %v6877_v30, %v1293_v34 }
 0x2c8   : > { %v1296_v61 = vpop.f32.mrb[26].mxu0  ;;  %2393 = vmax.xlane.f32.xlu0 %v2392_v54 }
 0x2c9   : > { %v5378_v12 = vpop.f32.mrb[27].mxu0 }
 0x2ca   : > { %v1343_v0 = vpop.f32.mrb[40].mxu1  ;;  %2384 = vmax.xlane.f32.xlu1 %v2383_v16  ;;  %v6945_v12 = vpop.permute.xlu0 %3952  ;;  %v6948_v16 = vadd.f32 %v6885_v56, %v1296_v61 }
 0x2cb   : > { %v6931_v29 = vadd.f32 %v6877_v30, %v1343_v0  ;;  %v5383_v31 = vpop.f32.mrb[41].mxu1  ;;  %8146 = vst [vmem:[#allocation25_spill] sm:$0xff] %v6945_v12 }
 0x2cc   : > { %2387 = vmax.xlane.f32.xlu0 %v2386_v26  ;;  %v1346_v35 = vpop.f32.mrb[42].mxu1 }
 0x2cd   : > { %v6941_v38 = vadd.f32 %v6885_v56, %v1346_v35  ;;  %v5384_v3 = vpop.f32.mrb[43].mxu1  ;;  %v2401_v50 = vsel %vm2322_vm3, %v6931_v29, -inf  ;;  %v2395_v35 = vsel %vm2322_vm3, %v6938_v47, -inf }
 0x2ce   : > { %v1393_v54 = vpop.f32.mrb[28].mxu0  ;;  %2402 = vmax.xlane.f32.xlu1 %v2401_v50  ;;  %v6954_v3 = vpop.permute.xlu1 %3811  ;;  %v2398_v50 = vsel %vm2322_vm3, %v6948_v16, -inf }
 0x2cf   : > { %v5389_v0 = vpop.f32.mrb[29].mxu0  ;;  %v2404_v31 = vsel %vm2322_vm3, %v6941_v38, -inf  ;;  %8147 = vst [vmem:[#allocation26_spill] sm:$0xff] %v6954_v3  ;;  %v6961_v36 = vpop.permute.xlu0 %4046 }
 0x2d0   : > { %v1396_v34 = vpop.f32.mrb[30].mxu0  ;;  %2405 = vmax.xlane.f32.xlu0 %v2404_v31  ;;  %8148 = vst [vmem:[#allocation27_spill] sm:$0xff] %v6961_v36  ;;  %v6964_v31 = vadd.f32 %v6877_v30, %v1393_v54 }
 0x2d1   : > { %v5390_v26 = vpop.f32.mrb[31].mxu0 }
 0x2d2   : > { %2396 = vmax.xlane.f32.xlu1 %v2395_v35  ;;  %v2407_v45 = vsel %vm2322_vm3, %v6964_v31, -inf }
 0x2d3   : > { %v1443_v17 = vpop.f32.mrb[44].mxu1 }
 0x2d4   : > { %v6959_v61 = vadd.f32 %v6877_v30, %v1443_v17  ;;  %v5395_v0 = vpop.f32.mrb[45].mxu1  ;;  %2399 = vmax.xlane.f32.xlu0 %v2398_v50  ;;  %v6971_v17 = vpop.permute.xlu1 %3999  ;;  %v6974_v50 = vadd.f32 %v6885_v56, %v1396_v34 }
 0x2d5   : > { %v1446_v63 = vpop.f32.mrb[46].mxu1  ;;  %8149 = vst [vmem:[#allocation28_spill] sm:$0xff] %v6971_v17 }
 0x2d6   : > { %v6967_v26 = vadd.f32 %v6885_v56, %v1446_v63  ;;  %v5396_v19 = vpop.f32.mrb[47].mxu1  ;;  %v1493_v35 = vpop.f32.mrb[32].mxu0  ;;  %v2413_v4 = vsel %vm2322_vm3, %v6959_v61, -inf }
 0x2d7   : > { %2414 = vmax.xlane.f32.xlu1 %v2413_v4  ;;  %v5401_v60 = vpop.f32.mrb[33].mxu0 }
 0x2d8   : > { %v1496_v0 = vpop.f32.mrb[34].mxu0  ;;  %v2416_v30 = vsel %vm2322_vm3, %v6967_v26, -inf  ;;  %v6984_v60 = vld [vmem:[%s8083_s5 + $0x20] sm:$0xff]  ;;  %v7004_v17 = vpop.permute.xlu1 %3529 }
 0x2d9   : > { %v2325_v54 = vpop.xlane.xlu0 %2324  ;;  %2417 = vmax.xlane.f32.xlu0 %v2416_v30  ;;  %v5402_v63 = vpop.f32.mrb[35].mxu0  ;;  %v2410_v30 = vsel %vm2322_vm3, %v6974_v50, -inf  ;;  %v6997_v28 = vadd.f32 %v6984_v60, %v1493_v35  ;;  %8150 = vst [vmem:[#allocation29_spill] sm:$0xff] %v7004_v17 }
 0x2da   : > { %v2515_v19 = vsub.f32 %v6709_v9, %v2325_v54  ;;  %v6994_v9 = vld [vmem:[%s8083_s5 + $0x28] sm:$0xff] }
 0x2db   : > { %v1543_v4 = vpop.f32.mrb[48].mxu1  ;;  %2408 = vmax.xlane.f32.xlu1 %v2407_v45  ;;  %v7007_v12 = vadd.f32 %v6994_v9, %v1496_v0 }
 0x2dc   : > { %v6987_v56 = vadd.f32 %v6984_v60, %v1543_v4  ;;  %v5407_v34 = vpop.f32.mrb[49].mxu1  ;;  %v2579_v54 = vmul.f32 1.442695, %v2515_v19  ;;  %v7018_v0 = vpop.permute.xlu1 %3717 }
 0x2dd   : > { %2411 = vmax.xlane.f32.xlu0 %v2410_v30  ;;  %v1546_v63 = vpop.f32.mrb[50].mxu1  ;;  %8151 = vst [vmem:[#allocation30_spill] sm:$0xff] %v7018_v0 }
 0x2de   : > { %v7000_v45 = vadd.f32 %v6994_v9, %v1546_v63  ;;  %v5408_v4 = vpop.f32.mrb[51].mxu1  ;;  %v1593_v39 = vpop.f32.mrb[36].mxu0  ;;  %v2425_v34 = vsel %vm2322_vm3, %v6987_v56, -inf  ;;  %5979 = vpow2.f32 %v2579_v54  ;;  %v2419_v63 = vsel %vm2322_vm3, %v6997_v28, -inf }
 0x2df   : > { %2426 = vmax.xlane.f32.xlu1 %v2425_v34  ;;  %v5413_v36 = vpop.f32.mrb[37].mxu0  ;;  %v7021_v54 = vadd.f32 %v6984_v60, %v1593_v39 }
 0x2e0   : > { %v1596_v19 = vpop.f32.mrb[38].mxu0  ;;  %v2428_v35 = vsel %vm2322_vm3, %v7000_v45, -inf  ;;  %v2422_v36 = vsel %vm2322_vm3, %v7007_v12, -inf  ;;  %v7039_v21 = vpop.permute.xlu1 %3905 }
 0x2e1   : > { %2429 = vmax.xlane.f32.xlu0 %v2428_v35  ;;  %v5414_v30 = vpop.f32.mrb[39].mxu0  ;;  %8152 = vst [vmem:[#allocation31_spill] sm:$0xff] %v7039_v21 }
 0x2e3   : > { %v1643_v4 = vpop.f32.mrb[52].mxu1  ;;  %2420 = vmax.xlane.f32.xlu1 %v2419_v63 }
 0x2e4   : > { %v7014_v3 = vadd.f32 %v6984_v60, %v1643_v4  ;;  %v5419_v34 = vpop.f32.mrb[53].mxu1 }
 0x2e5   : > { %2423 = vmax.xlane.f32.xlu0 %v2422_v36  ;;  %v1646_v2 = vpop.f32.mrb[54].mxu1  ;;  %v7029_v34 = vadd.f32 %v6994_v9, %v1596_v19 }
 0x2e6   : > { %v7024_v35 = vadd.f32 %v6994_v9, %v1646_v2  ;;  %v5420_v30 = vpop.f32.mrb[55].mxu1  ;;  %v1693_v32 = vpop.f32.mrb[40].mxu0  ;;  %v2437_v63 = vsel %vm2322_vm3, %v7014_v3, -inf  ;;  %v2431_v2 = vsel %vm2322_vm3, %v7021_v54, -inf }
 0x2e7   : > { %2438 = vmax.xlane.f32.xlu1 %v2437_v63  ;;  %v5425_v4 = vpop.f32.mrb[41].mxu0  ;;  %v2434_v19 = vsel %vm2322_vm3, %v7029_v34, -inf }
 0x2e8   : > { %v7031_v48 = vpop.f32.mrb[42].mxu0  ;;  %v2440_v36 = vsel %vm2322_vm3, %v7024_v35, -inf  ;;  %v7037_v30 = vpop.eup %5979 }
 0x2e9   : > { %2441 = vmax.xlane.f32.xlu0 %v2440_v36  ;;  %v5426_v39 = vpop.f32.mrb[43].mxu0  ;;  %v2707_v36 = vsel %vm2322_vm3, %v7037_v30, 0.0 }
 0x2eb   : > { %v1743_v0 = vpop.f32.mrb[56].mxu1  ;;  %2432 = vmax.xlane.f32.xlu1 %v2431_v2 }
 0x2ec   : > { %v5431_v63 = vpop.f32.mrb[57].mxu1 }
 0x2ed   : > { %2435 = vmax.xlane.f32.xlu0 %v2434_v19  ;;  %v1746_v4 = vpop.f32.mrb[58].mxu1 }
 0x2ee   : > { %v5432_v44 = vpop.f32.mrb[59].mxu1 }
 0x2ef   : > { %2708 = vadd.xlane.f32.xlu1 %v2707_v36 }
 0x2f0   : > { %v2349_v39 = vpop.xlane.xlu1 %2348 }
 0x2f1   : > { %v2523_v17 = vsub.f32 %v6723_v1, %v2349_v39 }
 0x2f2   : > { %v2352_v23 = vpop.xlane.xlu0 %2351 }
 0x2f3   : > { %v2595_v43 = vmul.f32 1.442695, %v2523_v17  ;;  %v2524_v2 = vsub.f32 %v6729_v11, %v2352_v23  ;;  %v1843_v42 = vpop.f32.mrb[60].mxu1 }
 0x2f4   : > { %v5443_v21 = vpop.f32.mrb[61].mxu1  ;;  %v2328_v63 = vpop.xlane.xlu1 %2327 }
 0x2f5   : > { %5981 = vpow2.f32 %v2595_v43  ;;  %v1846_v14 = vpop.f32.mrb[62].mxu1  ;;  %v2516_v19 = vsub.f32 %v6726_v10, %v2328_v63  ;;  %v2597_v7 = vmul.f32 1.442695, %v2524_v2  ;;  %v7054_v10 = vadd.f32 %v6984_v60, %v1743_v0 }
 0x2f6   : > { %v5444_v49 = vpop.f32.mrb[63].mxu1  ;;  %v2331_v44 = vpop.xlane.xlu0 %2330  ;;  %v7071_v63 = vadd.f32 %v6994_v9, %v1746_v4 }
 0x2f7   : > { %v2581_v18 = vmul.f32 1.442695, %v2516_v19  ;;  %v2517_v36 = vsub.f32 %v6737_v20, %v2331_v44  ;;  %v7081_v44 = vadd.f32 %v6994_v9, %v7031_v48 }
 0x2f8   : > { %v2361_v22 = vpop.xlane.xlu1 %2360  ;;  %v2452_v4 = vsel %vm2322_vm3, %v7071_v63, -inf }
 0x2f9   : > { %5983 = vpow2.f32 %v2581_v18  ;;  %v2583_v17 = vmul.f32 1.442695, %v2517_v36  ;;  %v2527_v23 = vsub.f32 %v6752_v41, %v2361_v22  ;;  %v7062_v22 = vadd.f32 %v6984_v60, %v1693_v32 }
 0x2fa   : > { %v2334_v1 = vpop.xlane.xlu0 %2333  ;;  %5985 = vpow2.f32 %v2597_v7 }
 0x2fb   : > { %5987 = vpow2.f32 %v2583_v17  ;;  %v2603_v21 = vmul.f32 1.442695, %v2527_v23  ;;  %v2518_v43 = vsub.f32 %v6749_v40, %v2334_v1  ;;  %v2449_v40 = vsel %vm2322_vm3, %v7054_v10, -inf }
 0x2fc   : > { %v7090_v17 = vadd.f32 %v6984_v60, %v1843_v42  ;;  %v2446_v23 = vsel %vm2322_vm3, %v7081_v44, -inf  ;;  %v7105_v42 = vadd.f32 %v6994_v9, %v1846_v14 }
 0x2fd   : > { %5989 = vpow2.f32 %v2603_v21  ;;  %v2585_v7 = vmul.f32 1.442695, %v2518_v43 }
 0x2fe   : > { %v2364_v49 = vpop.xlane.xlu0 %2363  ;;  %8157 = vst [vmem:[#allocation36_spill] sm:$0xff] %v7090_v17  ;;  %8160 = vst [vmem:[#allocation39_spill] sm:$0xff] %v7105_v42 }
 0x2ff   : > { %v7050_v11 = vpop.eup %5981  ;;  %v2528_v41 = vsub.f32 %v6769_v59, %v2364_v49  ;;  %5991 = vpow2.f32 %v2585_v7  ;;  %v2443_v59 = vsel %vm2322_vm3, %v7062_v22, -inf  ;;  %v2461_v49 = vsel %vm2322_vm3, %v7090_v17, -inf }
 0x300   : > { %8153 = vst [vmem:[#allocation32_spill] sm:$0xff] %v7050_v11  ;;  %v2731_v20 = vsel %vm2322_vm3, %v7050_v11, 0.0 }
 0x301   : > { %2732 = vadd.xlane.f32.xlu1 %v2731_v20  ;;  %v2605_v2 = vmul.f32 1.442695, %v2528_v41  ;;  %v2464_v41 = vsel %vm2322_vm3, %v7105_v42, -inf }
 0x303   : > { %v7058_v18 = vpop.eup %5983  ;;  %5993 = vpow2.f32 %v2605_v2  ;;  %v2340_v2 = vpop.xlane.xlu0 %2339 }
 0x304   : > { %v2710_v0 = vsel %vm2322_vm3, %v7058_v18, 0.0  ;;  %v7068_v39 = vpop.eup %5985  ;;  %v2520_v14 = vsub.f32 %v6781_v5, %v2340_v2 }
 0x305   : > { %8154 = vst [vmem:[#allocation33_spill] sm:$0xff] %v7068_v39  ;;  %2450 = vmax.xlane.f32.xlu1 %v2449_v40  ;;  %2711 = vadd.xlane.f32.xlu0 %v2710_v0  ;;  %v2734_v32 = vsel %vm2322_vm3, %v7068_v39, 0.0  ;;  %v7077_v19 = vpop.eup %5987  ;;  %v2337_v40 = vpop.xlane.xlu1 %2336 }
 0x306   : > { %8155 = vst [vmem:[#allocation34_spill] sm:$0xff] %v7077_v19  ;;  %v2713_v36 = vsel %vm2322_vm3, %v7077_v19, 0.0 }
 0x307   : > { %v7087_v1 = vpop.eup %5989 }
 0x308   : > { %8156 = vst [vmem:[#allocation35_spill] sm:$0xff] %v7087_v1  ;;  %v2743_v48 = vsel %vm2322_vm3, %v7087_v1, 0.0 }
 0x309   : > { %2444 = vmax.xlane.f32.xlu1 %v2443_v59  ;;  %2735 = vadd.xlane.f32.xlu0 %v2734_v32  ;;  %v7096_v21 = vpop.eup %5991 }
 0x30a   : > { %8158 = vst [vmem:[#allocation37_spill] sm:$0xff] %v7096_v21  ;;  %v2716_v43 = vsel %vm2322_vm3, %v7096_v21, 0.0 }
 0x30d   : > { %2714 = vadd.xlane.f32.xlu1 %v2713_v36  ;;  %2453 = vmax.xlane.f32.xlu0 %v2452_v4  ;;  %v7102_v20 = vpop.eup %5993  ;;  %v2519_v4 = vsub.f32 %v6759_v46, %v2337_v40 }
 0x30e   : > { %8159 = vst [vmem:[#allocation38_spill] sm:$0xff] %v7102_v20  ;;  %v2746_v7 = vsel %vm2322_vm3, %v7102_v20, 0.0 }
 0x311   : > { %2447 = vmax.xlane.f32.xlu0 %v2446_v23  ;;  %2744 = vadd.xlane.f32.xlu1 %v2743_v48  ;;  %v2343_v23 = vpop.xlane.xlu1 %2342  ;;  %v2346_v48 = vpop.xlane.xlu0 %2345 }
 0x312   : > { %v2521_v46 = vsub.f32 %v6775_v37, %v2343_v23 }
 0x315   : > { %2717 = vadd.xlane.f32.xlu0 %v2716_v43  ;;  %2462 = vmax.xlane.f32.xlu1 %v2461_v49  ;;  %v2355_v11 = vpop.xlane.xlu1 %2354  ;;  %v2358_v39 = vpop.xlane.xlu0 %2357 }
 0x319   : > { %2747 = vadd.xlane.f32.xlu0 %v2746_v7  ;;  %v2587_v7 = vmul.f32 1.442695, %v2519_v4  ;;  %v7120_v40 = vpop.xlane.xlu1 %2366  ;;  %v7122_v5 = vpop.xlane.xlu0 %2369  ;;  %v2522_v4 = vsub.f32 %v6797_v55, %v2346_v48 }
 0x31b   : > { %5995 = vpow2.f32 %v2587_v7  ;;  %v2593_v55 = vmul.f32 1.442695, %v2522_v4  ;;  %v7155_v4 = vld [vmem:[%s8083_s5 + $0x38] sm:$0xff] }
 0x31d   : > { %2465 = vmax.xlane.f32.xlu0 %v2464_v41  ;;  %v2589_v41 = vmul.f32 1.442695, %v2520_v14 }
 0x31f   : > { %5997 = vpow2.f32 %v2589_v41  ;;  %v2591_v41 = vmul.f32 1.442695, %v2521_v46 }
 0x321   : > { %5999 = vpow2.f32 %v2591_v41 }
 0x322   : > { %6001 = vpow2.f32 %v2593_v55 }
 0x325   : > { %v7137_v19 = vpop.eup %5995 }
 0x326   : > { %8163 = vst [vmem:[#allocation42_spill] sm:$0xff] %v7137_v19 }
 0x335   : > { %v1943_v0 = vpop.f32.mrb[64].mxu1 }
 0x336   : > { %v5455_v59 = vpop.f32.mrb[65].mxu1 }
 0x337   : > { %v1946_v32 = vpop.f32.mrb[66].mxu1 }
 0x338   : > { %v5456_v36 = vpop.f32.mrb[67].mxu1 }
 0x33d   : > { %v7113_v43 = vpop.f32.mrb[68].mxu1 }
 0x33e   : > { %v5467_v49 = vpop.f32.mrb[69].mxu1 }
 0x33f   : > { %v7115_v1 = vpop.f32.mrb[70].mxu1 }
 0x340   : > { %v5468_v20 = vpop.f32.mrb[71].mxu1 }
 0x346   : > { %v7117_v59 = vpop.f32.mrb[72].mxu1 }
 0x347   : > { %v5479_v36 = vpop.f32.mrb[73].mxu1 }
 0x348   : > { %v7124_v2 = vpop.f32.mrb[74].mxu1 }
 0x349   : > { %v5480_v49 = vpop.f32.mrb[75].mxu1  ;;  %v1793_v20 = vpop.f32.mrb[44].mxu0 }
 0x34a   : > { %v7128_v14 = vadd.f32 %v6984_v60, %v1793_v20  ;;  %v5437_v7 = vpop.f32.mrb[45].mxu0  ;;  %v7142_v60 = vld [vmem:[%s8083_s5 + $0x30] sm:$0xff] }
 0x34b   : > { %v1796_v8 = vpop.f32.mrb[46].mxu0  ;;  %v7130_v21 = vpop.xlane.xlu1 %2378  ;;  %v7160_v7 = vadd.f32 %v7142_v60, %v1943_v0  ;;  %v2525_v0 = vsub.f32 %v6789_v13, %v2355_v11 }
 0x34c   : > { %8161 = vst [vmem:[#allocation40_spill] sm:$0xff] %v7128_v14  ;;  %v7133_v37 = vadd.f32 %v6994_v9, %v1796_v8  ;;  %v5438_v23 = vpop.f32.mrb[47].mxu0  ;;  %v2455_v36 = vsel %vm2322_vm3, %v7128_v14, -inf  ;;  %v7150_v9 = vpop.eup %5997  ;;  %v7167_v14 = vadd.f32 %v7155_v4, %v1946_v32 }
 0x34d   : > { %v7144_v48 = vpop.xlane.xlu0 %2381  ;;  %2456 = vmax.xlane.f32.xlu1 %v2455_v36  ;;  %8164 = vst [vmem:[#allocation43_spill] sm:$0xff] %v7150_v9  ;;  %8165 = vst [vmem:[#allocation44_spill] sm:$0xff] %v7160_v7  ;;  %v2719_v36 = vsel %vm2322_vm3, %v7137_v19, 0.0  ;;  %v2473_v32 = vsel %vm2322_vm3, %v7160_v7, -inf  ;;  %v2599_v11 = vmul.f32 1.442695, %v2525_v0 }
 0x34e   : > { %8162 = vst [vmem:[#allocation41_spill] sm:$0xff] %v7133_v37  ;;  %v7146_v46 = vpop.f32.mrb[76].mxu1  ;;  %v2458_v8 = vsel %vm2322_vm3, %v7133_v37, -inf  ;;  %8166 = vst [vmem:[#allocation45_spill] sm:$0xff] %v7167_v14  ;;  %v2476_v13 = vsel %vm2322_vm3, %v7167_v14, -inf  ;;  %v7203_v14 = vadd.f32 %v7142_v60, %v7113_v43 }
 0x34f   : > { %v5491_v49 = vpop.f32.mrb[77].mxu1  ;;  %2459 = vmax.xlane.f32.xlu0 %v2458_v8  ;;  %v7157_v20 = vpop.xlane.xlu1 %2372  ;;  %6003 = vpow2.f32 %v2599_v11 }
 0x350   : > { %v7162_v23 = vpop.f32.mrb[78].mxu1  ;;  %v2722_v49 = vsel %vm2322_vm3, %v7150_v9, 0.0  ;;  %8171 = vst [vmem:[#allocation50_spill] sm:$0xff] %v7203_v14 }
 0x351   : > { %v5492_v37 = vpop.f32.mrb[79].mxu1  ;;  %v1893_v41 = vpop.f32.mrb[48].mxu0  ;;  %2720 = vadd.xlane.f32.xlu1 %v2719_v36  ;;  %v2526_v36 = vsub.f32 %v6816_v25, %v2358_v39 }
 0x352   : > { %v7169_v42 = vpop.xlane.xlu0 %2375  ;;  %v5449_v8 = vpop.f32.mrb[49].mxu0  ;;  %v7177_v55 = vadd.f32 %v7142_v60, %v1893_v41 }
 0x353   : > { %v1896_v17 = vpop.f32.mrb[50].mxu0  ;;  %2723 = vadd.xlane.f32.xlu0 %v2722_v49  ;;  %v7174_v52 = vpop.xlane.xlu1 %2390  ;;  %v2601_v19 = vmul.f32 1.442695, %v2526_v36 }
 0x354   : > { %8167 = vst [vmem:[#allocation46_spill] sm:$0xff] %v7177_v55  ;;  %v5450_v37 = vpop.f32.mrb[51].mxu0  ;;  %v7183_v8 = vadd.f32 %v7155_v4, %v1896_v17  ;;  %v2467_v41 = vsel %vm2322_vm3, %v7177_v55, -inf }
 0x355   : > { %2474 = vmax.xlane.f32.xlu1 %v2473_v32  ;;  %v7193_v37 = vpop.eup %5999  ;;  %6005 = vpow2.f32 %v2601_v19  ;;  %v2485_v19 = vsel %vm2322_vm3, %v7203_v14, -inf }
 0x356   : > { %8168 = vst [vmem:[#allocation47_spill] sm:$0xff] %v7183_v8  ;;  %v7189_v9 = vpop.xlane.xlu0 %2393  ;;  %8169 = vst [vmem:[#allocation48_spill] sm:$0xff] %v7193_v37  ;;  %v2470_v17 = vsel %vm2322_vm3, %v7183_v8, -inf  ;;  %v7197_v32 = vpop.eup %6001  ;;  %v2725_v36 = vsel %vm2322_vm3, %v7193_v37, 0.0 }
 0x357   : > { %2477 = vmax.xlane.f32.xlu0 %v2476_v13  ;;  %v7187_v49 = vpop.xlane.xlu1 %2384  ;;  %8170 = vst [vmem:[#allocation49_spill] sm:$0xff] %v7197_v32  ;;  %v2728_v11 = vsel %vm2322_vm3, %v7197_v32, 0.0 }
 0x359   : > { %v1993_v25 = vpop.f32.mrb[52].mxu0  ;;  %2468 = vmax.xlane.f32.xlu1 %v2467_v41  ;;  %v7209_v41 = vadd.f32 %v7155_v4, %v7115_v1  ;;  %v2530_v1 = vsub.f32 %v6830_v27, %v7122_v5  ;;  %v7235_v7 = vpop.eup %6003 }
 0x35a   : > { %v5461_v39 = vpop.f32.mrb[53].mxu0  ;;  %v7218_v43 = vadd.f32 %v7142_v60, %v1993_v25  ;;  %8172 = vst [vmem:[#allocation51_spill] sm:$0xff] %v7235_v7 }
 0x35b   : > { %v1996_v0 = vpop.f32.mrb[54].mxu0  ;;  %2471 = vmax.xlane.f32.xlu0 %v2470_v17  ;;  %v7199_v13 = vpop.xlane.xlu1 %2402  ;;  %v2529_v17 = vsub.f32 %v6809_v15, %v7120_v40  ;;  %v2488_v15 = vsel %vm2322_vm3, %v7209_v41, -inf  ;;  %v2609_v27 = vmul.f32 1.442695, %v2530_v1 }
 0x35c   : > { %v5462_v55 = vpop.f32.mrb[55].mxu0  ;;  %v7211_v39 = vpop.xlane.xlu0 %2387  ;;  %v7227_v37 = vadd.f32 %v7155_v4, %v1996_v0  ;;  %v2479_v14 = vsel %vm2322_vm3, %v7218_v43, -inf }
 0x35d   : > { %2726 = vadd.xlane.f32.xlu1 %v2725_v36  ;;  %v2607_v40 = vmul.f32 1.442695, %v2529_v17  ;;  %v7245_v17 = vadd.f32 %v7142_v60, %v7117_v59  ;;  %v2533_v59 = vsub.f32 %v6880_v33, %v7130_v21 }
 0x35f   : > { %2729 = vadd.xlane.f32.xlu0 %v2728_v11  ;;  %v7220_v55 = vpop.xlane.xlu1 %2396  ;;  %v7241_v0 = vpop.eup %6005  ;;  %6007 = vpow2.f32 %v2607_v40  ;;  %8174 = vst [vmem:[#allocation53_spill] sm:$0xff] %v7245_v17  ;;  %v2615_v21 = vmul.f32 1.442695, %v2533_v59 }
 0x360   : > { %v7231_v11 = vpop.xlane.xlu0 %2405  ;;  %8173 = vst [vmem:[#allocation52_spill] sm:$0xff] %v7241_v0  ;;  %6009 = vpow2.f32 %v2609_v27  ;;  %v2740_v40 = vsel %vm2322_vm3, %v7241_v0, 0.0 }
 0x361   : > { %v2093_v36 = vpop.f32.mrb[56].mxu0  ;;  %2486 = vmax.xlane.f32.xlu1 %v2485_v19  ;;  %6011 = vpow2.f32 %v2615_v21  ;;  %v7301_v21 = vadd.f32 %v7155_v4, %v7162_v23 }
 0x362   : > { %v5473_v32 = vpop.f32.mrb[57].mxu0 }
 0x363   : > { %v2096_v25 = vpop.f32.mrb[58].mxu0  ;;  %2489 = vmax.xlane.f32.xlu0 %v2488_v15  ;;  %v2482_v32 = vsel %vm2322_vm3, %v7227_v37, -inf }
 0x364   : > { %v5474_v8 = vpop.f32.mrb[59].mxu0  ;;  %v7237_v5 = vpop.xlane.xlu1 %2414  ;;  %v7269_v0 = vadd.f32 %v7155_v4, %v2096_v25 }
 0x365   : > { %2480 = vmax.xlane.f32.xlu1 %v2479_v14  ;;  %v2737_v8 = vsel %vm2322_vm3, %v7235_v7, 0.0  ;;  %v7251_v14 = vadd.f32 %v7155_v4, %v7124_v2  ;;  %v7253_v1 = vpop.xlane.xlu0 %2399  ;;  %v7260_v7 = vadd.f32 %v7142_v60, %v2093_v36  ;;  %v2497_v2 = vsel %vm2322_vm3, %v7245_v17, -inf }
 0x366   : > { %v2531_v36 = vsub.f32 %v6888_v51, %v7157_v20  ;;  %v2494_v59 = vsel %vm2322_vm3, %v7269_v0, -inf  ;;  %v2537_v20 = vsub.f32 %v6907_v58, %v7174_v52 }
 0x367   : > { %2483 = vmax.xlane.f32.xlu0 %v2482_v32  ;;  %v2500_v33 = vsel %vm2322_vm3, %v7251_v14, -inf }
 0x368   : > { %v7262_v27 = vpop.xlane.xlu1 %2408  ;;  %v2611_v51 = vmul.f32 1.442695, %v2531_v36  ;;  %v2623_v58 = vmul.f32 1.442695, %v2537_v20  ;;  %v2539_v20 = vsub.f32 %v6938_v47, %v7220_v55  ;;  %v2545_v55 = vsub.f32 %v6959_v61, %v7237_v5 }
 0x369   : > { %v2193_v19 = vpop.f32.mrb[60].mxu0  ;;  %2738 = vadd.xlane.f32.xlu1 %v2737_v8  ;;  %v7279_v17 = vpop.eup %6007  ;;  %v2543_v5 = vsub.f32 %v6964_v31, %v7262_v27 }
 0x36a   : > { %v5485_v15 = vpop.f32.mrb[61].mxu0  ;;  %v2627_v47 = vmul.f32 1.442695, %v2539_v20  ;;  %v2639_v61 = vmul.f32 1.442695, %v2545_v55 }
 0x36b   : > { %v2196_v32 = vpop.f32.mrb[62].mxu0  ;;  %2741 = vadd.xlane.f32.xlu0 %v2740_v40  ;;  %v2534_v15 = vsub.f32 %v6891_v53, %v7144_v48  ;;  %v7275_v40 = vpop.xlane.xlu0 %2417  ;;  %v2532_v48 = vsub.f32 %v6896_v6, %v7169_v42  ;;  %v2749_v6 = vsel %vm2322_vm3, %v7279_v17, 0.0 }
 0x36c   : > { %v5486_v8 = vpop.f32.mrb[63].mxu0  ;;  %v7283_v25 = vpop.xlane.xlu1 %2426 }
 0x36d   : > { %2498 = vmax.xlane.f32.xlu1 %v2497_v2  ;;  %v2491_v8 = vsel %vm2322_vm3, %v7260_v7, -inf  ;;  %v2617_v53 = vmul.f32 1.442695, %v2534_v15  ;;  %v7287_v2 = vpop.eup %6009  ;;  %v7293_v15 = vadd.f32 %v7142_v60, %v7146_v46  ;;  %v2613_v42 = vmul.f32 1.442695, %v2532_v48 }
 0x36e   : > { %v2752_v52 = vsel %vm2322_vm3, %v7287_v2, 0.0  ;;  %v2535_v46 = vsub.f32 %v6912_v24, %v7187_v49  ;;  %v7319_v48 = vadd.f32 %v7155_v4, %v2196_v32  ;;  %v2512_v24 = vsel %vm2322_vm3, %v7301_v21, -inf }
 0x36f   : > { %2501 = vmax.xlane.f32.xlu0 %v2500_v33  ;;  %6013 = vpow2.f32 %v2617_v53  ;;  %v2538_v33 = vsub.f32 %v6915_v57, %v7189_v9  ;;  %v7303_v36 = vpop.xlane.xlu0 %2411  ;;  %v2509_v9 = vsel %vm2322_vm3, %v7293_v15, -inf  ;;  %v2536_v53 = vsub.f32 %v6922_v62, %v7211_v39 }
 0x370   : > { %6015 = vpow2.f32 %v2611_v51  ;;  %v7312_v57 = vpop.xlane.xlu1 %2420  ;;  %v2541_v49 = vsub.f32 %v6931_v29, %v7199_v13  ;;  %v7329_v51 = vpop.eup %6011  ;;  %v2542_v4 = vsub.f32 %v6941_v38, %v7231_v11  ;;  %v2506_v32 = vsel %vm2322_vm3, %v7319_v48, -inf }
 0x371   : > { %2492 = vmax.xlane.f32.xlu1 %v2491_v8  ;;  %v7310_v8 = vadd.f32 %v7142_v60, %v2193_v19  ;;  %6017 = vpow2.f32 %v2613_v42  ;;  %v2625_v23 = vmul.f32 1.442695, %v2538_v33  ;;  %v2619_v60 = vmul.f32 1.442695, %v2535_v46 }
 0x372   : > { %6019 = vpow2.f32 %v2623_v58  ;;  %v2621_v62 = vmul.f32 1.442695, %v2536_v53  ;;  %v2631_v13 = vmul.f32 1.442695, %v2541_v49  ;;  %v2633_v38 = vmul.f32 1.442695, %v2542_v4 }
 0x373   : > { %2495 = vmax.xlane.f32.xlu0 %v2494_v59  ;;  %v7325_v19 = vpop.xlane.xlu0 %2429  ;;  %v2503_v59 = vsel %vm2322_vm3, %v7310_v8, -inf  ;;  %6021 = vpow2.f32 %v2625_v23  ;;  %v2540_v11 = vsub.f32 %v6948_v16, %v7253_v1  ;;  %v2546_v23 = vsub.f32 %v6967_v26, %v7275_v40 }
 0x374   : > { %v7333_v39 = vpop.xlane.xlu1 %2438  ;;  %6023 = vpow2.f32 %v2619_v60  ;;  %v2544_v60 = vsub.f32 %v6974_v50, %v7303_v36  ;;  %v2635_v50 = vmul.f32 1.442695, %v2543_v5  ;;  %v2550_v20 = vsub.f32 %v7000_v45, %v7325_v19 }
 0x375   : > { %2750 = vadd.xlane.f32.xlu1 %v2749_v6  ;;  %v2761_v6 = vsel %vm2322_vm3, %v7329_v51, 0.0  ;;  %6025 = vpow2.f32 %v2621_v62  ;;  %v2629_v1 = vmul.f32 1.442695, %v2540_v11  ;;  %v2641_v40 = vmul.f32 1.442695, %v2546_v23 }
 0x376   : > { %6027 = vpow2.f32 %v2631_v13  ;;  %v2549_v62 = vsub.f32 %v6987_v56, %v7283_v25  ;;  %v2637_v36 = vmul.f32 1.442695, %v2544_v60  ;;  %v2649_v19 = vmul.f32 1.442695, %v2550_v20 }
 0x377   : > { %2753 = vadd.xlane.f32.xlu0 %v2752_v52  ;;  %v7347_v33 = vpop.xlane.xlu0 %2423  ;;  %6029 = vpow2.f32 %v2633_v38 }
 0x378   : > { %v7355_v46 = vpop.xlane.xlu1 %2432  ;;  %6031 = vpow2.f32 %v2627_v47  ;;  %v2647_v56 = vmul.f32 1.442695, %v2549_v62  ;;  %v2548_v55 = vsub.f32 %v7007_v12, %v7347_v33 }
 0x379   : > { %2510 = vmax.xlane.f32.xlu1 %v2509_v9  ;;  %v7337_v29 = vpop.eup %6013  ;;  %6033 = vpow2.f32 %v2629_v1 }
 0x37a   : > { %v7343_v42 = vpop.eup %6015  ;;  %v2764_v52 = vsel %vm2322_vm3, %v7337_v29, 0.0  ;;  %6035 = vpow2.f32 %v2639_v61  ;;  %v2645_v33 = vmul.f32 1.442695, %v2548_v55 }
 0x37b   : > { %2513 = vmax.xlane.f32.xlu0 %v2512_v24  ;;  %v7351_v58 = vpop.eup %6017  ;;  %v2755_v9 = vsel %vm2322_vm3, %v7343_v42, 0.0  ;;  %v2442_v49 = vpop.xlane.xlu0 %2441  ;;  %6037 = vpow2.f32 %v2641_v40 }
 0x37c   : > { %v7359_v16 = vpop.eup %6019  ;;  %v2758_v53 = vsel %vm2322_vm3, %v7351_v58, 0.0  ;;  %v2709_v4 = vpop.xlane.xlu1 %2708  ;;  %6039 = vpow2.f32 %v2635_v50  ;;  %v2554_v5 = vsub.f32 %v7024_v35, %v2442_v49 }
 0x37d   : > { %2504 = vmax.xlane.f32.xlu1 %v2503_v59  ;;  %v7365_v24 = vpop.eup %6021  ;;  %v2773_v59 = vsel %vm2322_vm3, %v7359_v16, 0.0  ;;  %6041 = vpow2.f32 %v2637_v36 }
 0x37e   : > { %v7373_v26 = vpop.eup %6023  ;;  %v2776_v31 = vsel %vm2322_vm3, %v7365_v24, 0.0  ;;  %6043 = vrcp.f32 %v2709_v4  ;;  %v2657_v35 = vmul.f32 1.442695, %v2554_v5 }
 0x37f   : > { %2507 = vmax.xlane.f32.xlu0 %v2506_v32  ;;  %v7379_v27 = vpop.eup %6025  ;;  %v2767_v32 = vsel %vm2322_vm3, %v7373_v26, 0.0  ;;  %v2436_v25 = vpop.xlane.xlu0 %2435  ;;  %6045 = vpow2.f32 %v2647_v56 }
 0x380   : > { %v7383_v13 = vpop.eup %6027  ;;  %v2770_v38 = vsel %vm2322_vm3, %v7379_v27, 0.0  ;;  %v2552_v49 = vsub.f32 %v7029_v34, %v2436_v25 }
 0x381   : > { %2762 = vadd.xlane.f32.xlu1 %v2761_v6  ;;  %v7391_v11 = vpop.eup %6029  ;;  %v2785_v47 = vsel %vm2322_vm3, %v7383_v13, 0.0 }
 0x382   : > { %v7397_v45 = vpop.eup %6031  ;;  %v2788_v23 = vsel %vm2322_vm3, %v7391_v11, 0.0  ;;  %v2653_v25 = vmul.f32 1.442695, %v2552_v49  ;;  %v8177_v49 = vmov 0.0  }
 0x383   : > { %2765 = vadd.xlane.f32.xlu0 %v2764_v52  ;;  %v2547_v52 = vsub.f32 %v6997_v28, %v7312_v57  ;;  %v7403_v28 = vpop.eup %6033  ;;  %v2779_v61 = vsel %vm2322_vm3, %v7397_v45, 0.0 }
 0x384   : > { %v7409_v12 = vpop.eup %6035  ;;  %v2782_v40 = vsel %vm2322_vm3, %v7403_v28, 0.0 }
 0x385   : > { %2756 = vadd.xlane.f32.xlu1 %v2755_v9  ;;  %v2643_v57 = vmul.f32 1.442695, %v2547_v52  ;;  %v7416_v62 = vpop.eup %6037  ;;  %v2797_v4 = vsel %vm2322_vm3, %v7409_v12, 0.0 }
 0x386   : > { %v2800_v20 = vsel %vm2322_vm3, %v7416_v62, 0.0 }
 0x387   : > { %2759 = vadd.xlane.f32.xlu0 %v2758_v53  ;;  %v2553_v53 = vsub.f32 %v7014_v3, %v7333_v39  ;;  %v2551_v39 = vsub.f32 %v7021_v54, %v7355_v46 }
 0x389   : > { %2774 = vadd.xlane.f32.xlu1 %v2773_v59  ;;  %v2655_v3 = vmul.f32 1.442695, %v2553_v53  ;;  %v2651_v54 = vmul.f32 1.442695, %v2551_v39  ;;  %v8175_v39 = vld [vmem:[#allocation18_spill] sm:$0xff] }
 0x38b   : > { %2777 = vadd.xlane.f32.xlu0 %v2776_v31  ;;  %v7422_v31 = vpop.eup %6039 }
 0x38c   : > { %v7425_v50 = vpop.eup %6041  ;;  %v2791_v52 = vsel %vm2322_vm3, %v7422_v31, 0.0 }
 0x38d   : > { %2768 = vadd.xlane.f32.xlu1 %v2767_v32  ;;  %v6044_v56 = vpop.eup %6043 }
 0x38e   : > { %v7387_v6 = vpop.xlane.xlu1 %2732 }
 0x38f   : > { %2771 = vadd.xlane.f32.xlu0 %v2770_v38  ;;  %v7430_v38 = vpop.eup %6045 }
 0x391   : > { %2786 = vadd.xlane.f32.xlu1 %v2785_v47 }
 0x392   : > { %v2712_v9 = vpop.xlane.xlu0 %2711  ;;  %v2451_v1 = vpop.xlane.xlu1 %2450 }
 0x393   : > { %6047 = vrcp.f32 %v2712_v9  ;;  %2789 = vadd.xlane.f32.xlu0 %v2788_v23  ;;  %v2557_v46 = vsub.f32 %v7054_v10, %v2451_v1  ;;  %v2794_v10 = vsel %vm2322_vm3, %v7425_v50, 0.0 }
 0x394   : > { %6049 = vpow2.f32 %v2649_v19  ;;  %v2963_v19 = vmul.f32 %v6044_v56, %v7037_v30 }
 0x395   : > { %2780 = vadd.xlane.f32.xlu1 %v2779_v61  ;;  %6051 = vpow2.f32 %v2643_v57  ;;  %v2663_v57 = vmul.f32 1.442695, %v2557_v46 }
 0x396   : > { %v7412_v60 = vpop.xlane.xlu0 %2735  ;;  %v2445_v59 = vpop.xlane.xlu1 %2444  ;;  %6053 = vpow2.f32 %v2645_v33 }
 0x397   : > { %2783 = vadd.xlane.f32.xlu0 %v2782_v40  ;;  %6055 = vpow2.f32 %v2655_v3  ;;  %v2555_v53 = vsub.f32 %v7062_v22, %v2445_v59 }
 0x398   : > { %6057 = vpow2.f32 %v2657_v35 }
 0x399   : > { %2798 = vadd.xlane.f32.xlu1 %v2797_v4  ;;  %6059 = vpow2.f32 %v2651_v54  ;;  %v2659_v3 = vmul.f32 1.442695, %v2555_v53  ;;  %v8176_v4 = vld [vmem:[#allocation36_spill] sm:$0xff] }
 0x39a   : > { %v2454_v36 = vpop.xlane.xlu0 %2453  ;;  %v2715_v32 = vpop.xlane.xlu1 %2714  ;;  %6061 = vpow2.f32 %v2653_v25 }
 0x39b   : > { %2801 = vadd.xlane.f32.xlu0 %v2800_v20  ;;  %v2558_v47 = vsub.f32 %v7071_v63, %v2454_v36  ;;  %v2809_v63 = vsel %vm2322_vm3, %v7430_v38, 0.0  ;;  %6063 = vrcp.f32 %v2715_v32 }
 0x39c   : > { %6065 = vpow2.f32 %v2663_v57 }
 0x39d   : > { %v6048_v34 = vpop.eup %6047  ;;  %2792 = vadd.xlane.f32.xlu1 %v2791_v52 }
 0x39e   : > { %v2964_v55 = vmul.f32 %v6048_v34, %v7058_v18  ;;  %v2448_v9 = vpop.xlane.xlu0 %2447  ;;  %v7437_v23 = vpop.xlane.xlu1 %2744  ;;  %v2665_v18 = vmul.f32 1.442695, %v2558_v47 }
 0x39f   : > { %v7441_v1 = vpop.eup %6049  ;;  %2795 = vadd.xlane.f32.xlu0 %v2794_v10  ;;  %v2556_v33 = vsub.f32 %v7081_v44, %v2448_v9 }
 0x3a0   : > { %v3027_v61 = vpack.c.bf16 %v2964_v55, %v2963_v19  ;;  %v7446_v30 = vpop.eup %6051  ;;  %v2812_v22 = vsel %vm2322_vm3, %v7441_v1, 0.0  ;;  %v8178_v55 = vld [vmem:[#allocation39_spill] sm:$0xff] }
 0x3a1   : > { %2810 = vadd.xlane.f32.xlu1 %v2809_v63  ;;  %v7452_v59 = vpop.eup %6053  ;;  %v2803_v44 = vsel %vm2322_vm3, %v7446_v30, 0.0  ;;  %v2661_v32 = vmul.f32 1.442695, %v2556_v33 }
 0x3a2   : > { %v2718_v5 = vpop.xlane.xlu0 %2717  ;;  %5496 = vmatmul.mubr.msk.bf16.vlgmr.msra.gmra.mrb[64].mxu0 %vm2322_vm3, %v3027_v61  ;;  %v2463_v40 = vpop.xlane.xlu1 %2462  ;;  %v2806_v56 = vsel %vm2322_vm3, %v7452_v59, 0.0 }
 0x3a3   : > { %5506 = vmatpush3.bf16.msra.mxu0 %v8175_v39  ;;  %v2561_v35 = vsub.f32 %v8176_v4, %v2463_v40  ;;  %2813 = vadd.xlane.f32.xlu0 %v2812_v22  ;;  %6067 = vrcp.f32 %v2718_v5  ;;  %v7461_v36 = vpop.eup %6055  ;;  %v8179_v5 = vld [vmem:[#allocation34_spill] sm:$0xff]  ;;  %v8180_v22 = vld [vmem:[#allocation37_spill] sm:$0xff] }
 0x3a4   : > { %5507 = vmatprep.mubr.msk.bf16.mxu0 %vm6245_vm1, %v8177_v49  ;;  %5517 = vmatprep.subr.bf16.mxu0 %v8177_v49  ;;  %6069 = vpow2.f32 %v2665_v18  ;;  %v7467_v54 = vpop.eup %6057  ;;  %v2821_v52 = vsel %vm2322_vm3, %v7461_v36, 0.0 }
 0x3a5   : > { %2804 = vadd.xlane.f32.xlu1 %v2803_v44  ;;  %6071 = vpow2.f32 %v2659_v3  ;;  %v2671_v46 = vmul.f32 1.442695, %v2561_v35  ;;  %v7471_v34 = vpop.eup %6059  ;;  %v2824_v47 = vsel %vm2322_vm3, %v7467_v54, 0.0 }
 0x3a6   : > { %v7463_v20 = vpop.xlane.xlu0 %2747  ;;  %6073 = vpow2.f32 %v2661_v32  ;;  %v7475_v19 = vpop.eup %6061  ;;  %v2815_v57 = vsel %vm2322_vm3, %v7471_v34, 0.0 }
 0x3a7   : > { %2807 = vadd.xlane.f32.xlu0 %v2806_v56  ;;  %6075 = vpow2.f32 %v2671_v46  ;;  %v6064_v10 = vpop.eup %6063  ;;  %v2818_v18 = vsel %vm2322_vm3, %v7475_v19, 0.0  ;;  %v8181_v56 = vld [vmem:[#allocation12_spill] sm:$0xff] }
 0x3a8   : > { %v7480_v53 = vpop.eup %6065  ;;  %v2965_v40 = vmul.f32 %v6064_v10, %v8179_v5  ;;  %v8184_v5 = vld [vmem:[#allocation41_spill] sm:$0xff] }
 0x3a9   : > { %2822 = vadd.xlane.f32.xlu1 %v2821_v52  ;;  %v2833_v39 = vsel %vm2322_vm3, %v7480_v53, 0.0 }
 0x3aa   : > { %v2466_v25 = vpop.xlane.xlu0 %2465 }
 0x3ab   : > { %v2562_v9 = vsub.f32 %v8178_v55, %v2466_v25  ;;  %2825 = vadd.xlane.f32.xlu0 %v2824_v47 }
 0x3ad   : > { %v2673_v63 = vmul.f32 1.442695, %v2562_v9  ;;  %2816 = vadd.xlane.f32.xlu1 %v2815_v57  ;;  %v6068_v61 = vpop.eup %6067  ;;  %v8183_v57 = vld [vmem:[#allocation40_spill] sm:$0xff] }
 0x3ae   : > { %v7484_v33 = vpop.eup %6069  ;;  %v2966_v3 = vmul.f32 %v6068_v61, %v8180_v22 }
 0x3af   : > { %6077 = vpow2.f32 %v2673_v63  ;;  %2819 = vadd.xlane.f32.xlu0 %v2818_v18  ;;  %v7490_v4 = vpop.eup %6071  ;;  %v2836_v44 = vsel %vm2322_vm3, %v7484_v33, 0.0 }
 0x3b0   : > { %v3028_v35 = vpack.c.bf16 %v2966_v3, %v2965_v40  ;;  %v7494_v32 = vpop.eup %6073  ;;  %v2827_v46 = vsel %vm2322_vm3, %v7490_v4, 0.0 }
 0x3b1   : > { %2834 = vadd.xlane.f32.xlu1 %v2833_v39  ;;  %v7502_v52 = vpop.eup %6075  ;;  %v2830_v25 = vsel %vm2322_vm3, %v7494_v32, 0.0 }
 0x3b2   : > { %5502 = vmatmul.mubr.msk.bf16.vlgmr.msra.gmra.mrb[80].mxu1 %vm2322_vm3, %v3028_v35  ;;  %8182 = vst [vmem:[#allocation18_spill] sm:$0xff] %v7502_v52  ;;  %v2845_v47 = vsel %vm2322_vm3, %v7502_v52, 0.0 }
 0x3b3   : > { %2837 = vadd.xlane.f32.xlu0 %v2836_v44  ;;  %5512 = vmatpush3.bf16.msra.mxu1 %v8181_v56  ;;  %v8185_v44 = vld [vmem:[#allocation44_spill] sm:$0xff] }
 0x3b4   : > { %5513 = vmatprep.mubr.msk.bf16.mxu1 %vm6245_vm1, %v8177_v49  ;;  %5523 = vmatprep.subr.bf16.mxu1 %v8177_v49 }
 0x3b5   : > { %2828 = vadd.xlane.f32.xlu1 %v2827_v46 }
 0x3b7   : > { %2831 = vadd.xlane.f32.xlu0 %v2830_v25 }
 0x3b9   : > { %v7509_v55 = vpop.eup %6077  ;;  %2846 = vadd.xlane.f32.xlu1 %v2845_v47  ;;  %v8186_v47 = vld [vmem:[#allocation45_spill] sm:$0xff] }
 0x3ba   : > { %v2848_v9 = vsel %vm2322_vm3, %v7509_v55, 0.0 }
 0x3bb   : > { %2849 = vadd.xlane.f32.xlu0 %v2848_v9 }
 0x3da   : > { %v2457_v10 = vpop.xlane.xlu1 %2456 }
 0x3db   : > { %v2559_v63 = vsub.f32 %v8183_v57, %v2457_v10 }
 0x3dc   : > { %v2460_v61 = vpop.xlane.xlu0 %2459 }
 0x3dd   : > { %v2667_v18 = vmul.f32 1.442695, %v2559_v63  ;;  %v2560_v40 = vsub.f32 %v8184_v5, %v2460_v61  ;;  %v8187_v63 = vld [vmem:[#allocation46_spill] sm:$0xff] }
 0x3de   : > { %v2721_v22 = vpop.xlane.xlu1 %2720 }
 0x3df   : > { %6079 = vpow2.f32 %v2667_v18  ;;  %v2669_v3 = vmul.f32 1.442695, %v2560_v40 }
 0x3e0   : > { %6081 = vrcp.f32 %v2721_v22  ;;  %v2724_v39 = vpop.xlane.xlu0 %2723  ;;  %v8188_v22 = vld [vmem:[#allocation47_spill] sm:$0xff] }
 0x3e1   : > { %6083 = vpow2.f32 %v2669_v3 }
 0x3e2   : > { %6085 = vrcp.f32 %v2724_v39  ;;  %v2475_v35 = vpop.xlane.xlu1 %2474 }
 0x3e3   : > { %v2565_v56 = vsub.f32 %v8185_v44, %v2475_v35  ;;  %6087 = vrcp.f32 %v7412_v60 }
 0x3e4   : > { %v2478_v46 = vpop.xlane.xlu0 %2477 }
 0x3e5   : > { %v2679_v25 = vmul.f32 1.442695, %v2565_v56  ;;  %v2566_v9 = vsub.f32 %v8186_v47, %v2478_v46  ;;  %v8189_v47 = vld [vmem:[#allocation42_spill] sm:$0xff] }
 0x3e6   : > { %v2469_v10 = vpop.xlane.xlu1 %2468 }
 0x3e7   : > { %6089 = vpow2.f32 %v2679_v25  ;;  %v2681_v57 = vmul.f32 1.442695, %v2566_v9  ;;  %v2563_v61 = vsub.f32 %v8187_v63, %v2469_v10  ;;  %v8190_v10 = vld [vmem:[#allocation43_spill] sm:$0xff]  ;;  %v8191_v63 = vld [vmem:[#allocation50_spill] sm:$0xff] }
 0x3e8   : > { %6091 = vrcp.f32 %v7387_v6  ;;  %v2472_v18 = vpop.xlane.xlu0 %2471 }
 0x3e9   : > { %v7520_v5 = vpop.eup %6079  ;;  %6093 = vpow2.f32 %v2681_v57  ;;  %v2675_v40 = vmul.f32 1.442695, %v2563_v61  ;;  %v2564_v3 = vsub.f32 %v8188_v22, %v2472_v18 }
 0x3ea   : > { %v6082_v39 = vpop.eup %6081  ;;  %6095 = vrcp.f32 %v7463_v20  ;;  %v2727_v35 = vpop.xlane.xlu1 %2726  ;;  %v2839_v60 = vsel %vm2322_vm3, %v7520_v5, 0.0 }
 0x3eb   : > { %v7526_v44 = vpop.eup %6083  ;;  %6097 = vpow2.f32 %v2675_v40  ;;  %v2677_v56 = vmul.f32 1.442695, %v2564_v3  ;;  %2840 = vadd.xlane.f32.xlu1 %v2839_v60  ;;  %v2967_v9 = vmul.f32 %v6082_v39, %v8189_v47 }
 0x3ec   : > { %v6086_v6 = vpop.eup %6085  ;;  %6099 = vrcp.f32 %v2727_v35  ;;  %v2730_v46 = vpop.xlane.xlu0 %2729  ;;  %v2842_v25 = vsel %vm2322_vm3, %v7526_v44, 0.0 }
 0x3ed   : > { %v2968_v57 = vmul.f32 %v6086_v6, %v8190_v10  ;;  %6101 = vpow2.f32 %v2677_v56  ;;  %2843 = vadd.xlane.f32.xlu0 %v2842_v25  ;;  %v6088_v40 = vpop.eup %6087  ;;  %v8192_v6 = vld [vmem:[#allocation19_spill] sm:$0xff] }
 0x3ee   : > { %6103 = vrcp.f32 %v2730_v46  ;;  %v2487_v20 = vpop.xlane.xlu1 %2486 }
 0x3ef   : > { %v2569_v61 = vsub.f32 %v8191_v63, %v2487_v20  ;;  %v3029_v18 = vpack.c.bf16 %v2968_v57, %v2967_v9  ;;  %6105 = vrcp.f32 %v7437_v23  ;;  %v8193_v23 = vld [vmem:[#allocation33_spill] sm:$0xff] }
 0x3f0   : > { %v2490_v22 = vpop.xlane.xlu0 %2489  ;;  %v2972_v47 = vmul.f32 %v6088_v40, %v8193_v23 }
 0x3f1   : > { %v7534_v3 = vpop.eup %6089  ;;  %v2687_v35 = vmul.f32 1.442695, %v2569_v61  ;;  %v2570_v60 = vsub.f32 %v7209_v41, %v2490_v22  ;;  %5508 = vmatmul.mubr.msk.bf16.vlgmr.msra.gmra.mrb[68].mxu0 %vm2322_vm3, %v3029_v18  ;;  %v8195_v61 = vld [vmem:[#allocation32_spill] sm:$0xff] }
 0x3f2   : > { %v6092_v39 = vpop.eup %6091  ;;  %5518 = vmatpush3.bf16.msra.mxu0 %v8192_v6  ;;  %v2481_v56 = vpop.xlane.xlu1 %2480  ;;  %v2857_v46 = vsel %vm2322_vm3, %v7534_v3, 0.0  ;;  %5519 = vmatprep.mubr.msk.bf16.mxu0 %vm6245_vm1, %v8177_v49 }
 0x3f3   : > { %v7543_v25 = vpop.eup %6093  ;;  %6107 = vpow2.f32 %v2687_v35  ;;  %v2689_v9 = vmul.f32 1.442695, %v2570_v60  ;;  %v2567_v41 = vsub.f32 %v7218_v43, %v2481_v56  ;;  %2858 = vadd.xlane.f32.xlu1 %v2857_v46  ;;  %5529 = vmatprep.subr.bf16.mxu0 %v8177_v49  ;;  %v2971_v18 = vmul.f32 %v6092_v39, %v8195_v61  ;;  %v8198_v61 = vld [vmem:[#allocation20_spill] sm:$0xff] }
 0x3f4   : > { %v6096_v10 = vpop.eup %6095  ;;  %v2484_v57 = vpop.xlane.xlu0 %2483  ;;  %v2860_v20 = vsel %vm2322_vm3, %v7543_v25, 0.0 }
 0x3f5   : > { %v7550_v63 = vpop.eup %6097  ;;  %6109 = vpow2.f32 %v2689_v9  ;;  %v2683_v22 = vmul.f32 1.442695, %v2567_v41  ;;  %v2568_v40 = vsub.f32 %v7227_v37, %v2484_v57  ;;  %2861 = vadd.xlane.f32.xlu0 %v2860_v20  ;;  %v3031_v46 = vpack.c.bf16 %v2972_v47, %v2971_v18  ;;  %v8196_v9 = vld [vmem:[#allocation48_spill] sm:$0xff]  ;;  %v8197_v41 = vld [vmem:[#allocation49_spill] sm:$0xff]  ;;  %v8199_v47 = vld [vmem:[#allocation38_spill] sm:$0xff] }
 0x3f6   : > { %8194 = vst [vmem:[#allocation36_spill] sm:$0xff] %v7550_v63  ;;  %v6100_v35 = vpop.eup %6099  ;;  %v2739_v60 = vpop.xlane.xlu1 %2738  ;;  %v2851_v43 = vsel %vm2322_vm3, %v7550_v63, 0.0  ;;  %v2976_v18 = vmul.f32 %v6096_v10, %v8199_v47 }
 0x3f7   : > { %v7556_v6 = vpop.eup %6101  ;;  %6111 = vpow2.f32 %v2683_v22  ;;  %v2685_v56 = vmul.f32 1.442695, %v2568_v40  ;;  %2852 = vadd.xlane.f32.xlu1 %v2851_v43  ;;  %v2969_v37 = vmul.f32 %v6100_v35, %v8196_v9  ;;  %v8200_v40 = vld [vmem:[#allocation53_spill] sm:$0xff] }
 0x3f8   : > { %v6104_v23 = vpop.eup %6103  ;;  %6113 = vrcp.f32 %v2739_v60  ;;  %v2742_v52 = vpop.xlane.xlu0 %2741  ;;  %v2854_v39 = vsel %vm2322_vm3, %v7556_v6, 0.0 }
 0x3f9   : > { %v2970_v57 = vmul.f32 %v6104_v23, %v8197_v41  ;;  %6115 = vpow2.f32 %v2685_v56  ;;  %5520 = vmatmul.mubr.msk.bf16.vlgmr.msra.gmra.mrb[72].mxu0 %vm2322_vm3, %v3031_v46  ;;  %2855 = vadd.xlane.f32.xlu0 %v2854_v39  ;;  %v6106_v20 = vpop.eup %6105  ;;  %v8201_v46 = vld [vmem:[#allocation35_spill] sm:$0xff]  ;;  %v8202_v39 = vld [vmem:[#allocation13_spill] sm:$0xff] }
 0x3fa   : > { %6117 = vrcp.f32 %v2742_v52  ;;  %5530 = vmatpush3.bf16.msra.mxu0 %v8198_v61  ;;  %v2499_v22 = vpop.xlane.xlu1 %2498  ;;  %5531 = vmatprep.mubr.msk.bf16.mxu0 %vm6245_vm1, %v8177_v49  ;;  %v2975_v23 = vmul.f32 %v6106_v20, %v8201_v46 }
 0x3fb   : > { %v2573_v60 = vsub.f32 %v8200_v40, %v2499_v22  ;;  %v3030_v43 = vpack.c.bf16 %v2970_v57, %v2969_v37  ;;  %5541 = vmatprep.subr.bf16.mxu0 %v8177_v49 }
 0x3fc   : > { %v2502_v35 = vpop.xlane.xlu0 %2501  ;;  %v3033_v20 = vpack.c.bf16 %v2976_v18, %v2975_v23 }
 0x3fd   : > { %v7569_v56 = vpop.eup %6107  ;;  %5514 = vmatmul.mubr.msk.bf16.vlgmr.msra.gmra.mrb[84].mxu1 %vm2322_vm3, %v3030_v43  ;;  %v2695_v52 = vmul.f32 1.442695, %v2573_v60  ;;  %v2574_v37 = vsub.f32 %v7251_v14, %v2502_v35  ;;  %v8204_v14 = vld [vmem:[#allocation22_spill] sm:$0xff] }
 0x3fe   : > { %5524 = vmatpush3.bf16.msra.mxu1 %v8202_v39  ;;  %v2493_v9 = vpop.xlane.xlu1 %2492  ;;  %v2869_v41 = vsel %vm2322_vm3, %v7569_v56, 0.0  ;;  %5525 = vmatprep.mubr.msk.bf16.mxu1 %vm6245_vm1, %v8177_v49 }
 0x3ff   : > { %v7578_v10 = vpop.eup %6109  ;;  %v2571_v57 = vsub.f32 %v7260_v7, %v2493_v9  ;;  %2870 = vadd.xlane.f32.xlu1 %v2869_v41  ;;  %5535 = vmatprep.subr.bf16.mxu1 %v8177_v49  ;;  %6119 = vpow2.f32 %v2695_v52  ;;  %v2697_v46 = vmul.f32 1.442695, %v2574_v37  ;;  %v8206_v9 = vld [vmem:[#allocation51_spill] sm:$0xff] }
 0x400   : > { %v2496_v61 = vpop.xlane.xlu0 %2495  ;;  %v2872_v22 = vsel %vm2322_vm3, %v7578_v10, 0.0 }
 0x401   : > { %v7585_v47 = vpop.eup %6111  ;;  %v2691_v40 = vmul.f32 1.442695, %v2571_v57  ;;  %v2572_v60 = vsub.f32 %v7269_v0, %v2496_v61  ;;  %5532 = vmatmul.mubr.msk.bf16.vlgmr.msra.gmra.mrb[76].mxu0 %vm2322_vm3, %v3033_v20  ;;  %2873 = vadd.xlane.f32.xlu0 %v2872_v22  ;;  %v8207_v57 = vld [vmem:[#allocation52_spill] sm:$0xff] }
 0x402   : > { %8203 = vst [vmem:[#allocation39_spill] sm:$0xff] %v7585_v47  ;;  %v6114_v43 = vpop.eup %6113  ;;  %5542 = vmatpush3.bf16.msra.mxu0 %v8204_v14  ;;  %v2751_v7 = vpop.xlane.xlu1 %2750  ;;  %v2863_v18 = vsel %vm2322_vm3, %v7585_v47, 0.0  ;;  %5543 = vmatprep.mubr.msk.bf16.mxu0 %vm6245_vm1, %v8177_v49 }
 0x403   : > { %v7594_v35 = vpop.eup %6115  ;;  %6121 = vpow2.f32 %v2691_v40  ;;  %v2693_v23 = vmul.f32 1.442695, %v2572_v60  ;;  %2864 = vadd.xlane.f32.xlu1 %v2863_v18  ;;  %5553 = vmatprep.subr.bf16.mxu0 %v8177_v49  ;;  %v2973_v41 = vmul.f32 %v6114_v43, %v8206_v9  ;;  %v8208_v40 = vld [vmem:[#allocation14_spill] sm:$0xff] }
 0x404   : > { %8205 = vst [vmem:[#allocation34_spill] sm:$0xff] %v7594_v35  ;;  %v6118_v0 = vpop.eup %6117  ;;  %6123 = vrcp.f32 %v2751_v7  ;;  %v2754_v52 = vpop.xlane.xlu0 %2753  ;;  %v2866_v39 = vsel %vm2322_vm3, %v7594_v35, 0.0 }
 0x405   : > { %v2974_v20 = vmul.f32 %v6118_v0, %v8207_v57  ;;  %6125 = vpow2.f32 %v2693_v23  ;;  %2867 = vadd.xlane.f32.xlu0 %v2866_v39 }
 0x406   : > { %6127 = vrcp.f32 %v2754_v52  ;;  %v7601_v61 = vpop.xlane.xlu1 %2510 }
 0x407   : > { %6129 = vpow2.f32 %v2697_v46  ;;  %v3032_v37 = vpack.c.bf16 %v2974_v20, %v2973_v41 }
 0x408   : > { %v7603_v22 = vpop.xlane.xlu0 %2513 }
 0x409   : > { %5526 = vmatmul.mubr.msk.bf16.vlgmr.msra.gmra.mrb[88].mxu1 %vm2322_vm3, %v3032_v37  ;;  %v7612_v43 = vpop.eup %6119 }
 0x40a   : > { %5536 = vmatpush3.bf16.msra.mxu1 %v8208_v40  ;;  %v7607_v60 = vpop.xlane.xlu1 %2504  ;;  %5537 = vmatprep.mubr.msk.bf16.mxu1 %vm6245_vm1, %v8177_v49  ;;  %v2881_v40 = vsel %vm2322_vm3, %v7612_v43, 0.0 }
 0x40b   : > { %5547 = vmatprep.subr.bf16.mxu1 %v8177_v49 }
 0x40c   : > { %v7614_v14 = vpop.xlane.xlu0 %2507 }
 0x40d   : > { %v7616_v7 = vpop.eup %6121 }
 0x40e   : > { %v6124_v18 = vpop.eup %6123  ;;  %v2763_v46 = vpop.xlane.xlu1 %2762  ;;  %v2875_v23 = vsel %vm2322_vm3, %v7616_v7, 0.0 }
 0x40f   : > { %v7620_v0 = vpop.eup %6125  ;;  %2876 = vadd.xlane.f32.xlu1 %v2875_v23  ;;  %6131 = vrcp.f32 %v2763_v46  ;;  %v2977_v57 = vmul.f32 %v6124_v18, %v7279_v17  ;;  %v8209_v17 = vld [vmem:[#allocation15_spill] sm:$0xff] }
 0x410   : > { %v6128_v52 = vpop.eup %6127  ;;  %v2766_v39 = vpop.xlane.xlu0 %2765  ;;  %v2878_v9 = vsel %vm2322_vm3, %v7620_v0, 0.0 }
 0x411   : > { %v7624_v41 = vpop.eup %6129  ;;  %v2978_v20 = vmul.f32 %v6128_v52, %v7287_v2  ;;  %2879 = vadd.xlane.f32.xlu0 %v2878_v9  ;;  %6133 = vrcp.f32 %v2766_v39 }
 0x412   : > { %v2757_v37 = vpop.xlane.xlu1 %2756  ;;  %v2884_v47 = vsel %vm2322_vm3, %v7624_v41, 0.0 }
 0x413   : > { %6135 = vrcp.f32 %v2757_v37  ;;  %2882 = vadd.xlane.f32.xlu1 %v2881_v40  ;;  %v3034_v23 = vpack.c.bf16 %v2978_v20, %v2977_v57 }
 0x414   : > { %v2760_v46 = vpop.xlane.xlu0 %2759 }
 0x415   : > { %6137 = vrcp.f32 %v2760_v46  ;;  %5538 = vmatmul.mubr.msk.bf16.vlgmr.msra.gmra.mrb[92].mxu1 %vm2322_vm3, %v3034_v23  ;;  %2885 = vadd.xlane.f32.xlu0 %v2884_v47 }
 0x416   : > { %5548 = vmatpush3.bf16.msra.mxu1 %v8209_v17  ;;  %v2775_v2 = vpop.xlane.xlu1 %2774  ;;  %5549 = vmatprep.mubr.msk.bf16.mxu1 %vm6245_vm1, %v8177_v49 }
 0x417   : > { %6139 = vrcp.f32 %v2775_v2  ;;  %5559 = vmatprep.subr.bf16.mxu1 %v8177_v49 }
 0x418   : > { %v2778_v18 = vpop.xlane.xlu0 %2777 }
 0x419   : > { %6141 = vrcp.f32 %v2778_v18  ;;  %v6132_v52 = vpop.eup %6131 }
 0x41a   : > { %v2769_v39 = vpop.xlane.xlu1 %2768  ;;  %v2981_v37 = vmul.f32 %v6132_v52, %v7329_v51 }
 0x41b   : > { %6143 = vrcp.f32 %v2769_v39  ;;  %v6134_v9 = vpop.eup %6133  ;;  %v8210_v39 = vld [vmem:[#allocation16_spill] sm:$0xff] }
 0x41c   : > { %v2772_v57 = vpop.xlane.xlu0 %2771  ;;  %v2982_v47 = vmul.f32 %v6134_v9, %v7337_v29  ;;  %v8211_v9 = vld [vmem:[#allocation8_spill] sm:$0xff] }
 0x41d   : > { %v6136_v20 = vpop.eup %6135  ;;  %6145 = vrcp.f32 %v2772_v57 }
 0x41e   : > { %v2787_v40 = vpop.xlane.xlu1 %2786  ;;  %v3036_v46 = vpack.c.bf16 %v2982_v47, %v2981_v37  ;;  %v2979_v17 = vmul.f32 %v6136_v20, %v7343_v42  ;;  %v8212_v20 = vld [vmem:[#allocation29_spill] sm:$0xff] }
 0x41f   : > { %v6138_v23 = vpop.eup %6137  ;;  %6147 = vrcp.f32 %v2787_v40 }
 0x420   : > { %v2980_v2 = vmul.f32 %v6138_v23, %v7351_v58  ;;  %v2790_v18 = vpop.xlane.xlu0 %2789  ;;  %5550 = vmatmul.mubr.msk.bf16.vlgmr.msra.gmra.mrb[96].mxu1 %vm2322_vm3, %v3036_v46  ;;  %v8213_v23 = vld [vmem:[#allocation17_spill] sm:$0xff] }
 0x421   : > { %v6140_v35 = vpop.eup %6139  ;;  %6149 = vrcp.f32 %v2790_v18  ;;  %5560 = vmatpush3.bf16.msra.mxu1 %v8210_v39  ;;  %5561 = vmatprep.mubr.msk.bf16.mxu1 %vm6245_vm1, %v8177_v49  ;;  %v8214_v18 = vld [vmem:[#allocation2_spill] sm:$0xff] }
 0x422   : > { %v2781_v63 = vpop.xlane.xlu1 %2780  ;;  %v3035_v51 = vpack.c.bf16 %v2980_v2, %v2979_v17  ;;  %5571 = vmatprep.subr.bf16.mxu1 %v8177_v49  ;;  %v2985_v42 = vmul.f32 %v6140_v35, %v7359_v16 }
 0x423   : > { %v6142_v29 = vpop.eup %6141  ;;  %6151 = vrcp.f32 %v2781_v63 }
 0x424   : > { %v2986_v58 = vmul.f32 %v6142_v29, %v7365_v24  ;;  %v2784_v52 = vpop.xlane.xlu0 %2783  ;;  %4093 = vrot.lane.b32.xlu1 %v8211_v9, %s6249_s14  ;;  %5544 = vmatmul.mubr.msk.bf16.vlgmr.msra.gmra.mrb[80].mxu0 %vm2322_vm3, %v3035_v51  ;;  %v8215_v29 = vld [vmem:[#allocation24_spill] sm:$0xff] }
 0x425   : > { %v6144_v57 = vpop.eup %6143  ;;  %6153 = vrcp.f32 %v2784_v52  ;;  %5554 = vmatpush3.bf16.msra.mxu0 %v8212_v20  ;;  %5555 = vmatprep.mubr.msk.bf16.mxu0 %vm6245_vm1, %v8177_v49  ;;  %v2575_v20 = vsub.f32 %v7310_v8, %v7607_v60  ;;  %v8217_v60 = vld [vmem:[#allocation30_spill] sm:$0xff] }
 0x426   : > { %v2799_v63 = vpop.xlane.xlu1 %2798  ;;  %v3038_v37 = vpack.c.bf16 %v2986_v58, %v2985_v42  ;;  %5565 = vmatprep.subr.bf16.mxu0 %v8177_v49  ;;  %v2983_v24 = vmul.f32 %v6144_v57, %v7373_v26 }
 0x427   : > { %v6146_v16 = vpop.eup %6145  ;;  %6155 = vrcp.f32 %v2799_v63  ;;  %v8216_v63 = vld [vmem:[#allocation21_spill] sm:$0xff] }
 0x428   : > { %v2984_v35 = vmul.f32 %v6146_v16, %v7379_v27  ;;  %v2802_v47 = vpop.xlane.xlu0 %2801  ;;  %5562 = vmatmul.mubr.msk.bf16.vlgmr.msra.gmra.mrb[100].mxu1 %vm2322_vm3, %v3038_v37 }
 0x429   : > { %v6148_v40 = vpop.eup %6147  ;;  %6157 = vrcp.f32 %v2802_v47  ;;  %5572 = vmatpush3.bf16.msra.mxu1 %v8213_v23  ;;  %5573 = vmatprep.mubr.msk.bf16.mxu1 %vm6245_vm1, %v8177_v49  ;;  %v2699_v23 = vmul.f32 1.442695, %v2575_v20 }
 0x42a   : > { %v2793_v46 = vpop.xlane.xlu1 %2792  ;;  %v3037_v17 = vpack.c.bf16 %v2984_v35, %v2983_v24  ;;  %5583 = vmatprep.subr.bf16.mxu1 %v8177_v49  ;;  %v2989_v26 = vmul.f32 %v6148_v40, %v7383_v13  ;;  %v2577_v40 = vsub.f32 %v7293_v15, %v7601_v61  ;;  %v8218_v61 = vld [vmem:[#allocation23_spill] sm:$0xff] }
 0x42b   : > { %v6150_v2 = vpop.eup %6149  ;;  %6159 = vrcp.f32 %v2793_v46  ;;  %4140 = vrot.lane.b32.xlu0 %v8214_v18, %s6249_s14 }
 0x42c   : > { %v2990_v27 = vmul.f32 %v6150_v2, %v7391_v11  ;;  %v2796_v39 = vpop.xlane.xlu0 %2795  ;;  %5556 = vmatmul.mubr.msk.bf16.vlgmr.msra.gmra.mrb[84].mxu0 %vm2322_vm3, %v3037_v17  ;;  %v2703_v15 = vmul.f32 1.442695, %v2577_v40 }
 0x42d   : > { %v6152_v51 = vpop.eup %6151  ;;  %6161 = vrcp.f32 %v2796_v39  ;;  %5566 = vmatpush3.bf16.msra.mxu0 %v8215_v29  ;;  %5567 = vmatprep.mubr.msk.bf16.mxu0 %vm6245_vm1, %v8177_v49 }
 0x42e   : > { %v2811_v42 = vpop.xlane.xlu1 %2810  ;;  %v3040_v58 = vpack.c.bf16 %v2990_v27, %v2989_v26  ;;  %5577 = vmatprep.subr.bf16.mxu0 %v8177_v49  ;;  %v2987_v13 = vmul.f32 %v6152_v51, %v7397_v45  ;;  %v2576_v45 = vsub.f32 %v7319_v48, %v7614_v14 }
 0x42f   : > { %v6154_v52 = vpop.eup %6153  ;;  %6163 = vrcp.f32 %v2811_v42  ;;  %v8219_v42 = vld [vmem:[#allocation26_spill] sm:$0xff] }
 0x430   : > { %v2988_v11 = vmul.f32 %v6154_v52, %v7403_v28  ;;  %v2814_v9 = vpop.xlane.xlu0 %2813  ;;  %5574 = vmatmul.mubr.msk.bf16.vlgmr.msra.gmra.mrb[104].mxu1 %vm2322_vm3, %v3040_v58  ;;  %v2701_v14 = vmul.f32 1.442695, %v2576_v45 }
 0x431   : > { %v6156_v57 = vpop.eup %6155  ;;  %6165 = vrcp.f32 %v2814_v9  ;;  %5584 = vmatpush3.bf16.msra.mxu1 %v8216_v63  ;;  %5585 = vmatprep.mubr.msk.bf16.mxu1 %vm6245_vm1, %v8177_v49 }
 0x432   : > { %v2805_v37 = vpop.xlane.xlu1 %2804  ;;  %v3039_v16 = vpack.c.bf16 %v2988_v11, %v2987_v13  ;;  %5595 = vmatprep.subr.bf16.mxu1 %v8177_v49  ;;  %v2993_v28 = vmul.f32 %v6156_v57, %v7409_v12  ;;  %v8220_v57 = vld [vmem:[#allocation25_spill] sm:$0xff] }
 0x433   : > { %v6158_v24 = vpop.eup %6157  ;;  %6167 = vrcp.f32 %v2805_v37 }
 0x434   : > { %v2994_v35 = vmul.f32 %v6158_v24, %v7416_v62  ;;  %v2808_v47 = vpop.xlane.xlu0 %2807  ;;  %5568 = vmatmul.mubr.msk.bf16.vlgmr.msra.gmra.mrb[88].mxu0 %vm2322_vm3, %v3039_v16  ;;  %v2578_v62 = vsub.f32 %v7301_v21, %v7603_v22 }
 0x435   : > { %v6160_v8 = vpop.eup %6159  ;;  %6169 = vrcp.f32 %v2808_v47  ;;  %5578 = vmatpush3.bf16.msra.mxu0 %v8217_v60  ;;  %5579 = vmatprep.mubr.msk.bf16.mxu0 %vm6245_vm1, %v8177_v49 }
 0x436   : > { %v2823_v46 = vpop.xlane.xlu1 %2822  ;;  %v3042_v48 = vpack.c.bf16 %v2994_v35, %v2993_v28  ;;  %5589 = vmatprep.subr.bf16.mxu0 %v8177_v49  ;;  %v2991_v17 = vmul.f32 %v6160_v8, %v7422_v31  ;;  %v2705_v31 = vmul.f32 1.442695, %v2578_v62  ;;  %v8221_v28 = vld [vmem:[#allocation31_spill] sm:$0xff] }
 0x437   : > { %v6162_v12 = vpop.eup %6161  ;;  %6171 = vrcp.f32 %v2823_v46 }
 0x438   : > { %v2992_v2 = vmul.f32 %v6162_v12, %v7425_v50  ;;  %v2826_v18 = vpop.xlane.xlu0 %2825  ;;  %5586 = vmatmul.mubr.msk.bf16.vlgmr.msra.gmra.mrb[108].mxu1 %vm2322_vm3, %v3042_v48  ;;  %v8222_v12 = vld [vmem:[#allocation27_spill] sm:$0xff] }
 0x439   : > { %v6164_v26 = vpop.eup %6163  ;;  %6173 = vrcp.f32 %v2826_v18  ;;  %5596 = vmatpush3.bf16.msra.mxu1 %v8218_v61  ;;  %5597 = vmatprep.mubr.msk.bf16.mxu1 %vm6245_vm1, %v8177_v49  ;;  %v8223_v18 = vld [vmem:[#allocation28_spill] sm:$0xff] }
 0x43a   : > { %6175 = vpow2.f32 %v2699_v23  ;;  %v2817_v27 = vpop.xlane.xlu1 %2816  ;;  %v3041_v39 = vpack.c.bf16 %v2992_v2, %v2991_v17  ;;  %5607 = vmatprep.subr.bf16.mxu1 %v8177_v49  ;;  %v2997_v50 = vmul.f32 %v6164_v26, %v7430_v38 }
 0x43b   : > { %v6166_v21 = vpop.eup %6165  ;;  %6177 = vrcp.f32 %v2817_v27 }
 0x43c   : > { %6179 = vpow2.f32 %v2701_v14  ;;  %v2998_v22 = vmul.f32 %v6166_v21, %v7441_v1  ;;  %v2820_v51 = vpop.xlane.xlu0 %2819  ;;  %5580 = vmatmul.mubr.msk.bf16.vlgmr.msra.gmra.mrb[92].mxu0 %vm2322_vm3, %v3041_v39  ;;  %v8224_v39 = vld [vmem:[#allocation3_spill] sm:$0xff]  ;;  %v8225_v21 = vld [vmem:[#allocation10_spill] sm:$0xff] }
 0x43d   : > { %v6168_v29 = vpop.eup %6167  ;;  %6181 = vrcp.f32 %v2820_v51  ;;  %5590 = vmatpush3.bf16.msra.mxu0 %v8219_v42  ;;  %5591 = vmatprep.mubr.msk.bf16.mxu0 %vm6245_vm1, %v8177_v49  ;;  %v8231_v51 = vld [vmem:[#allocation9_spill] sm:$0xff] }
 0x43e   : > { %6183 = vpow2.f32 %v2703_v15  ;;  %v2835_v58 = vpop.xlane.xlu1 %2834  ;;  %v3044_v52 = vpack.c.bf16 %v2998_v22, %v2997_v50  ;;  %5601 = vmatprep.subr.bf16.mxu0 %v8177_v49  ;;  %v2995_v38 = vmul.f32 %v6168_v29, %v7446_v30  ;;  %v8229_v50 = vld [vmem:[#allocation7_spill] sm:$0xff] }
 0x43f   : > { %v6170_v13 = vpop.eup %6169  ;;  %6185 = vrcp.f32 %v2835_v58  ;;  %v8230_v22 = vld [vmem:[#allocation11_spill] sm:$0xff] }
 0x440   : > { %6187 = vpow2.f32 %v2705_v31  ;;  %v2996_v1 = vmul.f32 %v6170_v13, %v7452_v59  ;;  %v2838_v11 = vpop.xlane.xlu0 %2837  ;;  %5598 = vmatmul.mubr.msk.bf16.vlgmr.msra.gmra.mrb[112].mxu1 %vm2322_vm3, %v3044_v52  ;;  %v8228_v31 = vld [vmem:[#allocation6_spill] sm:$0xff] }
 0x441   : > { %v6172_v9 = vpop.eup %6171  ;;  %6189 = vrcp.f32 %v2838_v11  ;;  %5608 = vmatpush3.bf16.msra.mxu1 %v8220_v57  ;;  %5609 = vmatprep.mubr.msk.bf16.mxu1 %vm6245_vm1, %v8177_v49 }
 0x442   : > { %v2829_v20 = vpop.xlane.xlu1 %2828  ;;  %v3043_v63 = vpack.c.bf16 %v2996_v1, %v2995_v38  ;;  %5619 = vmatprep.subr.bf16.mxu1 %v8177_v49  ;;  %v3001_v30 = vmul.f32 %v6172_v9, %v7461_v36 }
 0x443   : > { %v6174_v37 = vpop.eup %6173  ;;  %6191 = vrcp.f32 %v2829_v20 }
 0x444   : > { %v7714_v16 = vpop.eup %6175  ;;  %v3002_v59 = vmul.f32 %v6174_v37, %v7467_v54  ;;  %v2832_v24 = vpop.xlane.xlu0 %2831  ;;  %5592 = vmatmul.mubr.msk.bf16.vlgmr.msra.gmra.mrb[96].mxu0 %vm2322_vm3, %v3043_v63 }
 0x445   : > { %v6178_v45 = vpop.eup %6177  ;;  %6193 = vrcp.f32 %v2832_v24  ;;  %5602 = vmatpush3.bf16.msra.mxu0 %v8221_v28  ;;  %5603 = vmatprep.mubr.msk.bf16.mxu0 %vm6245_vm1, %v8177_v49  ;;  %v2887_v36 = vsel %vm2322_vm3, %v7714_v16, 0.0 }
 0x446   : > { %v7722_v35 = vpop.eup %6179  ;;  %v3046_v47 = vpack.c.bf16 %v3002_v59, %v3001_v30  ;;  %5613 = vmatprep.subr.bf16.mxu0 %v8177_v49  ;;  %v2999_v60 = vmul.f32 %v6178_v45, %v7471_v34  ;;  %v2847_v52 = vpop.xlane.xlu1 %2846 }
 0x447   : > { %v6182_v8 = vpop.eup %6181  ;;  %v2890_v46 = vsel %vm2322_vm3, %v7722_v35, 0.0 }
 0x448   : > { %v7727_v54 = vpop.eup %6183  ;;  %v3000_v40 = vmul.f32 %v6182_v8, %v7475_v19  ;;  %2888 = vadd.xlane.f32.xlu1 %v2887_v36  ;;  %5610 = vmatmul.mubr.msk.bf16.vlgmr.msra.gmra.mrb[116].mxu1 %vm2322_vm3, %v3046_v47  ;;  %v2850_v38 = vpop.xlane.xlu0 %2849 }
 0x449   : > { %v6186_v23 = vpop.eup %6185  ;;  %5620 = vmatpush3.bf16.msra.mxu1 %v8222_v12  ;;  %v2893_v17 = vsel %vm2322_vm3, %v7727_v54, 0.0  ;;  %5621 = vmatprep.mubr.msk.bf16.mxu1 %vm6245_vm1, %v8177_v49 }
 0x44a   : > { %v7734_v48 = vpop.eup %6187  ;;  %2891 = vadd.xlane.f32.xlu0 %v2890_v46  ;;  %v3045_v62 = vpack.c.bf16 %v3000_v40, %v2999_v60  ;;  %5631 = vmatprep.subr.bf16.mxu1 %v8177_v49  ;;  %v3005_v34 = vmul.f32 %v6186_v23, %v7480_v53 }
 0x44b   : > { %v6190_v14 = vpop.eup %6189  ;;  %v2896_v26 = vsel %vm2322_vm3, %v7734_v48, 0.0 }
 0x44c   : > { %v3006_v19 = vmul.f32 %v6190_v14, %v7484_v33  ;;  %2894 = vadd.xlane.f32.xlu1 %v2893_v17  ;;  %5604 = vmatmul.mubr.msk.bf16.vlgmr.msra.gmra.mrb[100].mxu0 %vm2322_vm3, %v3045_v62 }
 0x44d   : > { %v6192_v2 = vpop.eup %6191  ;;  %5614 = vmatpush3.bf16.msra.mxu0 %v8223_v18  ;;  %5615 = vmatprep.mubr.msk.bf16.mxu0 %vm6245_vm1, %v8177_v49 }
 0x44e   : > { %2897 = vadd.xlane.f32.xlu0 %v2896_v26  ;;  %v3048_v15 = vpack.c.bf16 %v3006_v19, %v3005_v34  ;;  %5625 = vmatprep.subr.bf16.mxu0 %v8177_v49  ;;  %v3003_v53 = vmul.f32 %v6192_v2, %v7490_v4  ;;  %v8226_v4 = vld [vmem:[#allocation4_spill] sm:$0xff] }
 0x44f   : > { %v6194_v61 = vpop.eup %6193 }
 0x450   : > { %v3004_v33 = vmul.f32 %v6194_v61, %v7494_v32  ;;  %5622 = vmatmul.mubr.msk.bf16.vlgmr.msra.gmra.mrb[120].mxu1 %vm2322_vm3, %v3048_v15  ;;  %v8227_v32 = vld [vmem:[#allocation5_spill] sm:$0xff] }
 0x451   : > { %5633 = vmatprep.mubr.msk.bf16.mxu1 %vm6245_vm1, %v8177_v49 }
 0x452   : > { %v3047_v27 = vpack.c.bf16 %v3004_v33, %v3003_v53 }
 0x454   : > { %5616 = vmatmul.mubr.msk.bf16.vlgmr.msra.gmra.mrb[104].mxu0 %vm2322_vm3, %v3047_v27  ;;  %v8232_v27 = vld [vmem:[#allocation18_spill] sm:$0xff] }
 0x455   : > { %5627 = vmatprep.mubr.msk.bf16.mxu0 %vm6245_vm1, %v8177_v49 }
 0x45d   : > { %4187 = vrot.lane.b32.xlu1 %v8224_v39, %s6249_s14 }
 0x461   : > { %4281 = vrot.lane.b32.xlu1 %v8225_v21, %s6249_s14 }
 0x464   : > { %4234 = vrot.lane.b32.xlu0 %v8226_v4, %s6249_s14 }
 0x465   : > { %4328 = vrot.lane.b32.xlu1 %v8227_v32, %s6249_s14 }
 0x468   : > { %4375 = vrot.lane.b32.xlu0 %v8228_v31, %s6249_s14 }
 0x469   : > { %4422 = vrot.lane.b32.xlu1 %v8229_v50, %s6249_s14 }
 0x46c   : > { %4469 = vrot.lane.b32.xlu0 %v8230_v22, %s6249_s14 }
 0x46d   : > { %4516 = vrot.lane.b32.xlu1 %v8231_v51, %s6249_s14 }
 0x475   : > { %v7775_v29 = vpop.f32.mrb[64].mxu0 }
 0x476   : > { %v5497_v42 = vpop.f32.mrb[65].mxu0 }
 0x477   : > { %v7777_v58 = vpop.f32.mrb[66].mxu0 }
 0x478   : > { %v5498_v13 = vpop.f32.mrb[67].mxu0  ;;  %v2841_v1 = vpop.xlane.xlu1 %2840 }
 0x47a   : > { %v2844_v11 = vpop.xlane.xlu0 %2843 }
 0x480   : > { %v2859_v9 = vpop.xlane.xlu1 %2858 }
 0x481   : > { %6195 = vrcp.f32 %v2859_v9 }
 0x482   : > { %v2862_v57 = vpop.xlane.xlu0 %2861 }
 0x483   : > { %6197 = vrcp.f32 %v2862_v57 }
 0x484   : > { %v7781_v37 = vpop.xlane.xlu1 %2852 }
 0x485   : > { %v7779_v20 = vpop.f32.mrb[80].mxu1 }
 0x486   : > { %v5503_v63 = vpop.f32.mrb[81].mxu1  ;;  %v7785_v24 = vpop.xlane.xlu0 %2855 }
 0x487   : > { %v7783_v30 = vpop.f32.mrb[82].mxu1 }
 0x488   : > { %v5504_v59 = vpop.f32.mrb[83].mxu1 }
 0x48b   : > { %v6196_v45 = vpop.eup %6195 }
 0x48c   : > { %v2871_v28 = vpop.xlane.xlu1 %2870  ;;  %v7788_v8 = vmul.f32 %v6196_v45, %v7534_v3 }
 0x48d   : > { %v6198_v47 = vpop.eup %6197  ;;  %6199 = vrcp.f32 %v2871_v28 }
 0x48e   : > { %v7791_v36 = vmul.f32 %v6198_v47, %v7543_v25  ;;  %v2874_v60 = vpop.xlane.xlu0 %2873 }
 0x48f   : > { %6201 = vrcp.f32 %v2874_v60 }
 0x490   : > { %v3052_v40 = vpack.c.bf16 %v7791_v36, %v7788_v8  ;;  %6203 = vrcp.f32 %v2844_v11  ;;  %v7795_v46 = vpop.xlane.xlu1 %2864 }
 0x491   : > { %6205 = vrcp.f32 %v2850_v38 }
 0x492   : > { %6207 = vrcp.f32 %v2841_v1  ;;  %v2868_v25 = vpop.xlane.xlu0 %2867 }
 0x493   : > { %6209 = vrcp.f32 %v2847_v52 }
 0x497   : > { %v6200_v23 = vpop.eup %6199 }
 0x498   : > { %v7798_v62 = vmul.f32 %v6200_v23, %v7569_v56 }
 0x499   : > { %v6202_v12 = vpop.eup %6201 }
 0x49a   : > { %v7801_v3 = vmul.f32 %v6202_v12, %v7578_v10  ;;  %v6204_v19 = vpop.eup %6203 }
 0x49b   : > { %v6206_v2 = vpop.eup %6205  ;;  %v3008_v15 = vmul.f32 %v6204_v19, %v7526_v44 }
 0x49c   : > { %v2877_v14 = vpop.xlane.xlu1 %2876  ;;  %v3054_v17 = vpack.c.bf16 %v7801_v3, %v7798_v62  ;;  %v6208_v26 = vpop.eup %6207  ;;  %v3010_v10 = vmul.f32 %v6206_v2, %v7509_v55 }
 0x49d   : > { %6211 = vrcp.f32 %v2877_v14  ;;  %v6210_v61 = vpop.eup %6209  ;;  %v3007_v53 = vmul.f32 %v6208_v26, %v7520_v5  ;;  %v8233_v26 = vld [vmem:[#allocation36_spill] sm:$0xff] }
 0x49e   : > { %v2880_v34 = vpop.xlane.xlu0 %2879  ;;  %v3009_v39 = vmul.f32 %v6210_v61, %v8232_v27 }
 0x49f   : > { %6213 = vrcp.f32 %v2880_v34  ;;  %v3049_v4 = vpack.c.bf16 %v3008_v15, %v3007_v53 }
 0x4a0   : > { %v2883_v18 = vpop.xlane.xlu1 %2882  ;;  %v3050_v44 = vpack.c.bf16 %v3010_v10, %v3009_v39  ;;  %v8234_v39 = vld [vmem:[#allocation34_spill] sm:$0xff] }
 0x4a1   : > { %6215 = vrcp.f32 %v2883_v18 }
 0x4a2   : > { %v2886_v56 = vpop.xlane.xlu0 %2885 }
 0x4a3   : > { %6217 = vrcp.f32 %v2886_v56 }
 0x4a4   : > { %v4094_v33 = vpop.permute.xlu1 %4093  ;;  %6219 = vrcp.f32 %v7785_v24 }
 0x4a5   : > { %5626 = vmatpush3.bf16.msra.mxu0 %v4094_v33  ;;  %6221 = vrcp.f32 %v7781_v37 }
 0x4a6   : > { %v4141_v21 = vpop.permute.xlu0 %4140  ;;  %5637 = vmatprep.subr.bf16.mxu0 %v8177_v49  ;;  %6223 = vrcp.f32 %v2868_v25 }
 0x4a7   : > { %v6212_v32 = vpop.eup %6211  ;;  %5632 = vmatpush3.bf16.msra.mxu1 %v4141_v21  ;;  %6225 = vrcp.f32 %v7795_v46 }
 0x4a8   : > { %5628 = vmatmul.mubr.msk.bf16.vlgmr.msra.gmra.mrb[108].mxu0 %vm2322_vm3, %v3049_v4  ;;  %5643 = vmatprep.subr.bf16.mxu1 %v8177_v49  ;;  %v7815_v55 = vmul.f32 %v6212_v32, %v7616_v7  ;;  %v8235_v4 = vld [vmem:[#allocation39_spill] sm:$0xff] }
 0x4a9   : > { %v6214_v31 = vpop.eup %6213  ;;  %5639 = vmatprep.mubr.msk.bf16.mxu0 %vm6245_vm1, %v8177_v49 }
 0x4aa   : > { %v7818_v5 = vmul.f32 %v6214_v31, %v7620_v0  ;;  %5634 = vmatmul.mubr.msk.bf16.vlgmr.msra.gmra.mrb[124].mxu1 %vm2322_vm3, %v3050_v44 }
 0x4ab   : > { %v6216_v50 = vpop.eup %6215  ;;  %5645 = vmatprep.mubr.msk.bf16.mxu1 %vm6245_vm1, %v8177_v49 }
 0x4ac   : > { %v3055_v22 = vpack.c.bf16 %v7818_v5, %v7815_v55  ;;  %v7826_v42 = vmul.f32 %v6216_v50, %v7612_v43 }
 0x4ad   : > { %v6218_v51 = vpop.eup %6217 }
 0x4ae   : > { %v7829_v52 = vmul.f32 %v6218_v51, %v7624_v41  ;;  %v6220_v14 = vpop.eup %6219 }
 0x4af   : > { %v6222_v37 = vpop.eup %6221  ;;  %v3012_v19 = vmul.f32 %v6220_v14, %v7556_v6 }
 0x4b0   : > { %v3056_v7 = vpack.c.bf16 %v7829_v52, %v7826_v42  ;;  %v3011_v15 = vmul.f32 %v6222_v37, %v8233_v26  ;;  %v6224_v46 = vpop.eup %6223 }
 0x4b1   : > { %v6226_v27 = vpop.eup %6225  ;;  %v3016_v21 = vmul.f32 %v6224_v46, %v8234_v39 }
 0x4b2   : > { %v3051_v33 = vpack.c.bf16 %v3012_v19, %v3011_v15  ;;  %v3015_v32 = vmul.f32 %v6226_v27, %v8235_v4 }
 0x4b4   : > { %v3053_v31 = vpack.c.bf16 %v3016_v21, %v3015_v32 }
 0x4c4   : > { %v7833_v0 = vpop.f32.mrb[68].mxu0 }
 0x4c5   : > { %v5509_v13 = vpop.f32.mrb[69].mxu0 }
 0x4c6   : > { %v7835_v38 = vpop.f32.mrb[70].mxu0 }
 0x4c7   : > { %v5510_v1 = vpop.f32.mrb[71].mxu0 }
 0x4cc   : > { %v7837_v11 = vpop.f32.mrb[72].mxu0 }
 0x4cd   : > { %v5521_v9 = vpop.f32.mrb[73].mxu0 }
 0x4ce   : > { %v7840_v57 = vpop.f32.mrb[74].mxu0 }
 0x4cf   : > { %v5522_v43 = vpop.f32.mrb[75].mxu0 }
 0x4d0   : > { %v7843_v41 = vpop.f32.mrb[84].mxu1 }
 0x4d1   : > { %v5515_v63 = vpop.f32.mrb[85].mxu1 }
 0x4d2   : > { %v7845_v59 = vpop.f32.mrb[86].mxu1 }
 0x4d3   : > { %v5516_v45 = vpop.f32.mrb[87].mxu1 }
 0x4d4   : > { %v7847_v28 = vpop.f32.mrb[76].mxu0 }
 0x4d5   : > { %v5533_v47 = vpop.f32.mrb[77].mxu0  ;;  %v2889_v60 = vpop.xlane.xlu1 %2888 }
 0x4d6   : > { %v7849_v23 = vpop.f32.mrb[78].mxu0 }
 0x4d7   : > { %v5534_v12 = vpop.f32.mrb[79].mxu0  ;;  %v2892_v24 = vpop.xlane.xlu0 %2891 }
 0x4d8   : > { %6227 = vrcp.f32 %v2892_v24 }
 0x4d9   : > { %v2895_v34 = vpop.xlane.xlu1 %2894  ;;  %6229 = vrcp.f32 %v2889_v60 }
 0x4db   : > { %v2898_v2 = vpop.xlane.xlu0 %2897 }
 0x4dc   : > { %v7853_v18 = vpop.f32.mrb[88].mxu1  ;;  %6231 = vrcp.f32 %v2898_v2 }
 0x4dd   : > { %v5527_v56 = vpop.f32.mrb[89].mxu1  ;;  %v4188_v61 = vpop.permute.xlu1 %4187  ;;  %6233 = vrcp.f32 %v2895_v34 }
 0x4de   : > { %v7856_v10 = vpop.f32.mrb[90].mxu1  ;;  %5638 = vmatpush3.bf16.msra.mxu0 %v4188_v61 }
 0x4df   : > { %v5528_v25 = vpop.f32.mrb[91].mxu1  ;;  %v4235_v53 = vpop.permute.xlu0 %4234  ;;  %5649 = vmatprep.subr.bf16.mxu0 %v8177_v49 }
 0x4e0   : > { %5644 = vmatpush3.bf16.msra.mxu1 %v4235_v53 }
 0x4e1   : > { %5640 = vmatmul.mubr.msk.bf16.vlgmr.msra.gmra.mrb[112].mxu0 %vm2322_vm3, %v3051_v33  ;;  %v4282_v6 = vpop.permute.xlu1 %4281  ;;  %5655 = vmatprep.subr.bf16.mxu1 %v8177_v49 }
 0x4e2   : > { %5650 = vmatpush3.bf16.msra.mxu0 %v4282_v6  ;;  %5651 = vmatprep.mubr.msk.bf16.mxu0 %vm6245_vm1, %v8177_v49  ;;  %v6228_v1 = vpop.eup %6227 }
 0x4e3   : > { %5646 = vmatmul.mubr.msk.bf16.vlgmr.msra.gmra.mrb[128].mxu1 %vm2322_vm3, %v3052_v40  ;;  %5661 = vmatprep.subr.bf16.mxu0 %v8177_v49  ;;  %v4376_v50 = vpop.permute.xlu0 %4375  ;;  %v6230_v9 = vpop.eup %6229  ;;  %v3024_v62 = vmul.f32 %v6228_v1, %v7722_v35 }
 0x4e4   : > { %5657 = vmatprep.mubr.msk.bf16.mxu1 %vm6245_vm1, %v8177_v49  ;;  %v3023_v55 = vmul.f32 %v6230_v9, %v7714_v16 }
 0x4e5   : > { %v4329_v44 = vpop.permute.xlu1 %4328 }
 0x4e6   : > { %5656 = vmatpush3.bf16.msra.mxu1 %v4329_v44  ;;  %v6232_v63 = vpop.eup %6231  ;;  %v3057_v42 = vpack.c.bf16 %v3024_v62, %v3023_v55 }
 0x4e7   : > { %5667 = vmatprep.subr.bf16.mxu1 %v8177_v49  ;;  %v4470_v43 = vpop.permute.xlu0 %4469  ;;  %v3026_v5 = vmul.f32 %v6232_v63, %v7734_v48 }
 0x4e8   : > { %v7873_v51 = vpop.f32.mrb[92].mxu1 }
 0x4e9   : > { %v5539_v8 = vpop.f32.mrb[93].mxu1  ;;  %5652 = vmatmul.mubr.msk.bf16.vlgmr.msra.gmra.mrb[116].mxu0 %vm2322_vm3, %v3053_v31  ;;  %v4423_v36 = vpop.permute.xlu1 %4422 }
 0x4ea   : > { %v7876_v40 = vpop.f32.mrb[94].mxu1  ;;  %5662 = vmatpush3.bf16.msra.mxu0 %v4376_v50  ;;  %5663 = vmatprep.mubr.msk.bf16.mxu0 %vm6245_vm1, %v8177_v49 }
 0x4eb   : > { %v5540_v13 = vpop.f32.mrb[95].mxu1  ;;  %5658 = vmatmul.mubr.msk.bf16.vlgmr.msra.gmra.mrb[132].mxu1 %vm2322_vm3, %v3054_v17  ;;  %5673 = vmatprep.subr.bf16.mxu0 %v8177_v49  ;;  %v6234_v17 = vpop.eup %6233 }
 0x4ec   : > { %5668 = vmatpush3.bf16.msra.mxu1 %v4423_v36  ;;  %5669 = vmatprep.mubr.msk.bf16.mxu1 %vm6245_vm1, %v8177_v49  ;;  %v3025_v35 = vmul.f32 %v6234_v17, %v7727_v54 }
 0x4ed   : > { %5679 = vmatprep.subr.bf16.mxu1 %v8177_v49  ;;  %v4517_v3 = vpop.permute.xlu1 %4516 }
 0x4f1   : > { %5664 = vmatmul.mubr.msk.bf16.vlgmr.msra.gmra.mrb[120].mxu0 %vm2322_vm3, %v3055_v22 }
 0x4f2   : > { %5674 = vmatpush3.bf16.msra.mxu0 %v4470_v43  ;;  %5675 = vmatprep.mubr.msk.bf16.mxu0 %vm6245_vm1, %v8177_v49 }
 0x4f3   : > { %5670 = vmatmul.mubr.msk.bf16.vlgmr.msra.gmra.mrb[136].mxu1 %vm2322_vm3, %v3056_v7  ;;  %v3522_v45 = vpop.f32.mrb[96].mxu1 }
 0x4f4   : > { %5680 = vmatpush3.bf16.msra.mxu1 %v4517_v3  ;;  %5681 = vmatprep.mubr.msk.bf16.mxu1 %vm6245_vm1, %v8177_v49  ;;  %v5551_v22 = vpop.f32.mrb[97].mxu1  ;;  %v3058_v49 = vpack.c.bf16 %v3026_v5, %v3025_v35 }
 0x4f5   : > { %v3525_v47 = vpop.f32.mrb[98].mxu1 }
 0x4f6   : > { %v5847_v60 = vpack.i.bf16 %v3525_v47, %v3522_v45  ;;  %v5552_v12 = vpop.f32.mrb[99].mxu1 }
 0x4f7   : > { %v3475_v24 = vpop.f32.mrb[80].mxu0 }
 0x4f8   : > { %v5545_v52 = vpop.f32.mrb[81].mxu0  ;;  %5848 = vrot.lane.b32.xlu1 %v5847_v60, %s6250_s9 }
 0x4f9   : > { %v3478_v7 = vpop.f32.mrb[82].mxu0  ;;  %5676 = vmatmul.mubr.msk.bf16.vlgmr.msra.gmra.mrb[124].mxu0 %vm2322_vm3, %v3057_v42 }
 0x4fa   : > { %v5852_v14 = vpack.i.bf16 %v3478_v7, %v3475_v24  ;;  %v5546_v16 = vpop.f32.mrb[83].mxu0 }
 0x4fb   : > { %5682 = vmatmul.mubr.msk.bf16.vlgmr.msra.gmra.mrb[140].mxu1 %vm2322_vm3, %v3058_v49  ;;  %v3616_v48 = vpop.f32.mrb[100].mxu1 }
 0x4fc   : > { %5853 = vrot.lane.b32.xlu0 %v5852_v14, %s6250_s9  ;;  %v5563_v54 = vpop.f32.mrb[101].mxu1 }
 0x4fd   : > { %v3619_v34 = vpop.f32.mrb[102].mxu1 }
 0x4fe   : > { %v5857_v37 = vpack.i.bf16 %v3619_v34, %v3616_v48  ;;  %v5564_v19 = vpop.f32.mrb[103].mxu1 }
 0x4ff   : > { %v3569_v2 = vpop.f32.mrb[84].mxu0 }
 0x500   : > { %v5557_v26 = vpop.f32.mrb[85].mxu0  ;;  %5858 = vrot.lane.b32.xlu1 %v5857_v37, %s6250_s9 }
 0x501   : > { %v3572_v15 = vpop.f32.mrb[86].mxu0 }
 0x502   : > { %v5862_v56 = vpack.i.bf16 %v3572_v15, %v3569_v2  ;;  %v5558_v61 = vpop.f32.mrb[87].mxu0 }
 0x503   : > { %v3710_v25 = vpop.f32.mrb[104].mxu1 }
 0x504   : > { %5863 = vrot.lane.b32.xlu0 %v5862_v56, %s6250_s9  ;;  %v5575_v53 = vpop.f32.mrb[105].mxu1 }
 0x505   : > { %v3713_v33 = vpop.f32.mrb[106].mxu1 }
 0x506   : > { %v5867_v46 = vpack.i.bf16 %v3713_v33, %v3710_v25  ;;  %v5576_v6 = vpop.f32.mrb[107].mxu1 }
 0x507   : > { %v3663_v27 = vpop.f32.mrb[88].mxu0 }
 0x508   : > { %v5569_v39 = vpop.f32.mrb[89].mxu0  ;;  %5868 = vrot.lane.b32.xlu1 %v5867_v46, %s6250_s9 }
 0x509   : > { %v3666_v21 = vpop.f32.mrb[90].mxu0 }
 0x50a   : > { %v5872_v4 = vpack.i.bf16 %v3666_v21, %v3663_v27  ;;  %v5570_v32 = vpop.f32.mrb[91].mxu0 }
 0x50b   : > { %v7911_v44 = vpop.f32.mrb[108].mxu1 }
 0x50c   : > { %5873 = vrot.lane.b32.xlu0 %v5872_v4, %s6250_s9  ;;  %v5587_v31 = vpop.f32.mrb[109].mxu1 }
 0x50d   : > { %v7914_v50 = vpop.f32.mrb[110].mxu1 }
 0x50e   : > { %v5932_v8 = vpack.i.bf16 %v7914_v50, %v7911_v44  ;;  %v5588_v36 = vpop.f32.mrb[111].mxu1 }
 0x50f   : > { %v7918_v13 = vpop.f32.mrb[92].mxu0 }
 0x510   : > { %v5581_v1 = vpop.f32.mrb[93].mxu0 }
 0x511   : > { %v7920_v9 = vpop.f32.mrb[94].mxu0  ;;  %v5977_v1 = vld [vmem:[%s8081_s3] sm:$0xff]  }
 0x512   : > { %v5927_v43 = vpack.i.bf16 %v7920_v9, %v7918_v13  ;;  %v5582_v63 = vpop.f32.mrb[95].mxu0  ;;  %5685 = vmatprep.subr.bf16.mxu0 %v5977_v1 }
 0x513   : > { %v3898_v62 = vpop.f32.mrb[112].mxu1  ;;  %5686 = vmatpush3.bf16.msra.mxu0 %v5977_v1  ;;  %v5978_v63 = vld [vmem:[%s8081_s3 + $0x8] sm:$0xff]  }
 0x514   : > { %v5599_v3 = vpop.f32.mrb[113].mxu1  ;;  %5687 = vmatprep.subr.bf16.mxu0 %v5978_v63 }
 0x515   : > { %v3901_v17 = vpop.f32.mrb[114].mxu1 }
 0x516   : > { %v5877_v45 = vpack.i.bf16 %v3901_v17, %v3898_v62  ;;  %v5600_v55 = vpop.f32.mrb[115].mxu1 }
 0x517   : > { %v3851_v5 = vpop.f32.mrb[96].mxu0  ;;  %5688 = vmatpush3.bf16.msra.mxu0 %v5978_v63 }
 0x518   : > { %v5593_v22 = vpop.f32.mrb[97].mxu0  ;;  %5878 = vrot.lane.b32.xlu1 %v5877_v45, %s6251_s10 }
 0x519   : > { %v3854_v47 = vpop.f32.mrb[98].mxu0 }
 0x51a   : > { %v5882_v35 = vpack.i.bf16 %v3854_v47, %v3851_v5  ;;  %v5594_v60 = vpop.f32.mrb[99].mxu0 }
 0x51b   : > { %v3992_v12 = vpop.f32.mrb[116].mxu1 }
 0x51c   : > { %5883 = vrot.lane.b32.xlu0 %v5882_v35, %s6251_s10  ;;  %v5611_v24 = vpop.f32.mrb[117].mxu1 }
 0x51d   : > { %v3995_v42 = vpop.f32.mrb[118].mxu1 }
 0x51e   : > { %v5887_v52 = vpack.i.bf16 %v3995_v42, %v3992_v12  ;;  %v5612_v7 = vpop.f32.mrb[119].mxu1 }
 0x51f   : > { %v3945_v49 = vpop.f32.mrb[100].mxu0 }
 0x520   : > { %v5605_v14 = vpop.f32.mrb[101].mxu0  ;;  %5888 = vrot.lane.b32.xlu1 %v5887_v52, %s6251_s10 }
 0x521   : > { %v3948_v16 = vpop.f32.mrb[102].mxu0 }
 0x522   : > { %v5892_v48 = vpack.i.bf16 %v3948_v16, %v3945_v49  ;;  %v5606_v54 = vpop.f32.mrb[103].mxu0 }
 0x523   : > { %v4086_v34 = vpop.f32.mrb[120].mxu1 }
 0x524   : > { %5893 = vrot.lane.b32.xlu0 %v5892_v48, %s6251_s10  ;;  %v5623_v37 = vpop.f32.mrb[121].mxu1 }
 0x525   : > { %v4089_v19 = vpop.f32.mrb[122].mxu1 }
 0x526   : > { %v5912_v2 = vpack.i.bf16 %v4089_v19, %v4086_v34  ;;  %v5624_v26 = vpop.f32.mrb[123].mxu1 }
 0x527   : > { %v4039_v15 = vpop.f32.mrb[104].mxu0 }
 0x528   : > { %v5617_v56 = vpop.f32.mrb[105].mxu0 }
 0x529   : > { %v4042_v61 = vpop.f32.mrb[106].mxu0 }
 0x52a   : > { %v5907_v25 = vpack.i.bf16 %v4042_v61, %v4039_v15  ;;  %v5618_v53 = vpop.f32.mrb[107].mxu0 }
 0x57b   : > { %v4133_v33 = vpop.f32.mrb[108].mxu0 }
 0x57c   : > { %v5629_v46 = vpop.f32.mrb[109].mxu0 }
 0x57d   : > { %v4136_v6 = vpop.f32.mrb[110].mxu0  ;;  %v4180_v27 = vpop.f32.mrb[124].mxu1 }
 0x57e   : > { %v5947_v39 = vpack.i.bf16 %v4136_v6, %v4133_v33  ;;  %v5630_v21 = vpop.f32.mrb[111].mxu0  ;;  %v5635_v4 = vpop.f32.mrb[125].mxu1 }
 0x57f   : > { %v4183_v32 = vpop.f32.mrb[126].mxu1  ;;  %v5854_v21 = vpop.permute.xlu0 %5853 }
 0x580   : > { %v5952_v31 = vpack.i.bf16 %v4183_v32, %v4180_v27  ;;  %v5636_v36 = vpop.f32.mrb[127].mxu1  ;;  %v5849_v4 = vpop.permute.xlu1 %5848 }
 0x583   : > { %v5864_v32 = vpop.permute.xlu0 %5863 }
 0x584   : > { %v5859_v36 = vpop.permute.xlu1 %5858 }
 0x588   : > { %v7956_v1 = vpop.permute.xlu1 %5868 }
 0x5b4   : > { %v4227_v62 = vpop.f32.mrb[112].mxu0 }
 0x5b5   : > { %v5641_v3 = vpop.f32.mrb[113].mxu0 }
 0x5b6   : > { %v4230_v17 = vpop.f32.mrb[114].mxu0  ;;  %v4274_v45 = vpop.f32.mrb[128].mxu1 }
 0x5b7   : > { %v5902_v55 = vpack.i.bf16 %v4230_v17, %v4227_v62  ;;  %v5642_v5 = vpop.f32.mrb[115].mxu0  ;;  %v5647_v22 = vpop.f32.mrb[129].mxu1  ;;  %v5855_v17 = vunpack.i.l.bf16 %v5854_v21 }
 0x5b8   : > { %v4277_v47 = vpop.f32.mrb[130].mxu1  ;;  %v5879_v62 = vpop.permute.xlu1 %5878 }
 0x5b9   : > { %v5897_v35 = vpack.i.bf16 %v4277_v47, %v4274_v45  ;;  %v5648_v60 = vpop.f32.mrb[131].mxu1  ;;  %5903 = vrot.lane.b32.xlu0 %v5902_v55, %s6252_s15  ;;  %v5851_v45 = vunpack.i.h.bf16 %v5849_v4  ;;  %v5850_v55 = vunpack.i.l.bf16 %v5849_v4 }
 0x5ba   : > { %v5880_v60 = vunpack.i.l.bf16 %v5879_v62 }
 0x5bb   : > { %5898 = vrot.lane.b32.xlu1 %v5897_v35, %s6252_s15  ;;  %v5881_v35 = vunpack.i.h.bf16 %v5879_v62 }
 0x5bc   : > { %v4321_v12 = vpop.f32.mrb[116].mxu0  ;;  %v5889_v47 = vpop.permute.xlu1 %5888 }
 0x5bd   : > { %5908 = vrot.lane.b32.xlu0 %v5907_v25, %s6251_s10  ;;  %v5653_v24 = vpop.f32.mrb[117].mxu0 }
 0x5be   : > { %v4324_v42 = vpop.f32.mrb[118].mxu0  ;;  %v4368_v52 = vpop.f32.mrb[132].mxu1 }
 0x5bf   : > { %v5922_v7 = vpack.i.bf16 %v4324_v42, %v4321_v12  ;;  %5913 = vrot.lane.b32.xlu1 %v5912_v2, %s6251_s10  ;;  %v5654_v49 = vpop.f32.mrb[119].mxu0  ;;  %v5659_v14 = vpop.f32.mrb[133].mxu1  ;;  %v4755_v42 = vsel %vm652_vm2, %v7775_v29, %v5855_v17  ;;  %v5861_v29 = vunpack.i.h.bf16 %v5859_v36 }
 0x5c0   : > { %v4371_v16 = vpop.f32.mrb[134].mxu1  ;;  %v4758_v49 = vsel %vm652_vm2, %v7783_v30, %v5851_v45  ;;  %v4757_v14 = vsel %vm652_vm2, %v7779_v20, %v5850_v55  ;;  %v5865_v20 = vunpack.i.l.bf16 %v5864_v32 }
 0x5c1   : > { %v5917_v48 = vpack.i.bf16 %v4371_v16, %v4368_v52  ;;  %5923 = vrot.lane.b32.xlu0 %v5922_v7, %s6252_s15  ;;  %v5660_v54 = vpop.f32.mrb[135].mxu1  ;;  %v4762_v4 = vsel %vm652_vm2, %v7845_v59, %v5861_v29 }
 0x5c3   : > { %5918 = vrot.lane.b32.xlu1 %v5917_v48, %s6252_s15 }
 0x5c4   : > { %v4415_v34 = vpop.f32.mrb[120].mxu0 }
 0x5c5   : > { %5928 = vrot.lane.b32.xlu0 %v5927_v43, %s6250_s9  ;;  %v5665_v37 = vpop.f32.mrb[121].mxu0 }
 0x5c6   : > { %v4418_v19 = vpop.f32.mrb[122].mxu0  ;;  %v4462_v26 = vpop.f32.mrb[136].mxu1 }
 0x5c7   : > { %v5942_v15 = vpack.i.bf16 %v4418_v19, %v4415_v34  ;;  %v5666_v2 = vpop.f32.mrb[123].mxu0  ;;  %5933 = vrot.lane.b32.xlu1 %v5932_v8, %s6250_s9  ;;  %v5671_v56 = vpop.f32.mrb[137].mxu1 }
 0x5c8   : > { %v4465_v61 = vpop.f32.mrb[138].mxu1  ;;  %v5866_v56 = vunpack.i.h.bf16 %v5864_v32 }
 0x5c9   : > { %v5937_v25 = vpack.i.bf16 %v4465_v61, %v4462_v26  ;;  %5943 = vrot.lane.b32.xlu0 %v5942_v15, %s6252_s15  ;;  %v5672_v53 = vpop.f32.mrb[139].mxu1  ;;  %v4773_v26 = vsel %vm2322_vm3, %v4757_v14, %v5880_v60  ;;  %v4774_v15 = vsel %vm2322_vm3, %v4758_v49, %v5881_v35  ;;  %v5870_v60 = vunpack.i.l.bf16 %v7956_v1 }
 0x5ca   : > { %v5860_v53 = vunpack.i.l.bf16 %v5859_v36 }
 0x5cb   : > { %5938 = vrot.lane.b32.xlu1 %v5937_v25, %s6252_s15 }
 0x5cc   : > { %v4509_v13 = vpop.f32.mrb[124].mxu0  ;;  %v4761_v32 = vsel %vm652_vm2, %v7843_v41, %v5860_v53 }
 0x5cd   : > { %5948 = vrot.lane.b32.xlu0 %v5947_v39, %s6251_s10  ;;  %v5677_v9 = vpop.f32.mrb[125].mxu0  ;;  %v7954_v39 = vpop.permute.xlu0 %5873 }
 0x5ce   : > { %v4512_v43 = vpop.f32.mrb[126].mxu0  ;;  %v4556_v33 = vpop.f32.mrb[140].mxu1  ;;  %v5876_v41 = vunpack.i.h.bf16 %v7954_v39 }
 0x5cf   : > { %v5957_v46 = vpack.i.bf16 %v4512_v43, %v4509_v13  ;;  %v5678_v6 = vpop.f32.mrb[127].mxu0  ;;  %5953 = vrot.lane.b32.xlu1 %v5952_v31, %s6251_s10  ;;  %v5683_v44 = vpop.f32.mrb[141].mxu1  ;;  %v5856_v31 = vunpack.i.h.bf16 %v5854_v21 }
 0x5d0   : > { %v4559_v50 = vpop.f32.mrb[142].mxu1  ;;  %v5890_v6 = vunpack.i.l.bf16 %v5889_v47 }
 0x5d1   : > { %v5962_v8 = vpack.i.bf16 %v4559_v50, %v4556_v33  ;;  %5958 = vrot.lane.b32.xlu0 %v5957_v46, %s6252_s15  ;;  %v5684_v27 = vpop.f32.mrb[143].mxu1  ;;  %v5884_v63 = vpop.permute.xlu0 %5883  ;;  %v4756_v24 = vsel %vm652_vm2, %v7777_v58, %v5856_v31  ;;  %v5891_v46 = vunpack.i.h.bf16 %v5889_v47  ;;  %v4760_v50 = vsel %vm652_vm2, %v7835_v38, %v5866_v56 }
 0x5d2   : > { %v5886_v5 = vunpack.i.h.bf16 %v5884_v63  ;;  %v5885_v22 = vunpack.i.l.bf16 %v5884_v63  ;;  %v4777_v45 = vsel %vm2322_vm3, %v4761_v32, %v5890_v6 }
 0x5d3   : > { %5963 = vrot.lane.b32.xlu1 %v5962_v8, %s6252_s15  ;;  %v4759_v8 = vsel %vm652_vm2, %v7833_v0, %v5865_v20  ;;  %v5871_v0 = vunpack.i.h.bf16 %v7956_v1  ;;  %v4778_v59 = vsel %vm2322_vm3, %v4762_v4, %v5891_v46 }
 0x5d4   : > { %v4772_v16 = vsel %vm2322_vm3, %v4756_v24, %v5886_v5  ;;  %v4771_v48 = vsel %vm2322_vm3, %v4755_v42, %v5885_v22  ;;  %v5875_v22 = vunpack.i.l.bf16 %v7954_v39  ;;  %v4764_v39 = vsel %vm652_vm2, %v7840_v57, %v5876_v41 }
 0x5d5   : > { %v5894_v3 = vpop.permute.xlu0 %5893  ;;  %v4766_v1 = vsel %vm652_vm2, %v7856_v10, %v5871_v0 }
 0x5d6   : > { %v5896_v13 = vunpack.i.h.bf16 %v5894_v3  ;;  %v5895_v9 = vunpack.i.l.bf16 %v5894_v3 }
 0x5d8   : > { %v4776_v36 = vsel %vm2322_vm3, %v4760_v50, %v5896_v13  ;;  %v4775_v63 = vsel %vm2322_vm3, %v4759_v8, %v5895_v9 }
 0x62b   : > { %v5904_v12 = vpop.permute.xlu0 %5903 }
 0x62c   : > { %v5906_v52 = vunpack.i.h.bf16 %v5904_v12  ;;  %v5905_v7 = vunpack.i.l.bf16 %v5904_v12 }
 0x62d   : > { %v5899_v54 = vpop.permute.xlu1 %5898 }
 0x62e   : > { %v4789_v34 = vsel %vm4787_vm4, %v4772_v16, %v5906_v52  ;;  %v4788_v58 = vsel %vm4787_vm4, %v4771_v48, %v5905_v7  ;;  %v5901_v37 = vunpack.i.h.bf16 %v5899_v54  ;;  %v5900_v19 = vunpack.i.l.bf16 %v5899_v54 }
 0x62f   : > { %v4804_v30 = vpack.c.bf16 %v4789_v34, %v4788_v58  ;;  %v5909_v2 = vpop.permute.xlu0 %5908  ;;  %v4763_v16 = vsel %vm652_vm2, %v7837_v11, %v5875_v22  ;;  %v4765_v34 = vsel %vm652_vm2, %v7853_v18, %v5870_v60 }
 0x630   : > { %v4790_v61 = vsel %vm4787_vm4, %v4773_v26, %v5900_v19  ;;  %v4791_v25 = vsel %vm4787_vm4, %v4774_v15, %v5901_v37  ;;  %v5911_v12 = vunpack.i.h.bf16 %v5909_v2  ;;  %v5910_v24 = vunpack.i.l.bf16 %v5909_v2 }
 0x631   : > { %v4805_v43 = vpack.c.bf16 %v4791_v25, %v4790_v61  ;;  %5689 = vmatprep.mubr.msk.bf16.mxu0 %vm335_vm0, %v4804_v30  ;;  %v5914_v33 = vpop.permute.xlu1 %5913 }
 0x632   : > { %v5916_v7 = vunpack.i.h.bf16 %v5914_v33  ;;  %v5915_v49 = vunpack.i.l.bf16 %v5914_v33  ;;  %v4780_v58 = vsel %vm2322_vm3, %v4764_v39, %v5911_v12  ;;  %v4779_v37 = vsel %vm2322_vm3, %v4763_v16, %v5910_v24 }
 0x633   : > { %v5924_v44 = vpop.permute.xlu0 %5923  ;;  %5690 = vmatmul.mubr.msk.bf16.vlgmr.msra.gmra.mrb[128].mxu0 %vm335_vm0, %v4805_v43 }
 0x634   : > { %v5926_v27 = vunpack.i.h.bf16 %v5924_v44  ;;  %v5925_v21 = vunpack.i.l.bf16 %v5924_v44  ;;  %v4781_v11 = vsel %vm2322_vm3, %v4765_v34, %v5915_v49  ;;  %v4782_v30 = vsel %vm2322_vm3, %v4766_v1, %v5916_v7 }
 0x635   : > { %v5919_v62 = vpop.permute.xlu1 %5918 }
 0x636   : > { %v4793_v3 = vsel %vm4787_vm4, %v4776_v36, %v5926_v27  ;;  %v4792_v38 = vsel %vm4787_vm4, %v4775_v63, %v5925_v21  ;;  %v5921_v31 = vunpack.i.h.bf16 %v5919_v62  ;;  %v5920_v17 = vunpack.i.l.bf16 %v5919_v62 }
 0x637   : > { %v4806_v55 = vpack.c.bf16 %v4793_v3, %v4792_v38  ;;  %v5929_v5 = vpop.permute.xlu0 %5928 }
 0x638   : > { %v4794_v47 = vsel %vm4787_vm4, %v4777_v45, %v5920_v17  ;;  %v4795_v35 = vsel %vm4787_vm4, %v4778_v59, %v5921_v31  ;;  %v5931_v2 = vunpack.i.h.bf16 %v5929_v5  ;;  %v5930_v20 = vunpack.i.l.bf16 %v5929_v5  ;;  %v5120_v59 = vld [vmem:[%s8082_s4] ss:$0 sm:$0xff] }
 0x639   : > { %v4807_v42 = vpack.c.bf16 %v4795_v35, %v4794_v47  ;;  %v5934_v52 = vpop.permute.xlu1 %5933  ;;  %5693 = vmatprep.mubr.msk.bf16.mxu0 %vm335_vm0, %v4806_v55 }
 0x63a   : > { %v5936_v18 = vunpack.i.h.bf16 %v5934_v52  ;;  %v5935_v53 = vunpack.i.l.bf16 %v5934_v52  ;;  %v4768_v50 = vsel %vm652_vm2, %v7849_v23, %v5931_v2  ;;  %v4767_v8 = vsel %vm652_vm2, %v7847_v28, %v5930_v20 }
 0x63b   : > { %v5944_v14 = vpop.permute.xlu0 %5943  ;;  %5694 = vmatmul.mubr.msk.bf16.gmra.mrb[132].mxu0 %vm335_vm0, %v4807_v42 }
 0x63c   : > { %v5946_v48 = vunpack.i.h.bf16 %v5944_v14  ;;  %v5945_v54 = vunpack.i.l.bf16 %v5944_v14  ;;  %v4770_v4 = vsel %vm652_vm2, %v7876_v40, %v5936_v18  ;;  %v4769_v32 = vsel %vm652_vm2, %v7873_v51, %v5935_v53 }
 0x63d   : > { %v5939_v19 = vpop.permute.xlu1 %5938 }
 0x63e   : > { %v4797_v29 = vsel %vm4787_vm4, %v4780_v58, %v5946_v48  ;;  %v4796_v57 = vsel %vm4787_vm4, %v4779_v37, %v5945_v54  ;;  %v5941_v26 = vunpack.i.h.bf16 %v5939_v19  ;;  %v5940_v15 = vunpack.i.l.bf16 %v5939_v19 }
 0x63f   : > { %v4808_v10 = vpack.c.bf16 %v4797_v29, %v4796_v57  ;;  %v5949_v56 = vpop.permute.xlu0 %5948 }
 0x640   : > { %v4798_v61 = vsel %vm4787_vm4, %v4781_v11, %v5940_v15  ;;  %v4799_v25 = vsel %vm4787_vm4, %v4782_v30, %v5941_v26  ;;  %v5951_v9 = vunpack.i.h.bf16 %v5949_v56  ;;  %v5950_v43 = vunpack.i.l.bf16 %v5949_v56 }
 0x641   : > { %v4809_v13 = vpack.c.bf16 %v4799_v25, %v4798_v61  ;;  %v5954_v33 = vpop.permute.xlu1 %5953  ;;  %5697 = vmatprep.mubr.msk.bf16.mxu0 %vm335_vm0, %v4808_v10 }
 0x642   : > { %v5956_v46 = vunpack.i.h.bf16 %v5954_v33  ;;  %v5955_v6 = vunpack.i.l.bf16 %v5954_v33  ;;  %v4784_v36 = vsel %vm2322_vm3, %v4768_v50, %v5951_v9  ;;  %v4783_v63 = vsel %vm2322_vm3, %v4767_v8, %v5950_v43 }
 0x643   : > { %v5959_v44 = vpop.permute.xlu0 %5958  ;;  %5698 = vmatmul.mubr.msk.bf16.gmra.mrb[136].mxu0 %vm335_vm0, %v4809_v13 }
 0x644   : > { %v5961_v27 = vunpack.i.h.bf16 %v5959_v44  ;;  %v5960_v21 = vunpack.i.l.bf16 %v5959_v44  ;;  %v4785_v31 = vsel %vm2322_vm3, %v4769_v32, %v5955_v6  ;;  %v4786_v17 = vsel %vm2322_vm3, %v4770_v4, %v5956_v46 }
 0x645   : > { %v5964_v62 = vpop.permute.xlu1 %5963 }
 0x646   : > { %v4801_v3 = vsel %vm4787_vm4, %v4784_v36, %v5961_v27  ;;  %v4800_v23 = vsel %vm4787_vm4, %v4783_v63, %v5960_v21  ;;  %v5966_v38 = vunpack.i.h.bf16 %v5964_v62  ;;  %v5965_v28 = vunpack.i.l.bf16 %v5964_v62 }
 0x647   : > { %v4810_v40 = vpack.c.bf16 %v4801_v3, %v4800_v23 }
 0x648   : > { %v4802_v0 = vsel %vm4787_vm4, %v4785_v31, %v5965_v28  ;;  %v4803_v51 = vsel %vm4787_vm4, %v4786_v17, %v5966_v38 }
 0x649   : > { %v4811_v45 = vpack.c.bf16 %v4803_v51, %v4802_v0  ;;  %5701 = vmatprep.mubr.msk.bf16.mxu0 %vm335_vm0, %v4810_v40 }
 0x64b   : > { %5702 = vmatmul.mubr.msk.bf16.gmra.mrb[140].mxu0 %vm335_vm0, %v4811_v45 }
 0x706   : > { %v5691_v55 = vpop.f32.mrb[128].mxu0 }
 0x707   : > { %v4902_v5 = vadd.f32 %v5691_v55, %v5120_v59  ;;  %v4893_v41 = vpop.f32.mrb[129].mxu0 }
 0x708   : > { %v4894_v22 = vadd.f32 %v5120_v59, %v4893_v41  ;;  %v5692_v47 = vpop.f32.mrb[130].mxu0 }
 0x709   : > { %4958 = vst.msk [vmem:[%s8041_s22 + $0x10] sm:$0xff] %vm335_vm0, %v4902_v5  ;;  %v4905_v35 = vadd.f32 %v5692_v47, %v5120_v59  ;;  %v4896_v60 = vpop.f32.mrb[131].mxu0 }
 0x70a   : > { %4956 = vst.msk [vmem:[%s8041_s22] sm:$0xff] %vm335_vm0, %v4894_v22  ;;  %v4897_v12 = vadd.f32 %v5120_v59, %v4896_v60 }
 0x70b   : > { %4959 = vst.msk [vmem:[%s8041_s22 + $0x18] sm:$0xff] %vm335_vm0, %v4905_v35 }
 0x70c   : > { %4957 = vst.msk [vmem:[%s8041_s22 + $0x8] sm:$0xff] %vm335_vm0, %v4897_v12 }
 0x70e   : > { %v5695_v24 = vpop.f32.mrb[132].mxu0 }
 0x70f   : > { %v4918_v42 = vadd.f32 %v5695_v24, %v5120_v59  ;;  %v4909_v52 = vpop.f32.mrb[133].mxu0 }
 0x710   : > { %v4910_v7 = vadd.f32 %v5120_v59, %v4909_v52  ;;  %v5696_v49 = vpop.f32.mrb[134].mxu0 }
 0x711   : > { %4962 = vst.msk [vmem:[%s8041_s22 + $0x30] sm:$0xff] %vm335_vm0, %v4918_v42  ;;  %v4921_v14 = vadd.f32 %v5696_v49, %v5120_v59  ;;  %v4912_v39 = vpop.f32.mrb[135].mxu0 }
 0x712   : > { %4960 = vst.msk [vmem:[%s8041_s22 + $0x20] sm:$0xff] %vm335_vm0, %v4910_v7  ;;  %v4913_v16 = vadd.f32 %v5120_v59, %v4912_v39 }
 0x713   : > { %4963 = vst.msk [vmem:[%s8041_s22 + $0x38] sm:$0xff] %vm335_vm0, %v4921_v14 }
 0x714   : > { %4961 = vst.msk [vmem:[%s8041_s22 + $0x28] sm:$0xff] %vm335_vm0, %v4913_v16 }
 0x716   : > { %v5699_v48 = vpop.f32.mrb[136].mxu0 }
 0x717   : > { %v4934_v54 = vadd.f32 %v5699_v48, %v5120_v59  ;;  %v4925_v1 = vpop.f32.mrb[137].mxu0 }
 0x718   : > { %v4926_v34 = vadd.f32 %v5120_v59, %v4925_v1  ;;  %v5700_v58 = vpop.f32.mrb[138].mxu0 }
 0x719   : > { %4966 = vst.msk [vmem:[%s8041_s22 + $0x50] sm:$0xff] %vm335_vm0, %v4934_v54  ;;  %v4937_v37 = vadd.f32 %v5700_v58, %v5120_v59  ;;  %v4928_v19 = vpop.f32.mrb[139].mxu0 }
 0x71a   : > { %4964 = vst.msk [vmem:[%s8041_s22 + $0x40] sm:$0xff] %vm335_vm0, %v4926_v34  ;;  %v4929_v29 = vadd.f32 %v5120_v59, %v4928_v19 }
 0x71b   : > { %4967 = vst.msk [vmem:[%s8041_s22 + $0x58] sm:$0xff] %vm335_vm0, %v4937_v37 }
 0x71c   : > { %4965 = vst.msk [vmem:[%s8041_s22 + $0x48] sm:$0xff] %vm335_vm0, %v4929_v29 }
 0x71e   : > { %v5703_v57 = vpop.f32.mrb[140].mxu0 }
 0x71f   : > { %v4950_v26 = vadd.f32 %v5703_v57, %v5120_v59  ;;  %v4941_v15 = vpop.f32.mrb[141].mxu0 }
 0x720   : > { %v4942_v11 = vadd.f32 %v5120_v59, %v4941_v15  ;;  %v5704_v30 = vpop.f32.mrb[142].mxu0 }
 0x721   : > { %4970 = vst.msk [vmem:[%s8041_s22 + $0x70] sm:$0xff] %vm335_vm0, %v4950_v26  ;;  %v4953_v2 = vadd.f32 %v5704_v30, %v5120_v59  ;;  %v4944_v10 = vpop.f32.mrb[143].mxu0 }
 0x722   : > { %4968 = vst.msk [vmem:[%s8041_s22 + $0x60] sm:$0xff] %vm335_vm0, %v4942_v11  ;;  %v4945_v56 = vadd.f32 %v5120_v59, %v4944_v10 }
 0x723   : > { %4971 = vst.msk [vmem:[%s8041_s22 + $0x78] sm:$0xff] %vm335_vm0, %v4953_v2 }
 0x724   : > { %4969 = vst.msk [vmem:[%s8041_s22 + $0x68] sm:$0xff] %vm335_vm0, %v4945_v56 }
 0x725 PF: > { %s16_s21 = sadd.s32 1, %s6241_s21  }
 0x726   : > { %p13_p4 = scmp.ge.s32.totalorder %s16_s21, 4  }
 0x728   :  { %15 = sbr.rel (!%p13_p4) target bundleno = 1 (0x1), region = 74 }

</bundles_post_ra>
